<compile_context>
chip_gen: v7x
topology: tpu7x:2x2x1
jax: 0.10.0
libtpu: 0.0.40
codegen_flags: <defaults>
</compile_context>

<pallas_src>
import functools

import jax
import jax.numpy as jnp
from jax.experimental import pallas as pl
from jax.experimental.pallas import tpu as pltpu


_VMEM_TARGET_BYTES = 24 * 1024 * 1024   # tile budget (portable to v5e/v6e/v7x)
_VMEM_LIMIT_BYTES = 32 * 1024 * 1024    # explicit scoped-VMEM limit for Mosaic


def _round_up(x, m):
    return ((x + m - 1) // m) * m


# ----------------------------------------------------------------------------
# Static tile-size selection.
# ----------------------------------------------------------------------------
def _pick_time_chunk(T, max_chunk=32, min_chunk=8):
    """Time-chunk size (steps unrolled per grid iteration).

    Prefers chunks that minimize time padding; pads awkward/prime T instead of
    collapsing to tc=1 (per-grid-step overhead ~0.35us would dominate).
    """
    if T <= max_chunk:
        return T
    best_c, best_total = min_chunk, _round_up(T, min_chunk)
    for c in range(min_chunk, max_chunk + 1):
        total = _round_up(T, c)
        if total < best_total or (total == best_total and c > best_c):
            best_c, best_total = c, total
    return best_c


def _pick_batch_tile(N, max_tile=256):
    """Batch tile: >=16 (full bf16 sublane packing), grows with the batch for
    MXU row occupancy, but <= half the padded batch so the 'parallel' grid
    axis keeps >=2 tiles for v7x's two TensorCores."""
    np16 = _round_up(max(N, 1), 16)
    return max(16, min(max_tile, (np16 // 2) // 16 * 16))


def _recurrence_vmem_bytes(tc, nb, hp, din):
    """Approx. VMEM per recurrent grid step (double-buffered blocks + scratch)."""
    bf, f32 = 2, 4
    x_blk = tc * nb * din * bf
    wih = din * 4 * hp * bf
    whh = hp * 4 * hp * bf
    bias = 4 * hp * f32
    h_out = tc * nb * hp * bf
    scratch = tc * nb * 4 * hp * f32 + 2 * nb * hp * f32
    return 2 * (x_blk + wih + whh + bias + h_out) + scratch


def _fit_tiles(T, N, hp_max, din_max):
    """Pick (tc, nb) under the VMEM budget and the resulting (T_pad, Np)."""
    tc = _pick_time_chunk(T)
    nb = _pick_batch_tile(N)
    while _recurrence_vmem_bytes(tc, nb, hp_max, din_max) > _VMEM_TARGET_BYTES:
        if tc > 8:
            tc = max(8, tc // 2)
        elif nb > 16:
            nb = max(16, (nb // 2) // 16 * 16)
        else:
            break  # TODO(synk): tile the 4*Hp gate axis for very large hidden sizes.
    return tc, nb, _round_up(T, tc), _round_up(max(N, 1), nb)


# ----------------------------------------------------------------------------
# Fused LSTM layer kernel.
# grid = (batch tiles ['parallel'], time chunks ['arbitrary']).
# Per grid step:
#   1. Hoisted input projection for the whole chunk:
#        (tc*nb, Din) @ (Din, 4*Hp) + bias  ->  f32 gates scratch in VMEM
#      (no HBM round trip of pre-projected gates).
#   2. Serial recurrence over tc steps; only h_prev @ W_hh^T is on the chain.
# h/c carries live in f32 VMEM scratch and persist across time chunks.
# Gates are 128-lane-aligned Hp-wide slabs; padded lanes/rows stay zero.
# ----------------------------------------------------------------------------
def _lstm_fused_kernel(x_ref, wih_ref, whh_ref, b_ref, h_out_ref,
                       g_sc, h_sc, c_sc, *, hp, tc, nb):
    # New batch tile (first time chunk) -> zero initial state.
    @pl.when(pl.program_id(1) == 0)
    def _():
        h_sc[...] = jnp.zeros_like(h_sc)
        c_sc[...] = jnp.zeros_like(c_sc)

    # Chunk-hoisted input projection: one (tc*nb, Din) x (Din, 4*Hp) MXU matmul
    # (bf16 operands, f32 accumulation), bias folded in, written to VMEM scratch.
    din = x_ref.shape[-1]
    x_flat = x_ref[...].reshape(tc * nb, din)          # leading-dim merge (nb % 16 == 0)
    g_sc[...] = (
        jnp.dot(x_flat, wih_ref[...], preferred_element_type=jnp.float32)
        + b_ref[...]
    ).reshape(tc, nb, 4 * hp)

    def step(t, carry):
        h_prev = h_sc[...]                              # (nb, Hp) f32
        c_prev = c_sc[...]
        # Only the recurrent matmul is on the serial dependence chain.
        gates = g_sc[t] + jnp.dot(
            h_prev.astype(jnp.bfloat16), whh_ref[...],
            preferred_element_type=jnp.float32)         # (nb, 4*Hp) f32
        i_g = jax.nn.sigmoid(gates[:, 0 * hp:1 * hp])
        f_g = jax.nn.sigmoid(gates[:, 1 * hp:2 * hp])
        g_g = jnp.tanh(gates[:, 2 * hp:3 * hp])
        o_g = jax.nn.sigmoid(gates[:, 3 * hp:4 * hp])
        c_new = f_g * c_prev + i_g * g_g                # elementwise kept in f32
        h_new = o_g * jnp.tanh(c_new)
        c_sc[...] = c_new
        h_sc[...] = h_new
        h_out_ref[t] = h_new.astype(h_out_ref.dtype)    # bf16, full (16,128) tiles
        return carry

    jax.lax.fori_loop(0, tc, step, 0, unroll=True)


def _lstm_layer_pallas(x_tnd, wih_bf, whh_bf, bias_f32, *, hp, tc, nb):
    """x_tnd: (T_pad, Np, Din) bf16 (time-major) -> (T_pad, Np, Hp) bf16."""
    T_pad, Np, Din = x_tnd.shape
    return pl.pallas_call(
        functools.partial(_lstm_fused_kernel, hp=hp, tc=tc, nb=nb),
        out_shape=jax.ShapeDtypeStruct((T_pad, Np, hp), jnp.bfloat16),
        grid_spec=pltpu.PrefetchScalarGridSpec(
            num_scalar_prefetch=0,
            grid=(Np // nb, T_pad // tc),
            in_specs=[
                pl.BlockSpec((tc, nb, Din), lambda b, t: (t, b, 0)),
                pl.BlockSpec((Din, 4 * hp), lambda b, t: (0, 0)),
                pl.BlockSpec((hp, 4 * hp), lambda b, t: (0, 0)),
                pl.BlockSpec((1, 4 * hp), lambda b, t: (0, 0)),
            ],
            out_specs=pl.BlockSpec((tc, nb, hp), lambda b, t: (t, b, 0)),
            scratch_shapes=[
                pltpu.VMEM((tc, nb, 4 * hp), jnp.float32),   # chunk gates
                pltpu.VMEM((nb, hp), jnp.float32),           # h carry
                pltpu.VMEM((nb, hp), jnp.float32),           # c carry
            ],
        ),
        compiler_params=pltpu.CompilerParams(
            dimension_semantics=("parallel", "arbitrary"),
            vmem_limit_bytes=_VMEM_LIMIT_BYTES),
    )(x_tnd, wih_bf, whh_bf, bias_f32)


# ----------------------------------------------------------------------------
# Tiled linear kernel for the fused output heads: out = x @ w + b.
# bf16 operands on the MXU, f32 accumulation; tiled over M and N (lane-dense).
# ----------------------------------------------------------------------------
def _linear_bias_kernel(x_ref, w_ref, b_ref, o_ref):
    o_ref[...] = (
        jnp.dot(x_ref[...], w_ref[...], preferred_element_type=jnp.float32)
        + b_ref[...]
    ).astype(o_ref.dtype)


def _linear_vmem_bytes(tm, tn, K):
    bf, f32 = 2, 4
    return 2 * (tm * K * bf + K * tn * bf + tn * f32 + tm * tn * f32)


def _divisor_tile(N, max_tile, step=128):
    tile = step
    for cand in range(min(max_tile, N), step - 1, -step):
        if N % cand == 0:
            tile = cand
            break
    return tile


def linear_bias_pallas(x, w, b, *, block_m=512, block_n=512,
                       out_dtype=jnp.float32):
    """x:(M,K) bf16, w:(K,N) bf16 (N multiple of 128), b:(1,N) f32 -> (M,N)."""
    M, K = x.shape
    N = w.shape[1]
    tn = _divisor_tile(N, block_n)
    tm = min(block_m, _round_up(M, 8))
    while _linear_vmem_bytes(tm, tn, K) > _VMEM_TARGET_BYTES and tm > 64:
        tm = max(64, _round_up(tm // 2, 8))
    while _linear_vmem_bytes(tm, tn, K) > _VMEM_TARGET_BYTES and tn > 128:
        tn = _divisor_tile(N, tn - 128)
    # TODO(synk): K-reduction tiling (f32 accumulator + 'arbitrary' axis) would be
    # needed for very large hidden sizes; K = Hp is small for this module.
    Mp = _round_up(M, tm)
    if Mp != M:
        x = jnp.pad(x, ((0, Mp - M), (0, 0)))
    out = pl.pallas_call(
        _linear_bias_kernel,
        out_shape=jax.ShapeDtypeStruct((Mp, N), out_dtype),
        grid_spec=pltpu.PrefetchScalarGridSpec(
            num_scalar_prefetch=0,
            grid=(Mp // tm, N // tn),
            in_specs=[
                pl.BlockSpec((tm, K), lambda i, j: (i, 0)),
                pl.BlockSpec((K, tn), lambda i, j: (0, j)),
                pl.BlockSpec((1, tn), lambda i, j: (0, j)),
            ],
            out_specs=pl.BlockSpec((tm, tn), lambda i, j: (i, j)),
        ),
        compiler_params=pltpu.CompilerParams(
            dimension_semantics=("parallel", "parallel"),
            vmem_limit_bytes=_VMEM_LIMIT_BYTES),
    )(x, w, b)
    return out if Mp == M else out[:M]


# ----------------------------------------------------------------------------
# Weight packing: PyTorch (4H, Din)/(4H, H)/(4H,) -> padded, transposed,
# gate-aligned slabs.  Each gate gets a 128-lane-aligned Hp-wide column block;
# padded rows/columns/bias are zero so padded hidden lanes stay exactly zero.
# ----------------------------------------------------------------------------
def _pack_lstm_weights(lp, din_in, H, Hp):
    w_ih, w_hh = lp["w_ih"], lp["w_hh"]
    b = lp["b_ih"] + lp["b_hh"]            # bias folded into the fused projection
    d_real = w_ih.shape[1]
    wih_t = jnp.zeros((din_in, 4 * Hp), jnp.float32)
    whh_t = jnp.zeros((Hp, 4 * Hp), jnp.float32)
    bias = jnp.zeros((1, 4 * Hp), jnp.float32)
    for k in range(4):                     # PyTorch gate order [i, f, g, o]
        wih_t = wih_t.at[:d_real, k * Hp:k * Hp + H].set(w_ih[k * H:(k + 1) * H, :].T)
        whh_t = whh_t.at[:H, k * Hp:k * Hp + H].set(w_hh[k * H:(k + 1) * H, :].T)
        bias = bias.at[0, k * Hp:k * Hp + H].set(b[k * H:(k + 1) * H])
    return wih_t, whh_t, bias


# ----------------------------------------------------------------------------
# Factory: pack weights once, return a jitted forward(x) callable.
# ----------------------------------------------------------------------------
def make_multi_headed_lstm_forward(params):
    """forward(x: (N, T, input_dim) f32) -> [ (N, T, output_dims[i]) f32, ... ].

    Stacked nn.LSTM(batch_first=True, zero initial state) layers followed by
    per-head nn.Linear, matching MultiHeadedLSTMModule defaults.
    TODO(synk): layer_normalization=True and non-None output_nonlinearities
    (non-default constructor options) are not implemented.
    """
    # ---- LSTM weight packing (host side, once). ----
    lstm_packed = []
    din_in = int(params["lstm"][0]["w_ih"].shape[1])   # true input_dim for layer 0
    for lp in params["lstm"]:
        H = int(lp["w_hh"].shape[1])
        Hp = _round_up(H, 128)
        wih_t, whh_t, bias = _pack_lstm_weights(lp, din_in, H, Hp)
        lstm_packed.append(dict(wih=wih_t.astype(jnp.bfloat16),
                                whh=whh_t.astype(jnp.bfloat16),
                                bias=bias, hp=Hp, din=din_in))
        din_in = Hp                                    # next layer sees padded width

    # ---- Fused head weights: one lane-dense (Hp_last, Op) matmul. ----
    Hp_last = lstm_packed[-1]["hp"]
    out_dims = tuple(int(h["weight"].shape[0]) for h in params["heads"])
    Op = _round_up(sum(out_dims), 128)
    w_cat = jnp.zeros((Hp_last, Op), jnp.float32)
    b_cat = jnp.zeros((1, Op), jnp.float32)
    off = 0
    for hd, od in zip(params["heads"], out_dims):
        h_real = int(hd["weight"].shape[1])
        w_cat = w_cat.at[:h_real, off:off + od].set(hd["weight"].T)
        b_cat = b_cat.at[0, off:off + od].set(hd["bias"])
        off += od
    w_cat = w_cat.astype(jnp.bfloat16)

    hp_max = max(p["hp"] for p in lstm_packed)
    din_max = max(p["din"] for p in lstm_packed)

    @jax.jit
    def forward(x_ntd):
        N, T, _ = x_ntd.shape
        tc, nb, T_pad, Np = _fit_tiles(T, N, hp_max, din_max)

        # Time-major once for the whole stack; pad batch/time once.
        h = jnp.transpose(x_ntd, (1, 0, 2)).astype(jnp.float32)   # (T, N, Din)
        h = jnp.pad(h, ((0, T_pad - T), (0, Np - N), (0, 0)))
        h = h.astype(jnp.bfloat16)                                # MXU operand dtype

        for p in lstm_packed:
            h = _lstm_layer_pallas(h, p["wih"], p["whh"], p["bias"],
                                   hp=p["hp"], tc=tc, nb=nb)      # (T_pad, Np, Hp)

        out_full = linear_bias_pallas(h.reshape(T_pad * Np, Hp_last), w_cat, b_cat)
        out_full = out_full.reshape(T_pad, Np, Op)[:T, :N, :]
        out_full = jnp.transpose(out_full, (1, 0, 2))             # (N, T, Op)
        outs, o = [], 0
        for od in out_dims:                                       # split heads
            outs.append(out_full[:, :, o:o + od])
            o += od
        return outs

    return forward


# ----------------------------------------------------------------------------
# Parameter construction (mirrors module __init__ defaults:
#   hidden_w_init = xavier_normal_, hidden_b_init = zeros_,
#   output_w_inits = xavier_normal_, output_b_inits = zeros_,
#   layer_normalization=False, output_nonlinearities=None).
# ----------------------------------------------------------------------------
def _xavier_normal(key, shape):
    fan_out, fan_in = shape
    std = (2.0 / (fan_in + fan_out)) ** 0.5
    return std * jax.random.normal(key, shape, dtype=jnp.float32)


def init_params(key, n_heads, input_dim, output_dims, hidden_sizes):
    params = {"lstm": [], "heads": []}
    prev = input_dim
    for size in hidden_sizes:
        key, k1, k2 = jax.random.split(key, 3)
        params["lstm"].append(
            dict(
                w_ih=_xavier_normal(k1, (4 * size, prev)),
                w_hh=_xavier_normal(k2, (4 * size, size)),
                b_ih=jnp.zeros((4 * size,), jnp.float32),
                b_hh=jnp.zeros((4 * size,), jnp.float32),
            )
        )
        prev = size
    for od in output_dims:
        key, k1 = jax.random.split(key)
        params["heads"].append(
            dict(weight=_xavier_normal(k1, (od, prev)),
                 bias=jnp.zeros((od,), jnp.float32))
        )
    return params


# ----------------------------------------------------------------------------
# Pure-JAX f32 reference for correctness checking.
# ----------------------------------------------------------------------------
def _lstm_layer_ref(x_ntd, w_ih, w_hh, b_ih, b_hh):
    N, T, _ = x_ntd.shape
    H = w_hh.shape[1]
    wih_t, whh_t, b = w_ih.T, w_hh.T, b_ih + b_hh

    def step(carry, xt):
        h, c = carry
        gates = xt @ wih_t + h @ whh_t + b
        i = jax.nn.sigmoid(gates[:, :H])
        f = jax.nn.sigmoid(gates[:, H:2 * H])
        g = jnp.tanh(gates[:, 2 * H:3 * H])
        o = jax.nn.sigmoid(gates[:, 3 * H:])
        c = f * c + i * g
        h = o * jnp.tanh(c)
        return (h, c), h

    init = (jnp.zeros((N, H), jnp.float32), jnp.zeros((N, H), jnp.float32))
    _, hs = jax.lax.scan(step, init, jnp.transpose(x_ntd, (1, 0, 2)))
    return jnp.transpose(hs, (1, 0, 2))


def _forward_ref(params, x_ntd):
    h = x_ntd
    for lp in params["lstm"]:
        h = _lstm_layer_ref(h, lp["w_ih"], lp["w_hh"], lp["b_ih"], lp["b_hh"])
    return [h @ hp_["weight"].T + hp_["bias"] for hp_ in params["heads"]]


if __name__ == "__main__":
    n_heads = 2
    input_dim = 4
    output_dims = (3, 5)
    hidden_sizes = (32, 32)
    N, T = 2, 8

    key = jax.random.PRNGKey(0)
    kp, kx = jax.random.split(key)
    params = init_params(kp, n_heads, input_dim, output_dims, hidden_sizes)
    x = jax.random.normal(kx, (N, T, input_dim), dtype=jnp.float32)

    forward = make_multi_headed_lstm_forward(params)
    outs = forward(x)
    outs = [jax.block_until_ready(o) for o in outs]

    refs = _forward_ref(params, x)
    for o, r, od in zip(outs, refs, output_dims):
        assert o.shape == (N, T, od), o.shape
        # bf16 MXU operands (f32 accumulation) -> loosened tolerance vs f32 ref.
        assert jnp.allclose(o, r, atol=2e-2, rtol=2e-2), "mismatch vs reference"

    print("KERNEL_OK")
</pallas_src>

<mosaic_0001>
module attributes {stable_mosaic.version = 11 : i64} {
  func.func @_linear_bias_kernel(%arg0: i32, %arg1: i32, %arg2: memref<128x128xbf16, #tpu.memory_space<vmem>>, %arg3: memref<128x128xbf16, #tpu.memory_space<vmem>>, %arg4: memref<1x128xf32, #tpu.memory_space<vmem>>, %arg5: memref<128x128xf32, #tpu.memory_space<vmem>>) attributes {dimension_semantics = [#tpu.dimension_semantics<parallel>, #tpu.dimension_semantics<parallel>], iteration_bounds = array<i64: 1, 1>, scalar_prefetch = 0 : i64, scratch_operands = 0 : i64, tpu.core_type = #tpu.core_type<tc>, window_params = [{transform_indices = @transform_0, window_bounds = array<i64: 128, 128>}, {transform_indices = @transform_1, window_bounds = array<i64: 128, 128>}, {transform_indices = @transform_2, window_bounds = array<i64: 1, 128>}, {transform_indices = @transform_3, window_bounds = array<i64: 128, 128>}]} {
    %c0 = arith.constant 0 : index
    %c0_0 = arith.constant 0 : index
    %0 = vector.load %arg2[%c0, %c0_0] : memref<128x128xbf16, #tpu.memory_space<vmem>>, vector<128x128xbf16>
    %c0_1 = arith.constant 0 : index
    %c0_2 = arith.constant 0 : index
    %1 = vector.load %arg3[%c0_1, %c0_2] : memref<128x128xbf16, #tpu.memory_space<vmem>>, vector<128x128xbf16>
    %cst = arith.constant dense<0.000000e+00> : vector<128x128xf32>
    %2 = tpu.matmul %0, %1, %cst {dimension_numbers = #tpu.dot_dimension_numbers<[1], [0], [0], [1], [0, 0, 1, 1], [], []>} : vector<128x128xbf16>, vector<128x128xbf16>, vector<128x128xf32> -> vector<128x128xf32>
    %c0_3 = arith.constant 0 : index
    %c0_4 = arith.constant 0 : index
    %3 = vector.load %arg4[%c0_3, %c0_4] : memref<1x128xf32, #tpu.memory_space<vmem>>, vector<1x128xf32>
    %4 = vector.broadcast %3 : vector<1x128xf32> to vector<128x128xf32>
    %5 = arith.addf %2, %4 : vector<128x128xf32>
    %c0_5 = arith.constant 0 : index
    %c0_6 = arith.constant 0 : index
    %6 = vector.load %arg5[%c0_5, %c0_6] : memref<128x128xf32, #tpu.memory_space<vmem>>, vector<128x128xf32>
    tpu.vector_store %arg5[%c0_5, %c0_6], %5 {strides = array<i32>} : memref<128x128xf32, #tpu.memory_space<vmem>>, vector<128x128xf32>,
    return
  }
  func.func @transform_0(%arg0: i32, %arg1: i32) -> (i32, i32) {
    %c0_i32 = arith.constant 0 : i32
    %c0_i32_0 = arith.constant 0 : i32
    return %arg0, %c0_i32 : i32, i32
  }
  func.func @transform_1(%arg0: i32, %arg1: i32) -> (i32, i32) {
    %c0_i32 = arith.constant 0 : i32
    %c0_i32_0 = arith.constant 0 : i32
    return %c0_i32, %arg1 : i32, i32
  }
  func.func @transform_2(%arg0: i32, %arg1: i32) -> (i32, i32) {
    %c0_i32 = arith.constant 0 : i32
    %c0_i32_0 = arith.constant 0 : i32
    return %c0_i32, %arg1 : i32, i32
  }
  func.func @transform_3(%arg0: i32, %arg1: i32) -> (i32, i32) {
    %c0_i32 = arith.constant 0 : i32
    return %arg0, %arg1 : i32, i32
  }
}

module attributes {stable_mosaic.version = 11 : i64} {
  func.func @_lstm_fused_kernel(%arg0: i32, %arg1: i32, %arg2: memref<8x16x128xbf16, #tpu.memory_space<vmem>>, %arg3: memref<128x512xbf16, #tpu.memory_space<vmem>>, %arg4: memref<128x512xbf16, #tpu.memory_space<vmem>>, %arg5: memref<1x512xf32, #tpu.memory_space<vmem>>, %arg6: memref<8x16x128xbf16, #tpu.memory_space<vmem>>, %arg7: memref<8x16x512xf32, #tpu.memory_space<vmem>>, %arg8: memref<16x128xf32, #tpu.memory_space<vmem>>, %arg9: memref<16x128xf32, #tpu.memory_space<vmem>>) attributes {dimension_semantics = [#tpu.dimension_semantics<parallel>, #tpu.dimension_semantics<arbitrary>], iteration_bounds = array<i64: 1, 1>, scalar_prefetch = 0 : i64, scratch_operands = 3 : i64, tpu.core_type = #tpu.core_type<tc>, window_params = [{transform_indices = @transform_0, window_bounds = array<i64: 8, 16, 128>}, {pipeline_mode = #tpu.pipeline_mode<synchronous>, transform_indices = @transform_1, window_bounds = array<i64: 128, 512>}, {pipeline_mode = #tpu.pipeline_mode<synchronous>, transform_indices = @transform_2, window_bounds = array<i64: 128, 512>}, {pipeline_mode = #tpu.pipeline_mode<synchronous>, transform_indices = @transform_3, window_bounds = array<i64: 1, 512>}, {transform_indices = @transform_4, window_bounds = array<i64: 8, 16, 128>}]} {
    %c0_i32 = arith.constant 0 : i32
    %0 = arith.cmpi eq, %arg1, %c0_i32 : i32
    %1 = arith.extui %0 : i1 to i32
    %c0_i32_0 = arith.constant 0 : i32
    %2 = arith.cmpi ne, %1, %c0_i32_0 : i32
    scf.if %2 {
      %cst_155 = arith.constant 0.000000e+00 : f32
      %340 = vector.broadcast %cst_155 : f32 to vector<16x128xf32>
      %c0_156 = arith.constant 0 : index
      %c0_157 = arith.constant 0 : index
      %341 = vector.load %arg8[%c0_156, %c0_157] : memref<16x128xf32, #tpu.memory_space<vmem>>, vector<16x128xf32>
      tpu.vector_store %arg8[%c0_156, %c0_157], %340 {strides = array<i32>} : memref<16x128xf32, #tpu.memory_space<vmem>>, vector<16x128xf32>,
      %cst_158 = arith.constant 0.000000e+00 : f32
      %342 = vector.broadcast %cst_158 : f32 to vector<16x128xf32>
      %c0_159 = arith.constant 0 : index
      %c0_160 = arith.constant 0 : index
      %343 = vector.load %arg9[%c0_159, %c0_160] : memref<16x128xf32, #tpu.memory_space<vmem>>, vector<16x128xf32>
      tpu.vector_store %arg9[%c0_159, %c0_160], %342 {strides = array<i32>} : memref<16x128xf32, #tpu.memory_space<vmem>>, vector<16x128xf32>,
    } else {
    }
    %c0 = arith.constant 0 : index
    %c0_1 = arith.constant 0 : index
    %c0_2 = arith.constant 0 : index
    %3 = vector.load %arg2[%c0, %c0_1, %c0_2] : memref<8x16x128xbf16, #tpu.memory_space<vmem>>, vector<8x16x128xbf16>
    %4 = vector.shape_cast %3 : vector<8x16x128xbf16> to vector<128x128xbf16>
    %c0_3 = arith.constant 0 : index
    %c0_4 = arith.constant 0 : index
    %5 = vector.load %arg3[%c0_3, %c0_4] : memref<128x512xbf16, #tpu.memory_space<vmem>>, vector<128x512xbf16>
    %cst = arith.constant dense<0.000000e+00> : vector<128x512xf32>
    %6 = tpu.matmul %4, %5, %cst {dimension_numbers = #tpu.dot_dimension_numbers<[1], [0], [0], [1], [0, 0, 1, 1], [], []>} : vector<128x128xbf16>, vector<128x512xbf16>, vector<128x512xf32> -> vector<128x512xf32>
    %c0_5 = arith.constant 0 : index
    %c0_6 = arith.constant 0 : index
    %7 = vector.load %arg5[%c0_5, %c0_6] : memref<1x512xf32, #tpu.memory_space<vmem>>, vector<1x512xf32>
    %8 = vector.broadcast %7 : vector<1x512xf32> to vector<128x512xf32>
    %9 = arith.addf %6, %8 : vector<128x512xf32>
    %10 = vector.shape_cast %9 : vector<128x512xf32> to vector<8x16x512xf32>
    %c0_7 = arith.constant 0 : index
    %c0_8 = arith.constant 0 : index
    %c0_9 = arith.constant 0 : index
    %11 = vector.load %arg7[%c0_7, %c0_8, %c0_9] : memref<8x16x512xf32, #tpu.memory_space<vmem>>, vector<8x16x512xf32>
    tpu.vector_store %arg7[%c0_7, %c0_8, %c0_9], %10 {strides = array<i32>} : memref<8x16x512xf32, #tpu.memory_space<vmem>>, vector<8x16x512xf32>,
    %c0_i32_10 = arith.constant 0 : i32
    %c0_11 = arith.constant 0 : index
    %c0_12 = arith.constant 0 : index
    %12 = vector.load %arg8[%c0_11, %c0_12] : memref<16x128xf32, #tpu.memory_space<vmem>>, vector<16x128xf32>
    %c0_13 = arith.constant 0 : index
    %c0_14 = arith.constant 0 : index
    %13 = vector.load %arg9[%c0_13, %c0_14] : memref<16x128xf32, #tpu.memory_space<vmem>>, vector<16x128xf32>
    %14 = arith.index_cast %c0_i32_10 : i32 to index
    %c0_15 = arith.constant 0 : index
    %c0_16 = arith.constant 0 : index
    %15 = vector.load %arg7[%14, %c0_15, %c0_16] : memref<8x16x512xf32, #tpu.memory_space<vmem>>, vector<1x16x512xf32>
    %16 = vector.shape_cast %15 : vector<1x16x512xf32> to vector<16x512xf32>
    %17 = arith.truncf %12 : vector<16x128xf32> to vector<16x128xbf16>
    %c0_17 = arith.constant 0 : index
    %c0_18 = arith.constant 0 : index
    %18 = vector.load %arg4[%c0_17, %c0_18] : memref<128x512xbf16, #tpu.memory_space<vmem>>, vector<128x512xbf16>
    %cst_19 = arith.constant dense<0.000000e+00> : vector<16x512xf32>
    %19 = tpu.matmul %17, %18, %cst_19 {dimension_numbers = #tpu.dot_dimension_numbers<[1], [0], [0], [1], [0, 0, 1, 1], [], []>} : vector<16x128xbf16>, vector<128x512xbf16>, vector<16x512xf32> -> vector<16x512xf32>
    %20 = arith.addf %16, %19 : vector<16x512xf32>
    %21 = vector.extract_strided_slice %20 {offsets = [0, 0], sizes = [16, 128], strides = [1, 1]} : vector<16x512xf32> to vector<16x128xf32>
    %22 = arith.negf %21 : vector<16x128xf32>
    %23 = math.exp %22 : vector<16x128xf32>
    %cst_20 = arith.constant 1.000000e+00 : f32
    %24 = vector.broadcast %cst_20 : f32 to vector<16x128xf32>
    %25 = arith.addf %24, %23 : vector<16x128xf32>
    %26 = arith.divf %24, %25 : vector<16x128xf32>
    %27 = vector.extract_strided_slice %20 {offsets = [0, 128], sizes = [16, 128], strides = [1, 1]} : vector<16x512xf32> to vector<16x128xf32>
    %28 = arith.negf %27 : vector<16x128xf32>
    %29 = math.exp %28 : vector<16x128xf32>
    %cst_21 = arith.constant 1.000000e+00 : f32
    %30 = vector.broadcast %cst_21 : f32 to vector<16x128xf32>
    %31 = arith.addf %30, %29 : vector<16x128xf32>
    %32 = arith.divf %30, %31 : vector<16x128xf32>
    %33 = vector.extract_strided_slice %20 {offsets = [0, 256], sizes = [16, 128], strides = [1, 1]} : vector<16x512xf32> to vector<16x128xf32>
    %34 = math.tanh %33 : vector<16x128xf32>
    %35 = vector.extract_strided_slice %20 {offsets = [0, 384], sizes = [16, 128], strides = [1, 1]} : vector<16x512xf32> to vector<16x128xf32>
    %36 = arith.negf %35 : vector<16x128xf32>
    %37 = math.exp %36 : vector<16x128xf32>
    %cst_22 = arith.constant 1.000000e+00 : f32
    %38 = vector.broadcast %cst_22 : f32 to vector<16x128xf32>
    %39 = arith.addf %38, %37 : vector<16x128xf32>
    %40 = arith.divf %38, %39 : vector<16x128xf32>
    %41 = arith.mulf %32, %13 : vector<16x128xf32>
    %42 = arith.mulf %26, %34 : vector<16x128xf32>
    %43 = arith.addf %41, %42 : vector<16x128xf32>
    %44 = math.tanh %43 : vector<16x128xf32>
    %45 = arith.mulf %40, %44 : vector<16x128xf32>
    %c0_23 = arith.constant 0 : index
    %c0_24 = arith.constant 0 : index
    %46 = vector.load %arg9[%c0_23, %c0_24] : memref<16x128xf32, #tpu.memory_space<vmem>>, vector<16x128xf32>
    tpu.vector_store %arg9[%c0_23, %c0_24], %43 {strides = array<i32>} : memref<16x128xf32, #tpu.memory_space<vmem>>, vector<16x128xf32>,
    %c0_25 = arith.constant 0 : index
    %c0_26 = arith.constant 0 : index
    %47 = vector.load %arg8[%c0_25, %c0_26] : memref<16x128xf32, #tpu.memory_space<vmem>>, vector<16x128xf32>
    tpu.vector_store %arg8[%c0_25, %c0_26], %45 {strides = array<i32>} : memref<16x128xf32, #tpu.memory_space<vmem>>, vector<16x128xf32>,
    %48 = arith.truncf %45 : vector<16x128xf32> to vector<16x128xbf16>
    %49 = arith.index_cast %c0_i32_10 : i32 to index
    %c0_27 = arith.constant 0 : index
    %c0_28 = arith.constant 0 : index
    %50 = vector.load %arg6[%49, %c0_27, %c0_28] : memref<8x16x128xbf16, #tpu.memory_space<vmem>>, vector<1x16x128xbf16>
    %51 = vector.shape_cast %50 : vector<1x16x128xbf16> to vector<16x128xbf16>
    %52 = vector.shape_cast %48 : vector<16x128xbf16> to vector<1x16x128xbf16>
    tpu.vector_store %arg6[%49, %c0_27, %c0_28], %52 {strides = array<i32>} : memref<8x16x128xbf16, #tpu.memory_space<vmem>>, vector<1x16x128xbf16>,
    %c1_i32 = arith.constant 1 : i32
    %c0_29 = arith.constant 0 : index
    %c0_30 = arith.constant 0 : index
    %53 = vector.load %arg8[%c0_29, %c0_30] : memref<16x128xf32, #tpu.memory_space<vmem>>, vector<16x128xf32>
    %c0_31 = arith.constant 0 : index
    %c0_32 = arith.constant 0 : index
    %54 = vector.load %arg9[%c0_31, %c0_32] : memref<16x128xf32, #tpu.memory_space<vmem>>, vector<16x128xf32>
    %55 = arith.index_cast %c1_i32 : i32 to index
    %c0_33 = arith.constant 0 : index
    %c0_34 = arith.constant 0 : index
    %56 = vector.load %arg7[%55, %c0_33, %c0_34] : memref<8x16x512xf32, #tpu.memory_space<vmem>>, vector<1x16x512xf32>
    %57 = vector.shape_cast %56 : vector<1x16x512xf32> to vector<16x512xf32>
    %58 = arith.truncf %53 : vector<16x128xf32> to vector<16x128xbf16>
    %c0_35 = arith.constant 0 : index
    %c0_36 = arith.constant 0 : index
    %59 = vector.load %arg4[%c0_35, %c0_36] : memref<128x512xbf16, #tpu.memory_space<vmem>>, vector<128x512xbf16>
    %cst_37 = arith.constant dense<0.000000e+00> : vector<16x512xf32>
    %60 = tpu.matmul %58, %59, %cst_37 {dimension_numbers = #tpu.dot_dimension_numbers<[1], [0], [0], [1], [0, 0, 1, 1], [], []>} : vector<16x128xbf16>, vector<128x512xbf16>, vector<16x512xf32> -> vector<16x512xf32>
    %61 = arith.addf %57, %60 : vector<16x512xf32>
    %62 = vector.extract_strided_slice %61 {offsets = [0, 0], sizes = [16, 128], strides = [1, 1]} : vector<16x512xf32> to vector<16x128xf32>
    %63 = arith.negf %62 : vector<16x128xf32>
    %64 = math.exp %63 : vector<16x128xf32>
    %cst_38 = arith.constant 1.000000e+00 : f32
    %65 = vector.broadcast %cst_38 : f32 to vector<16x128xf32>
    %66 = arith.addf %65, %64 : vector<16x128xf32>
    %67 = arith.divf %65, %66 : vector<16x128xf32>
    %68 = vector.extract_strided_slice %61 {offsets = [0, 128], sizes = [16, 128], strides = [1, 1]} : vector<16x512xf32> to vector<16x128xf32>
    %69 = arith.negf %68 : vector<16x128xf32>
    %70 = math.exp %69 : vector<16x128xf32>
    %cst_39 = arith.constant 1.000000e+00 : f32
    %71 = vector.broadcast %cst_39 : f32 to vector<16x128xf32>
    %72 = arith.addf %71, %70 : vector<16x128xf32>
    %73 = arith.divf %71, %72 : vector<16x128xf32>
    %74 = vector.extract_strided_slice %61 {offsets = [0, 256], sizes = [16, 128], strides = [1, 1]} : vector<16x512xf32> to vector<16x128xf32>
    %75 = math.tanh %74 : vector<16x128xf32>
    %76 = vector.extract_strided_slice %61 {offsets = [0, 384], sizes = [16, 128], strides = [1, 1]} : vector<16x512xf32> to vector<16x128xf32>
    %77 = arith.negf %76 : vector<16x128xf32>
    %78 = math.exp %77 : vector<16x128xf32>
    %cst_40 = arith.constant 1.000000e+00 : f32
    %79 = vector.broadcast %cst_40 : f32 to vector<16x128xf32>
    %80 = arith.addf %79, %78 : vector<16x128xf32>
    %81 = arith.divf %79, %80 : vector<16x128xf32>
    %82 = arith.mulf %73, %54 : vector<16x128xf32>
    %83 = arith.mulf %67, %75 : vector<16x128xf32>
    %84 = arith.addf %82, %83 : vector<16x128xf32>
    %85 = math.tanh %84 : vector<16x128xf32>
    %86 = arith.mulf %81, %85 : vector<16x128xf32>
    %c0_41 = arith.constant 0 : index
    %c0_42 = arith.constant 0 : index
    %87 = vector.load %arg9[%c0_41, %c0_42] : memref<16x128xf32, #tpu.memory_space<vmem>>, vector<16x128xf32>
    tpu.vector_store %arg9[%c0_41, %c0_42], %84 {strides = array<i32>} : memref<16x128xf32, #tpu.memory_space<vmem>>, vector<16x128xf32>,
    %c0_43 = arith.constant 0 : index
    %c0_44 = arith.constant 0 : index
    %88 = vector.load %arg8[%c0_43, %c0_44] : memref<16x128xf32, #tpu.memory_space<vmem>>, vector<16x128xf32>
    tpu.vector_store %arg8[%c0_43, %c0_44], %86 {strides = array<i32>} : memref<16x128xf32, #tpu.memory_space<vmem>>, vector<16x128xf32>,
    %89 = arith.truncf %86 : vector<16x128xf32> to vector<16x128xbf16>
    %90 = arith.index_cast %c1_i32 : i32 to index
    %c0_45 = arith.constant 0 : index
    %c0_46 = arith.constant 0 : index
    %91 = vector.load %arg6[%90, %c0_45, %c0_46] : memref<8x16x128xbf16, #tpu.memory_space<vmem>>, vector<1x16x128xbf16>
    %92 = vector.shape_cast %91 : vector<1x16x128xbf16> to vector<16x128xbf16>
    %93 = vector.shape_cast %89 : vector<16x128xbf16> to vector<1x16x128xbf16>
    tpu.vector_store %arg6[%90, %c0_45, %c0_46], %93 {strides = array<i32>} : memref<8x16x128xbf16, #tpu.memory_space<vmem>>, vector<1x16x128xbf16>,
    %c2_i32 = arith.constant 2 : i32
    %c0_47 = arith.constant 0 : index
    %c0_48 = arith.constant 0 : index
    %94 = vector.load %arg8[%c0_47, %c0_48] : memref<16x128xf32, #tpu.memory_space<vmem>>, vector<16x128xf32>
    %c0_49 = arith.constant 0 : index
    %c0_50 = arith.constant 0 : index
    %95 = vector.load %arg9[%c0_49, %c0_50] : memref<16x128xf32, #tpu.memory_space<vmem>>, vector<16x128xf32>
    %96 = arith.index_cast %c2_i32 : i32 to index
    %c0_51 = arith.constant 0 : index
    %c0_52 = arith.constant 0 : index
    %97 = vector.load %arg7[%96, %c0_51, %c0_52] : memref<8x16x512xf32, #tpu.memory_space<vmem>>, vector<1x16x512xf32>
    %98 = vector.shape_cast %97 : vector<1x16x512xf32> to vector<16x512xf32>
    %99 = arith.truncf %94 : vector<16x128xf32> to vector<16x128xbf16>
    %c0_53 = arith.constant 0 : index
    %c0_54 = arith.constant 0 : index
    %100 = vector.load %arg4[%c0_53, %c0_54] : memref<128x512xbf16, #tpu.memory_space<vmem>>, vector<128x512xbf16>
    %cst_55 = arith.constant dense<0.000000e+00> : vector<16x512xf32>
    %101 = tpu.matmul %99, %100, %cst_55 {dimension_numbers = #tpu.dot_dimension_numbers<[1], [0], [0], [1], [0, 0, 1, 1], [], []>} : vector<16x128xbf16>, vector<128x512xbf16>, vector<16x512xf32> -> vector<16x512xf32>
    %102 = arith.addf %98, %101 : vector<16x512xf32>
    %103 = vector.extract_strided_slice %102 {offsets = [0, 0], sizes = [16, 128], strides = [1, 1]} : vector<16x512xf32> to vector<16x128xf32>
    %104 = arith.negf %103 : vector<16x128xf32>
    %105 = math.exp %104 : vector<16x128xf32>
    %cst_56 = arith.constant 1.000000e+00 : f32
    %106 = vector.broadcast %cst_56 : f32 to vector<16x128xf32>
    %107 = arith.addf %106, %105 : vector<16x128xf32>
    %108 = arith.divf %106, %107 : vector<16x128xf32>
    %109 = vector.extract_strided_slice %102 {offsets = [0, 128], sizes = [16, 128], strides = [1, 1]} : vector<16x512xf32> to vector<16x128xf32>
    %110 = arith.negf %109 : vector<16x128xf32>
    %111 = math.exp %110 : vector<16x128xf32>
    %cst_57 = arith.constant 1.000000e+00 : f32
    %112 = vector.broadcast %cst_57 : f32 to vector<16x128xf32>
    %113 = arith.addf %112, %111 : vector<16x128xf32>
    %114 = arith.divf %112, %113 : vector<16x128xf32>
    %115 = vector.extract_strided_slice %102 {offsets = [0, 256], sizes = [16, 128], strides = [1, 1]} : vector<16x512xf32> to vector<16x128xf32>
    %116 = math.tanh %115 : vector<16x128xf32>
    %117 = vector.extract_strided_slice %102 {offsets = [0, 384], sizes = [16, 128], strides = [1, 1]} : vector<16x512xf32> to vector<16x128xf32>
    %118 = arith.negf %117 : vector<16x128xf32>
    %119 = math.exp %118 : vector<16x128xf32>
    %cst_58 = arith.constant 1.000000e+00 : f32
    %120 = vector.broadcast %cst_58 : f32 to vector<16x128xf32>
    %121 = arith.addf %120, %119 : vector<16x128xf32>
    %122 = arith.divf %120, %121 : vector<16x128xf32>
    %123 = arith.mulf %114, %95 : vector<16x128xf32>
    %124 = arith.mulf %108, %116 : vector<16x128xf32>
    %125 = arith.addf %123, %124 : vector<16x128xf32>
    %126 = math.tanh %125 : vector<16x128xf32>
    %127 = arith.mulf %122, %126 : vector<16x128xf32>
    %c0_59 = arith.constant 0 : index
    %c0_60 = arith.constant 0 : index
    %128 = vector.load %arg9[%c0_59, %c0_60] : memref<16x128xf32, #tpu.memory_space<vmem>>, vector<16x128xf32>
    tpu.vector_store %arg9[%c0_59, %c0_60], %125 {strides = array<i32>} : memref<16x128xf32, #tpu.memory_space<vmem>>, vector<16x128xf32>,
    %c0_61 = arith.constant 0 : index
    %c0_62 = arith.constant 0 : index
    %129 = vector.load %arg8[%c0_61, %c0_62] : memref<16x128xf32, #tpu.memory_space<vmem>>, vector<16x128xf32>
    tpu.vector_store %arg8[%c0_61, %c0_62], %127 {strides = array<i32>} : memref<16x128xf32, #tpu.memory_space<vmem>>, vector<16x128xf32>,
    %130 = arith.truncf %127 : vector<16x128xf32> to vector<16x128xbf16>
    %131 = arith.index_cast %c2_i32 : i32 to index
    %c0_63 = arith.constant 0 : index
    %c0_64 = arith.constant 0 : index
    %132 = vector.load %arg6[%131, %c0_63, %c0_64] : memref<8x16x128xbf16, #tpu.memory_space<vmem>>, vector<1x16x128xbf16>
    %133 = vector.shape_cast %132 : vector<1x16x128xbf16> to vector<16x128xbf16>
    %134 = vector.shape_cast %130 : vector<16x128xbf16> to vector<1x16x128xbf16>
    tpu.vector_store %arg6[%131, %c0_63, %c0_64], %134 {strides = array<i32>} : memref<8x16x128xbf16, #tpu.memory_space<vmem>>, vector<1x16x128xbf16>,
    %c3_i32 = arith.constant 3 : i32
    %c0_65 = arith.constant 0 : index
    %c0_66 = arith.constant 0 : index
    %135 = vector.load %arg8[%c0_65, %c0_66] : memref<16x128xf32, #tpu.memory_space<vmem>>, vector<16x128xf32>
    %c0_67 = arith.constant 0 : index
    %c0_68 = arith.constant 0 : index
    %136 = vector.load %arg9[%c0_67, %c0_68] : memref<16x128xf32, #tpu.memory_space<vmem>>, vector<16x128xf32>
    %137 = arith.index_cast %c3_i32 : i32 to index
    %c0_69 = arith.constant 0 : index
    %c0_70 = arith.constant 0 : index
    %138 = vector.load %arg7[%137, %c0_69, %c0_70] : memref<8x16x512xf32, #tpu.memory_space<vmem>>, vector<1x16x512xf32>
    %139 = vector.shape_cast %138 : vector<1x16x512xf32> to vector<16x512xf32>
    %140 = arith.truncf %135 : vector<16x128xf32> to vector<16x128xbf16>
    %c0_71 = arith.constant 0 : index
    %c0_72 = arith.constant 0 : index
    %141 = vector.load %arg4[%c0_71, %c0_72] : memref<128x512xbf16, #tpu.memory_space<vmem>>, vector<128x512xbf16>
    %cst_73 = arith.constant dense<0.000000e+00> : vector<16x512xf32>
    %142 = tpu.matmul %140, %141, %cst_73 {dimension_numbers = #tpu.dot_dimension_numbers<[1], [0], [0], [1], [0, 0, 1, 1], [], []>} : vector<16x128xbf16>, vector<128x512xbf16>, vector<16x512xf32> -> vector<16x512xf32>
    %143 = arith.addf %139, %142 : vector<16x512xf32>
    %144 = vector.extract_strided_slice %143 {offsets = [0, 0], sizes = [16, 128], strides = [1, 1]} : vector<16x512xf32> to vector<16x128xf32>
    %145 = arith.negf %144 : vector<16x128xf32>
    %146 = math.exp %145 : vector<16x128xf32>
    %cst_74 = arith.constant 1.000000e+00 : f32
    %147 = vector.broadcast %cst_74 : f32 to vector<16x128xf32>
    %148 = arith.addf %147, %146 : vector<16x128xf32>
    %149 = arith.divf %147, %148 : vector<16x128xf32>
    %150 = vector.extract_strided_slice %143 {offsets = [0, 128], sizes = [16, 128], strides = [1, 1]} : vector<16x512xf32> to vector<16x128xf32>
    %151 = arith.negf %150 : vector<16x128xf32>
    %152 = math.exp %151 : vector<16x128xf32>
    %cst_75 = arith.constant 1.000000e+00 : f32
    %153 = vector.broadcast %cst_75 : f32 to vector<16x128xf32>
    %154 = arith.addf %153, %152 : vector<16x128xf32>
    %155 = arith.divf %153, %154 : vector<16x128xf32>
    %156 = vector.extract_strided_slice %143 {offsets = [0, 256], sizes = [16, 128], strides = [1, 1]} : vector<16x512xf32> to vector<16x128xf32>
    %157 = math.tanh %156 : vector<16x128xf32>
    %158 = vector.extract_strided_slice %143 {offsets = [0, 384], sizes = [16, 128], strides = [1, 1]} : vector<16x512xf32> to vector<16x128xf32>
    %159 = arith.negf %158 : vector<16x128xf32>
    %160 = math.exp %159 : vector<16x128xf32>
    %cst_76 = arith.constant 1.000000e+00 : f32
    %161 = vector.broadcast %cst_76 : f32 to vector<16x128xf32>
    %162 = arith.addf %161, %160 : vector<16x128xf32>
    %163 = arith.divf %161, %162 : vector<16x128xf32>
    %164 = arith.mulf %155, %136 : vector<16x128xf32>
    %165 = arith.mulf %149, %157 : vector<16x128xf32>
    %166 = arith.addf %164, %165 : vector<16x128xf32>
    %167 = math.tanh %166 : vector<16x128xf32>
    %168 = arith.mulf %163, %167 : vector<16x128xf32>
    %c0_77 = arith.constant 0 : index
    %c0_78 = arith.constant 0 : index
    %169 = vector.load %arg9[%c0_77, %c0_78] : memref<16x128xf32, #tpu.memory_space<vmem>>, vector<16x128xf32>
    tpu.vector_store %arg9[%c0_77, %c0_78], %166 {strides = array<i32>} : memref<16x128xf32, #tpu.memory_space<vmem>>, vector<16x128xf32>,
    %c0_79 = arith.constant 0 : index
    %c0_80 = arith.constant 0 : index
    %170 = vector.load %arg8[%c0_79, %c0_80] : memref<16x128xf32, #tpu.memory_space<vmem>>, vector<16x128xf32>
    tpu.vector_store %arg8[%c0_79, %c0_80], %168 {strides = array<i32>} : memref<16x128xf32, #tpu.memory_space<vmem>>, vector<16x128xf32>,
    %171 = arith.truncf %168 : vector<16x128xf32> to vector<16x128xbf16>
    %172 = arith.index_cast %c3_i32 : i32 to index
    %c0_81 = arith.constant 0 : index
    %c0_82 = arith.constant 0 : index
    %173 = vector.load %arg6[%172, %c0_81, %c0_82] : memref<8x16x128xbf16, #tpu.memory_space<vmem>>, vector<1x16x128xbf16>
    %174 = vector.shape_cast %173 : vector<1x16x128xbf16> to vector<16x128xbf16>
    %175 = vector.shape_cast %171 : vector<16x128xbf16> to vector<1x16x128xbf16>
    tpu.vector_store %arg6[%172, %c0_81, %c0_82], %175 {strides = array<i32>} : memref<8x16x128xbf16, #tpu.memory_space<vmem>>, vector<1x16x128xbf16>,
    %c4_i32 = arith.constant 4 : i32
    %c0_83 = arith.constant 0 : index
    %c0_84 = arith.constant 0 : index
    %176 = vector.load %arg8[%c0_83, %c0_84] : memref<16x128xf32, #tpu.memory_space<vmem>>, vector<16x128xf32>
    %c0_85 = arith.constant 0 : index
    %c0_86 = arith.constant 0 : index
    %177 = vector.load %arg9[%c0_85, %c0_86] : memref<16x128xf32, #tpu.memory_space<vmem>>, vector<16x128xf32>
    %178 = arith.index_cast %c4_i32 : i32 to index
    %c0_87 = arith.constant 0 : index
    %c0_88 = arith.constant 0 : index
    %179 = vector.load %arg7[%178, %c0_87, %c0_88] : memref<8x16x512xf32, #tpu.memory_space<vmem>>, vector<1x16x512xf32>
    %180 = vector.shape_cast %179 : vector<1x16x512xf32> to vector<16x512xf32>
    %181 = arith.truncf %176 : vector<16x128xf32> to vector<16x128xbf16>
    %c0_89 = arith.constant 0 : index
    %c0_90 = arith.constant 0 : index
    %182 = vector.load %arg4[%c0_89, %c0_90] : memref<128x512xbf16, #tpu.memory_space<vmem>>, vector<128x512xbf16>
    %cst_91 = arith.constant dense<0.000000e+00> : vector<16x512xf32>
    %183 = tpu.matmul %181, %182, %cst_91 {dimension_numbers = #tpu.dot_dimension_numbers<[1], [0], [0], [1], [0, 0, 1, 1], [], []>} : vector<16x128xbf16>, vector<128x512xbf16>, vector<16x512xf32> -> vector<16x512xf32>
    %184 = arith.addf %180, %183 : vector<16x512xf32>
    %185 = vector.extract_strided_slice %184 {offsets = [0, 0], sizes = [16, 128], strides = [1, 1]} : vector<16x512xf32> to vector<16x128xf32>
    %186 = arith.negf %185 : vector<16x128xf32>
    %187 = math.exp %186 : vector<16x128xf32>
    %cst_92 = arith.constant 1.000000e+00 : f32
    %188 = vector.broadcast %cst_92 : f32 to vector<16x128xf32>
    %189 = arith.addf %188, %187 : vector<16x128xf32>
    %190 = arith.divf %188, %189 : vector<16x128xf32>
    %191 = vector.extract_strided_slice %184 {offsets = [0, 128], sizes = [16, 128], strides = [1, 1]} : vector<16x512xf32> to vector<16x128xf32>
    %192 = arith.negf %191 : vector<16x128xf32>
    %193 = math.exp %192 : vector<16x128xf32>
    %cst_93 = arith.constant 1.000000e+00 : f32
    %194 = vector.broadcast %cst_93 : f32 to vector<16x128xf32>
    %195 = arith.addf %194, %193 : vector<16x128xf32>
    %196 = arith.divf %194, %195 : vector<16x128xf32>
    %197 = vector.extract_strided_slice %184 {offsets = [0, 256], sizes = [16, 128], strides = [1, 1]} : vector<16x512xf32> to vector<16x128xf32>
    %198 = math.tanh %197 : vector<16x128xf32>
    %199 = vector.extract_strided_slice %184 {offsets = [0, 384], sizes = [16, 128], strides = [1, 1]} : vector<16x512xf32> to vector<16x128xf32>
    %200 = arith.negf %199 : vector<16x128xf32>
    %201 = math.exp %200 : vector<16x128xf32>
    %cst_94 = arith.constant 1.000000e+00 : f32
    %202 = vector.broadcast %cst_94 : f32 to vector<16x128xf32>
    %203 = arith.addf %202, %201 : vector<16x128xf32>
    %204 = arith.divf %202, %203 : vector<16x128xf32>
    %205 = arith.mulf %196, %177 : vector<16x128xf32>
    %206 = arith.mulf %190, %198 : vector<16x128xf32>
    %207 = arith.addf %205, %206 : vector<16x128xf32>
    %208 = math.tanh %207 : vector<16x128xf32>
    %209 = arith.mulf %204, %208 : vector<16x128xf32>
    %c0_95 = arith.constant 0 : index
    %c0_96 = arith.constant 0 : index
    %210 = vector.load %arg9[%c0_95, %c0_96] : memref<16x128xf32, #tpu.memory_space<vmem>>, vector<16x128xf32>
    tpu.vector_store %arg9[%c0_95, %c0_96], %207 {strides = array<i32>} : memref<16x128xf32, #tpu.memory_space<vmem>>, vector<16x128xf32>,
    %c0_97 = arith.constant 0 : index
    %c0_98 = arith.constant 0 : index
    %211 = vector.load %arg8[%c0_97, %c0_98] : memref<16x128xf32, #tpu.memory_space<vmem>>, vector<16x128xf32>
    tpu.vector_store %arg8[%c0_97, %c0_98], %209 {strides = array<i32>} : memref<16x128xf32, #tpu.memory_space<vmem>>, vector<16x128xf32>,
    %212 = arith.truncf %209 : vector<16x128xf32> to vector<16x128xbf16>
    %213 = arith.index_cast %c4_i32 : i32 to index
    %c0_99 = arith.constant 0 : index
    %c0_100 = arith.constant 0 : index
    %214 = vector.load %arg6[%213, %c0_99, %c0_100] : memref<8x16x128xbf16, #tpu.memory_space<vmem>>, vector<1x16x128xbf16>
    %215 = vector.shape_cast %214 : vector<1x16x128xbf16> to vector<16x128xbf16>
    %216 = vector.shape_cast %212 : vector<16x128xbf16> to vector<1x16x128xbf16>
    tpu.vector_store %arg6[%213, %c0_99, %c0_100], %216 {strides = array<i32>} : memref<8x16x128xbf16, #tpu.memory_space<vmem>>, vector<1x16x128xbf16>,
    %c5_i32 = arith.constant 5 : i32
    %c0_101 = arith.constant 0 : index
    %c0_102 = arith.constant 0 : index
    %217 = vector.load %arg8[%c0_101, %c0_102] : memref<16x128xf32, #tpu.memory_space<vmem>>, vector<16x128xf32>
    %c0_103 = arith.constant 0 : index
    %c0_104 = arith.constant 0 : index
    %218 = vector.load %arg9[%c0_103, %c0_104] : memref<16x128xf32, #tpu.memory_space<vmem>>, vector<16x128xf32>
    %219 = arith.index_cast %c5_i32 : i32 to index
    %c0_105 = arith.constant 0 : index
    %c0_106 = arith.constant 0 : index
    %220 = vector.load %arg7[%219, %c0_105, %c0_106] : memref<8x16x512xf32, #tpu.memory_space<vmem>>, vector<1x16x512xf32>
    %221 = vector.shape_cast %220 : vector<1x16x512xf32> to vector<16x512xf32>
    %222 = arith.truncf %217 : vector<16x128xf32> to vector<16x128xbf16>
    %c0_107 = arith.constant 0 : index
    %c0_108 = arith.constant 0 : index
    %223 = vector.load %arg4[%c0_107, %c0_108] : memref<128x512xbf16, #tpu.memory_space<vmem>>, vector<128x512xbf16>
    %cst_109 = arith.constant dense<0.000000e+00> : vector<16x512xf32>
    %224 = tpu.matmul %222, %223, %cst_109 {dimension_numbers = #tpu.dot_dimension_numbers<[1], [0], [0], [1], [0, 0, 1, 1], [], []>} : vector<16x128xbf16>, vector<128x512xbf16>, vector<16x512xf32> -> vector<16x512xf32>
    %225 = arith.addf %221, %224 : vector<16x512xf32>
    %226 = vector.extract_strided_slice %225 {offsets = [0, 0], sizes = [16, 128], strides = [1, 1]} : vector<16x512xf32> to vector<16x128xf32>
    %227 = arith.negf %226 : vector<16x128xf32>
    %228 = math.exp %227 : vector<16x128xf32>
    %cst_110 = arith.constant 1.000000e+00 : f32
    %229 = vector.broadcast %cst_110 : f32 to vector<16x128xf32>
    %230 = arith.addf %229, %228 : vector<16x128xf32>
    %231 = arith.divf %229, %230 : vector<16x128xf32>
    %232 = vector.extract_strided_slice %225 {offsets = [0, 128], sizes = [16, 128], strides = [1, 1]} : vector<16x512xf32> to vector<16x128xf32>
    %233 = arith.negf %232 : vector<16x128xf32>
    %234 = math.exp %233 : vector<16x128xf32>
    %cst_111 = arith.constant 1.000000e+00 : f32
    %235 = vector.broadcast %cst_111 : f32 to vector<16x128xf32>
    %236 = arith.addf %235, %234 : vector<16x128xf32>
    %237 = arith.divf %235, %236 : vector<16x128xf32>
    %238 = vector.extract_strided_slice %225 {offsets = [0, 256], sizes = [16, 128], strides = [1, 1]} : vector<16x512xf32> to vector<16x128xf32>
    %239 = math.tanh %238 : vector<16x128xf32>
    %240 = vector.extract_strided_slice %225 {offsets = [0, 384], sizes = [16, 128], strides = [1, 1]} : vector<16x512xf32> to vector<16x128xf32>
    %241 = arith.negf %240 : vector<16x128xf32>
    %242 = math.exp %241 : vector<16x128xf32>
    %cst_112 = arith.constant 1.000000e+00 : f32
    %243 = vector.broadcast %cst_112 : f32 to vector<16x128xf32>
    %244 = arith.addf %243, %242 : vector<16x128xf32>
    %245 = arith.divf %243, %244 : vector<16x128xf32>
    %246 = arith.mulf %237, %218 : vector<16x128xf32>
    %247 = arith.mulf %231, %239 : vector<16x128xf32>
    %248 = arith.addf %246, %247 : vector<16x128xf32>
    %249 = math.tanh %248 : vector<16x128xf32>
    %250 = arith.mulf %245, %249 : vector<16x128xf32>
    %c0_113 = arith.constant 0 : index
    %c0_114 = arith.constant 0 : index
    %251 = vector.load %arg9[%c0_113, %c0_114] : memref<16x128xf32, #tpu.memory_space<vmem>>, vector<16x128xf32>
    tpu.vector_store %arg9[%c0_113, %c0_114], %248 {strides = array<i32>} : memref<16x128xf32, #tpu.memory_space<vmem>>, vector<16x128xf32>,
    %c0_115 = arith.constant 0 : index
    %c0_116 = arith.constant 0 : index
    %252 = vector.load %arg8[%c0_115, %c0_116] : memref<16x128xf32, #tpu.memory_space<vmem>>, vector<16x128xf32>
    tpu.vector_store %arg8[%c0_115, %c0_116], %250 {strides = array<i32>} : memref<16x128xf32, #tpu.memory_space<vmem>>, vector<16x128xf32>,
    %253 = arith.truncf %250 : vector<16x128xf32> to vector<16x128xbf16>
    %254 = arith.index_cast %c5_i32 : i32 to index
    %c0_117 = arith.constant 0 : index
    %c0_118 = arith.constant 0 : index
    %255 = vector.load %arg6[%254, %c0_117, %c0_118] : memref<8x16x128xbf16, #tpu.memory_space<vmem>>, vector<1x16x128xbf16>
    %256 = vector.shape_cast %255 : vector<1x16x128xbf16> to vector<16x128xbf16>
    %257 = vector.shape_cast %253 : vector<16x128xbf16> to vector<1x16x128xbf16>
    tpu.vector_store %arg6[%254, %c0_117, %c0_118], %257 {strides = array<i32>} : memref<8x16x128xbf16, #tpu.memory_space<vmem>>, vector<1x16x128xbf16>,
    %c6_i32 = arith.constant 6 : i32
    %c0_119 = arith.constant 0 : index
    %c0_120 = arith.constant 0 : index
    %258 = vector.load %arg8[%c0_119, %c0_120] : memref<16x128xf32, #tpu.memory_space<vmem>>, vector<16x128xf32>
    %c0_121 = arith.constant 0 : index
    %c0_122 = arith.constant 0 : index
    %259 = vector.load %arg9[%c0_121, %c0_122] : memref<16x128xf32, #tpu.memory_space<vmem>>, vector<16x128xf32>
    %260 = arith.index_cast %c6_i32 : i32 to index
    %c0_123 = arith.constant 0 : index
    %c0_124 = arith.constant 0 : index
    %261 = vector.load %arg7[%260, %c0_123, %c0_124] : memref<8x16x512xf32, #tpu.memory_space<vmem>>, vector<1x16x512xf32>
    %262 = vector.shape_cast %261 : vector<1x16x512xf32> to vector<16x512xf32>
    %263 = arith.truncf %258 : vector<16x128xf32> to vector<16x128xbf16>
    %c0_125 = arith.constant 0 : index
    %c0_126 = arith.constant 0 : index
    %264 = vector.load %arg4[%c0_125, %c0_126] : memref<128x512xbf16, #tpu.memory_space<vmem>>, vector<128x512xbf16>
    %cst_127 = arith.constant dense<0.000000e+00> : vector<16x512xf32>
    %265 = tpu.matmul %263, %264, %cst_127 {dimension_numbers = #tpu.dot_dimension_numbers<[1], [0], [0], [1], [0, 0, 1, 1], [], []>} : vector<16x128xbf16>, vector<128x512xbf16>, vector<16x512xf32> -> vector<16x512xf32>
    %266 = arith.addf %262, %265 : vector<16x512xf32>
    %267 = vector.extract_strided_slice %266 {offsets = [0, 0], sizes = [16, 128], strides = [1, 1]} : vector<16x512xf32> to vector<16x128xf32>
    %268 = arith.negf %267 : vector<16x128xf32>
    %269 = math.exp %268 : vector<16x128xf32>
    %cst_128 = arith.constant 1.000000e+00 : f32
    %270 = vector.broadcast %cst_128 : f32 to vector<16x128xf32>
    %271 = arith.addf %270, %269 : vector<16x128xf32>
    %272 = arith.divf %270, %271 : vector<16x128xf32>
    %273 = vector.extract_strided_slice %266 {offsets = [0, 128], sizes = [16, 128], strides = [1, 1]} : vector<16x512xf32> to vector<16x128xf32>
    %274 = arith.negf %273 : vector<16x128xf32>
    %275 = math.exp %274 : vector<16x128xf32>
    %cst_129 = arith.constant 1.000000e+00 : f32
    %276 = vector.broadcast %cst_129 : f32 to vector<16x128xf32>
    %277 = arith.addf %276, %275 : vector<16x128xf32>
    %278 = arith.divf %276, %277 : vector<16x128xf32>
    %279 = vector.extract_strided_slice %266 {offsets = [0, 256], sizes = [16, 128], strides = [1, 1]} : vector<16x512xf32> to vector<16x128xf32>
    %280 = math.tanh %279 : vector<16x128xf32>
    %281 = vector.extract_strided_slice %266 {offsets = [0, 384], sizes = [16, 128], strides = [1, 1]} : vector<16x512xf32> to vector<16x128xf32>
    %282 = arith.negf %281 : vector<16x128xf32>
    %283 = math.exp %282 : vector<16x128xf32>
    %cst_130 = arith.constant 1.000000e+00 : f32
    %284 = vector.broadcast %cst_130 : f32 to vector<16x128xf32>
    %285 = arith.addf %284, %283 : vector<16x128xf32>
    %286 = arith.divf %284, %285 : vector<16x128xf32>
    %287 = arith.mulf %278, %259 : vector<16x128xf32>
    %288 = arith.mulf %272, %280 : vector<16x128xf32>
    %289 = arith.addf %287, %288 : vector<16x128xf32>
    %290 = math.tanh %289 : vector<16x128xf32>
    %291 = arith.mulf %286, %290 : vector<16x128xf32>
    %c0_131 = arith.constant 0 : index
    %c0_132 = arith.constant 0 : index
    %292 = vector.load %arg9[%c0_131, %c0_132] : memref<16x128xf32, #tpu.memory_space<vmem>>, vector<16x128xf32>
    tpu.vector_store %arg9[%c0_131, %c0_132], %289 {strides = array<i32>} : memref<16x128xf32, #tpu.memory_space<vmem>>, vector<16x128xf32>,
    %c0_133 = arith.constant 0 : index
    %c0_134 = arith.constant 0 : index
    %293 = vector.load %arg8[%c0_133, %c0_134] : memref<16x128xf32, #tpu.memory_space<vmem>>, vector<16x128xf32>
    tpu.vector_store %arg8[%c0_133, %c0_134], %291 {strides = array<i32>} : memref<16x128xf32, #tpu.memory_space<vmem>>, vector<16x128xf32>,
    %294 = arith.truncf %291 : vector<16x128xf32> to vector<16x128xbf16>
    %295 = arith.index_cast %c6_i32 : i32 to index
    %c0_135 = arith.constant 0 : index
    %c0_136 = arith.constant 0 : index
    %296 = vector.load %arg6[%295, %c0_135, %c0_136] : memref<8x16x128xbf16, #tpu.memory_space<vmem>>, vector<1x16x128xbf16>
    %297 = vector.shape_cast %296 : vector<1x16x128xbf16> to vector<16x128xbf16>
    %298 = vector.shape_cast %294 : vector<16x128xbf16> to vector<1x16x128xbf16>
    tpu.vector_store %arg6[%295, %c0_135, %c0_136], %298 {strides = array<i32>} : memref<8x16x128xbf16, #tpu.memory_space<vmem>>, vector<1x16x128xbf16>,
    %c7_i32 = arith.constant 7 : i32
    %c0_137 = arith.constant 0 : index
    %c0_138 = arith.constant 0 : index
    %299 = vector.load %arg8[%c0_137, %c0_138] : memref<16x128xf32, #tpu.memory_space<vmem>>, vector<16x128xf32>
    %c0_139 = arith.constant 0 : index
    %c0_140 = arith.constant 0 : index
    %300 = vector.load %arg9[%c0_139, %c0_140] : memref<16x128xf32, #tpu.memory_space<vmem>>, vector<16x128xf32>
    %301 = arith.index_cast %c7_i32 : i32 to index
    %c0_141 = arith.constant 0 : index
    %c0_142 = arith.constant 0 : index
    %302 = vector.load %arg7[%301, %c0_141, %c0_142] : memref<8x16x512xf32, #tpu.memory_space<vmem>>, vector<1x16x512xf32>
    %303 = vector.shape_cast %302 : vector<1x16x512xf32> to vector<16x512xf32>
    %304 = arith.truncf %299 : vector<16x128xf32> to vector<16x128xbf16>
    %c0_143 = arith.constant 0 : index
    %c0_144 = arith.constant 0 : index
    %305 = vector.load %arg4[%c0_143, %c0_144] : memref<128x512xbf16, #tpu.memory_space<vmem>>, vector<128x512xbf16>
    %cst_145 = arith.constant dense<0.000000e+00> : vector<16x512xf32>
    %306 = tpu.matmul %304, %305, %cst_145 {dimension_numbers = #tpu.dot_dimension_numbers<[1], [0], [0], [1], [0, 0, 1, 1], [], []>} : vector<16x128xbf16>, vector<128x512xbf16>, vector<16x512xf32> -> vector<16x512xf32>
    %307 = arith.addf %303, %306 : vector<16x512xf32>
    %308 = vector.extract_strided_slice %307 {offsets = [0, 0], sizes = [16, 128], strides = [1, 1]} : vector<16x512xf32> to vector<16x128xf32>
    %309 = arith.negf %308 : vector<16x128xf32>
    %310 = math.exp %309 : vector<16x128xf32>
    %cst_146 = arith.constant 1.000000e+00 : f32
    %311 = vector.broadcast %cst_146 : f32 to vector<16x128xf32>
    %312 = arith.addf %311, %310 : vector<16x128xf32>
    %313 = arith.divf %311, %312 : vector<16x128xf32>
    %314 = vector.extract_strided_slice %307 {offsets = [0, 128], sizes = [16, 128], strides = [1, 1]} : vector<16x512xf32> to vector<16x128xf32>
    %315 = arith.negf %314 : vector<16x128xf32>
    %316 = math.exp %315 : vector<16x128xf32>
    %cst_147 = arith.constant 1.000000e+00 : f32
    %317 = vector.broadcast %cst_147 : f32 to vector<16x128xf32>
    %318 = arith.addf %317, %316 : vector<16x128xf32>
    %319 = arith.divf %317, %318 : vector<16x128xf32>
    %320 = vector.extract_strided_slice %307 {offsets = [0, 256], sizes = [16, 128], strides = [1, 1]} : vector<16x512xf32> to vector<16x128xf32>
    %321 = math.tanh %320 : vector<16x128xf32>
    %322 = vector.extract_strided_slice %307 {offsets = [0, 384], sizes = [16, 128], strides = [1, 1]} : vector<16x512xf32> to vector<16x128xf32>
    %323 = arith.negf %322 : vector<16x128xf32>
    %324 = math.exp %323 : vector<16x128xf32>
    %cst_148 = arith.constant 1.000000e+00 : f32
    %325 = vector.broadcast %cst_148 : f32 to vector<16x128xf32>
    %326 = arith.addf %325, %324 : vector<16x128xf32>
    %327 = arith.divf %325, %326 : vector<16x128xf32>
    %328 = arith.mulf %319, %300 : vector<16x128xf32>
    %329 = arith.mulf %313, %321 : vector<16x128xf32>
    %330 = arith.addf %328, %329 : vector<16x128xf32>
    %331 = math.tanh %330 : vector<16x128xf32>
    %332 = arith.mulf %327, %331 : vector<16x128xf32>
    %c0_149 = arith.constant 0 : index
    %c0_150 = arith.constant 0 : index
    %333 = vector.load %arg9[%c0_149, %c0_150] : memref<16x128xf32, #tpu.memory_space<vmem>>, vector<16x128xf32>
    tpu.vector_store %arg9[%c0_149, %c0_150], %330 {strides = array<i32>} : memref<16x128xf32, #tpu.memory_space<vmem>>, vector<16x128xf32>,
    %c0_151 = arith.constant 0 : index
    %c0_152 = arith.constant 0 : index
    %334 = vector.load %arg8[%c0_151, %c0_152] : memref<16x128xf32, #tpu.memory_space<vmem>>, vector<16x128xf32>
    tpu.vector_store %arg8[%c0_151, %c0_152], %332 {strides = array<i32>} : memref<16x128xf32, #tpu.memory_space<vmem>>, vector<16x128xf32>,
    %335 = arith.truncf %332 : vector<16x128xf32> to vector<16x128xbf16>
    %336 = arith.index_cast %c7_i32 : i32 to index
    %c0_153 = arith.constant 0 : index
    %c0_154 = arith.constant 0 : index
    %337 = vector.load %arg6[%336, %c0_153, %c0_154] : memref<8x16x128xbf16, #tpu.memory_space<vmem>>, vector<1x16x128xbf16>
    %338 = vector.shape_cast %337 : vector<1x16x128xbf16> to vector<16x128xbf16>
    %339 = vector.shape_cast %335 : vector<16x128xbf16> to vector<1x16x128xbf16>
    tpu.vector_store %arg6[%336, %c0_153, %c0_154], %339 {strides = array<i32>} : memref<8x16x128xbf16, #tpu.memory_space<vmem>>, vector<1x16x128xbf16>,
    %c8_i32 = arith.constant 8 : i32
    return
  }
  func.func @transform_0(%arg0: i32, %arg1: i32) -> (i32, i32, i32) {
    %c0_i32 = arith.constant 0 : i32
    %c0_i32_0 = arith.constant 0 : i32
    return %arg1, %arg0, %c0_i32 : i32, i32, i32
  }
  func.func @transform_1(%arg0: i32, %arg1: i32) -> (i32, i32) {
    %c0_i32 = arith.constant 0 : i32
    %c0_i32_0 = arith.constant 0 : i32
    %c0_i32_1 = arith.constant 0 : i32
    return %c0_i32, %c0_i32_0 : i32, i32
  }
  func.func @transform_2(%arg0: i32, %arg1: i32) -> (i32, i32) {
    %c0_i32 = arith.constant 0 : i32
    %c0_i32_0 = arith.constant 0 : i32
    %c0_i32_1 = arith.constant 0 : i32
    return %c0_i32, %c0_i32_0 : i32, i32
  }
  func.func @transform_3(%arg0: i32, %arg1: i32) -> (i32, i32) {
    %c0_i32 = arith.constant 0 : i32
    %c0_i32_0 = arith.constant 0 : i32
    %c0_i32_1 = arith.constant 0 : i32
    return %c0_i32, %c0_i32_0 : i32, i32
  }
  func.func @transform_4(%arg0: i32, %arg1: i32) -> (i32, i32, i32) {
    %c0_i32 = arith.constant 0 : i32
    %c0_i32_0 = arith.constant 0 : i32
    return %arg1, %arg0, %c0_i32 : i32, i32, i32
  }
}

module attributes {stable_mosaic.version = 11 : i64} {
  func.func @_lstm_fused_kernel(%arg0: i32, %arg1: i32, %arg2: memref<8x16x4xbf16, #tpu.memory_space<vmem>>, %arg3: memref<4x512xbf16, #tpu.memory_space<vmem>>, %arg4: memref<128x512xbf16, #tpu.memory_space<vmem>>, %arg5: memref<1x512xf32, #tpu.memory_space<vmem>>, %arg6: memref<8x16x128xbf16, #tpu.memory_space<vmem>>, %arg7: memref<8x16x512xf32, #tpu.memory_space<vmem>>, %arg8: memref<16x128xf32, #tpu.memory_space<vmem>>, %arg9: memref<16x128xf32, #tpu.memory_space<vmem>>) attributes {dimension_semantics = [#tpu.dimension_semantics<parallel>, #tpu.dimension_semantics<arbitrary>], iteration_bounds = array<i64: 1, 1>, scalar_prefetch = 0 : i64, scratch_operands = 3 : i64, tpu.core_type = #tpu.core_type<tc>, window_params = [{transform_indices = @transform_0, window_bounds = array<i64: 8, 16, 4>}, {pipeline_mode = #tpu.pipeline_mode<synchronous>, transform_indices = @transform_1, window_bounds = array<i64: 4, 512>}, {pipeline_mode = #tpu.pipeline_mode<synchronous>, transform_indices = @transform_2, window_bounds = array<i64: 128, 512>}, {pipeline_mode = #tpu.pipeline_mode<synchronous>, transform_indices = @transform_3, window_bounds = array<i64: 1, 512>}, {transform_indices = @transform_4, window_bounds = array<i64: 8, 16, 128>}]} {
    %c0_i32 = arith.constant 0 : i32
    %0 = arith.cmpi eq, %arg1, %c0_i32 : i32
    %1 = arith.extui %0 : i1 to i32
    %c0_i32_0 = arith.constant 0 : i32
    %2 = arith.cmpi ne, %1, %c0_i32_0 : i32
    scf.if %2 {
      %cst_155 = arith.constant 0.000000e+00 : f32
      %340 = vector.broadcast %cst_155 : f32 to vector<16x128xf32>
      %c0_156 = arith.constant 0 : index
      %c0_157 = arith.constant 0 : index
      %341 = vector.load %arg8[%c0_156, %c0_157] : memref<16x128xf32, #tpu.memory_space<vmem>>, vector<16x128xf32>
      tpu.vector_store %arg8[%c0_156, %c0_157], %340 {strides = array<i32>} : memref<16x128xf32, #tpu.memory_space<vmem>>, vector<16x128xf32>,
      %cst_158 = arith.constant 0.000000e+00 : f32
      %342 = vector.broadcast %cst_158 : f32 to vector<16x128xf32>
      %c0_159 = arith.constant 0 : index
      %c0_160 = arith.constant 0 : index
      %343 = vector.load %arg9[%c0_159, %c0_160] : memref<16x128xf32, #tpu.memory_space<vmem>>, vector<16x128xf32>
      tpu.vector_store %arg9[%c0_159, %c0_160], %342 {strides = array<i32>} : memref<16x128xf32, #tpu.memory_space<vmem>>, vector<16x128xf32>,
    } else {
    }
    %c0 = arith.constant 0 : index
    %c0_1 = arith.constant 0 : index
    %c0_2 = arith.constant 0 : index
    %3 = vector.load %arg2[%c0, %c0_1, %c0_2] : memref<8x16x4xbf16, #tpu.memory_space<vmem>>, vector<8x16x4xbf16>
    %4 = vector.shape_cast %3 : vector<8x16x4xbf16> to vector<128x4xbf16>
    %c0_3 = arith.constant 0 : index
    %c0_4 = arith.constant 0 : index
    %5 = vector.load %arg3[%c0_3, %c0_4] : memref<4x512xbf16, #tpu.memory_space<vmem>>, vector<4x512xbf16>
    %cst = arith.constant dense<0.000000e+00> : vector<128x512xf32>
    %6 = tpu.matmul %4, %5, %cst {dimension_numbers = #tpu.dot_dimension_numbers<[1], [0], [0], [1], [0, 0, 1, 1], [], []>} : vector<128x4xbf16>, vector<4x512xbf16>, vector<128x512xf32> -> vector<128x512xf32>
    %c0_5 = arith.constant 0 : index
    %c0_6 = arith.constant 0 : index
    %7 = vector.load %arg5[%c0_5, %c0_6] : memref<1x512xf32, #tpu.memory_space<vmem>>, vector<1x512xf32>
    %8 = vector.broadcast %7 : vector<1x512xf32> to vector<128x512xf32>
    %9 = arith.addf %6, %8 : vector<128x512xf32>
    %10 = vector.shape_cast %9 : vector<128x512xf32> to vector<8x16x512xf32>
    %c0_7 = arith.constant 0 : index
    %c0_8 = arith.constant 0 : index
    %c0_9 = arith.constant 0 : index
    %11 = vector.load %arg7[%c0_7, %c0_8, %c0_9] : memref<8x16x512xf32, #tpu.memory_space<vmem>>, vector<8x16x512xf32>
    tpu.vector_store %arg7[%c0_7, %c0_8, %c0_9], %10 {strides = array<i32>} : memref<8x16x512xf32, #tpu.memory_space<vmem>>, vector<8x16x512xf32>,
    %c0_i32_10 = arith.constant 0 : i32
    %c0_11 = arith.constant 0 : index
    %c0_12 = arith.constant 0 : index
    %12 = vector.load %arg8[%c0_11, %c0_12] : memref<16x128xf32, #tpu.memory_space<vmem>>, vector<16x128xf32>
    %c0_13 = arith.constant 0 : index
    %c0_14 = arith.constant 0 : index
    %13 = vector.load %arg9[%c0_13, %c0_14] : memref<16x128xf32, #tpu.memory_space<vmem>>, vector<16x128xf32>
    %14 = arith.index_cast %c0_i32_10 : i32 to index
    %c0_15 = arith.constant 0 : index
    %c0_16 = arith.constant 0 : index
    %15 = vector.load %arg7[%14, %c0_15, %c0_16] : memref<8x16x512xf32, #tpu.memory_space<vmem>>, vector<1x16x512xf32>
    %16 = vector.shape_cast %15 : vector<1x16x512xf32> to vector<16x512xf32>
    %17 = arith.truncf %12 : vector<16x128xf32> to vector<16x128xbf16>
    %c0_17 = arith.constant 0 : index
    %c0_18 = arith.constant 0 : index
    %18 = vector.load %arg4[%c0_17, %c0_18] : memref<128x512xbf16, #tpu.memory_space<vmem>>, vector<128x512xbf16>
    %cst_19 = arith.constant dense<0.000000e+00> : vector<16x512xf32>
    %19 = tpu.matmul %17, %18, %cst_19 {dimension_numbers = #tpu.dot_dimension_numbers<[1], [0], [0], [1], [0, 0, 1, 1], [], []>} : vector<16x128xbf16>, vector<128x512xbf16>, vector<16x512xf32> -> vector<16x512xf32>
    %20 = arith.addf %16, %19 : vector<16x512xf32>
    %21 = vector.extract_strided_slice %20 {offsets = [0, 0], sizes = [16, 128], strides = [1, 1]} : vector<16x512xf32> to vector<16x128xf32>
    %22 = arith.negf %21 : vector<16x128xf32>
    %23 = math.exp %22 : vector<16x128xf32>
    %cst_20 = arith.constant 1.000000e+00 : f32
    %24 = vector.broadcast %cst_20 : f32 to vector<16x128xf32>
    %25 = arith.addf %24, %23 : vector<16x128xf32>
    %26 = arith.divf %24, %25 : vector<16x128xf32>
    %27 = vector.extract_strided_slice %20 {offsets = [0, 128], sizes = [16, 128], strides = [1, 1]} : vector<16x512xf32> to vector<16x128xf32>
    %28 = arith.negf %27 : vector<16x128xf32>
    %29 = math.exp %28 : vector<16x128xf32>
    %cst_21 = arith.constant 1.000000e+00 : f32
    %30 = vector.broadcast %cst_21 : f32 to vector<16x128xf32>
    %31 = arith.addf %30, %29 : vector<16x128xf32>
    %32 = arith.divf %30, %31 : vector<16x128xf32>
    %33 = vector.extract_strided_slice %20 {offsets = [0, 256], sizes = [16, 128], strides = [1, 1]} : vector<16x512xf32> to vector<16x128xf32>
    %34 = math.tanh %33 : vector<16x128xf32>
    %35 = vector.extract_strided_slice %20 {offsets = [0, 384], sizes = [16, 128], strides = [1, 1]} : vector<16x512xf32> to vector<16x128xf32>
    %36 = arith.negf %35 : vector<16x128xf32>
    %37 = math.exp %36 : vector<16x128xf32>
    %cst_22 = arith.constant 1.000000e+00 : f32
    %38 = vector.broadcast %cst_22 : f32 to vector<16x128xf32>
    %39 = arith.addf %38, %37 : vector<16x128xf32>
    %40 = arith.divf %38, %39 : vector<16x128xf32>
    %41 = arith.mulf %32, %13 : vector<16x128xf32>
    %42 = arith.mulf %26, %34 : vector<16x128xf32>
    %43 = arith.addf %41, %42 : vector<16x128xf32>
    %44 = math.tanh %43 : vector<16x128xf32>
    %45 = arith.mulf %40, %44 : vector<16x128xf32>
    %c0_23 = arith.constant 0 : index
    %c0_24 = arith.constant 0 : index
    %46 = vector.load %arg9[%c0_23, %c0_24] : memref<16x128xf32, #tpu.memory_space<vmem>>, vector<16x128xf32>
    tpu.vector_store %arg9[%c0_23, %c0_24], %43 {strides = array<i32>} : memref<16x128xf32, #tpu.memory_space<vmem>>, vector<16x128xf32>,
    %c0_25 = arith.constant 0 : index
    %c0_26 = arith.constant 0 : index
    %47 = vector.load %arg8[%c0_25, %c0_26] : memref<16x128xf32, #tpu.memory_space<vmem>>, vector<16x128xf32>
    tpu.vector_store %arg8[%c0_25, %c0_26], %45 {strides = array<i32>} : memref<16x128xf32, #tpu.memory_space<vmem>>, vector<16x128xf32>,
    %48 = arith.truncf %45 : vector<16x128xf32> to vector<16x128xbf16>
    %49 = arith.index_cast %c0_i32_10 : i32 to index
    %c0_27 = arith.constant 0 : index
    %c0_28 = arith.constant 0 : index
    %50 = vector.load %arg6[%49, %c0_27, %c0_28] : memref<8x16x128xbf16, #tpu.memory_space<vmem>>, vector<1x16x128xbf16>
    %51 = vector.shape_cast %50 : vector<1x16x128xbf16> to vector<16x128xbf16>
    %52 = vector.shape_cast %48 : vector<16x128xbf16> to vector<1x16x128xbf16>
    tpu.vector_store %arg6[%49, %c0_27, %c0_28], %52 {strides = array<i32>} : memref<8x16x128xbf16, #tpu.memory_space<vmem>>, vector<1x16x128xbf16>,
    %c1_i32 = arith.constant 1 : i32
    %c0_29 = arith.constant 0 : index
    %c0_30 = arith.constant 0 : index
    %53 = vector.load %arg8[%c0_29, %c0_30] : memref<16x128xf32, #tpu.memory_space<vmem>>, vector<16x128xf32>
    %c0_31 = arith.constant 0 : index
    %c0_32 = arith.constant 0 : index
    %54 = vector.load %arg9[%c0_31, %c0_32] : memref<16x128xf32, #tpu.memory_space<vmem>>, vector<16x128xf32>
    %55 = arith.index_cast %c1_i32 : i32 to index
    %c0_33 = arith.constant 0 : index
    %c0_34 = arith.constant 0 : index
    %56 = vector.load %arg7[%55, %c0_33, %c0_34] : memref<8x16x512xf32, #tpu.memory_space<vmem>>, vector<1x16x512xf32>
    %57 = vector.shape_cast %56 : vector<1x16x512xf32> to vector<16x512xf32>
    %58 = arith.truncf %53 : vector<16x128xf32> to vector<16x128xbf16>
    %c0_35 = arith.constant 0 : index
    %c0_36 = arith.constant 0 : index
    %59 = vector.load %arg4[%c0_35, %c0_36] : memref<128x512xbf16, #tpu.memory_space<vmem>>, vector<128x512xbf16>
    %cst_37 = arith.constant dense<0.000000e+00> : vector<16x512xf32>
    %60 = tpu.matmul %58, %59, %cst_37 {dimension_numbers = #tpu.dot_dimension_numbers<[1], [0], [0], [1], [0, 0, 1, 1], [], []>} : vector<16x128xbf16>, vector<128x512xbf16>, vector<16x512xf32> -> vector<16x512xf32>
    %61 = arith.addf %57, %60 : vector<16x512xf32>
    %62 = vector.extract_strided_slice %61 {offsets = [0, 0], sizes = [16, 128], strides = [1, 1]} : vector<16x512xf32> to vector<16x128xf32>
    %63 = arith.negf %62 : vector<16x128xf32>
    %64 = math.exp %63 : vector<16x128xf32>
    %cst_38 = arith.constant 1.000000e+00 : f32
    %65 = vector.broadcast %cst_38 : f32 to vector<16x128xf32>
    %66 = arith.addf %65, %64 : vector<16x128xf32>
    %67 = arith.divf %65, %66 : vector<16x128xf32>
    %68 = vector.extract_strided_slice %61 {offsets = [0, 128], sizes = [16, 128], strides = [1, 1]} : vector<16x512xf32> to vector<16x128xf32>
    %69 = arith.negf %68 : vector<16x128xf32>
    %70 = math.exp %69 : vector<16x128xf32>
    %cst_39 = arith.constant 1.000000e+00 : f32
    %71 = vector.broadcast %cst_39 : f32 to vector<16x128xf32>
    %72 = arith.addf %71, %70 : vector<16x128xf32>
    %73 = arith.divf %71, %72 : vector<16x128xf32>
    %74 = vector.extract_strided_slice %61 {offsets = [0, 256], sizes = [16, 128], strides = [1, 1]} : vector<16x512xf32> to vector<16x128xf32>
    %75 = math.tanh %74 : vector<16x128xf32>
    %76 = vector.extract_strided_slice %61 {offsets = [0, 384], sizes = [16, 128], strides = [1, 1]} : vector<16x512xf32> to vector<16x128xf32>
    %77 = arith.negf %76 : vector<16x128xf32>
    %78 = math.exp %77 : vector<16x128xf32>
    %cst_40 = arith.constant 1.000000e+00 : f32
    %79 = vector.broadcast %cst_40 : f32 to vector<16x128xf32>
    %80 = arith.addf %79, %78 : vector<16x128xf32>
    %81 = arith.divf %79, %80 : vector<16x128xf32>
    %82 = arith.mulf %73, %54 : vector<16x128xf32>
    %83 = arith.mulf %67, %75 : vector<16x128xf32>
    %84 = arith.addf %82, %83 : vector<16x128xf32>
    %85 = math.tanh %84 : vector<16x128xf32>
    %86 = arith.mulf %81, %85 : vector<16x128xf32>
    %c0_41 = arith.constant 0 : index
    %c0_42 = arith.constant 0 : index
    %87 = vector.load %arg9[%c0_41, %c0_42] : memref<16x128xf32, #tpu.memory_space<vmem>>, vector<16x128xf32>
    tpu.vector_store %arg9[%c0_41, %c0_42], %84 {strides = array<i32>} : memref<16x128xf32, #tpu.memory_space<vmem>>, vector<16x128xf32>,
    %c0_43 = arith.constant 0 : index
    %c0_44 = arith.constant 0 : index
    %88 = vector.load %arg8[%c0_43, %c0_44] : memref<16x128xf32, #tpu.memory_space<vmem>>, vector<16x128xf32>
    tpu.vector_store %arg8[%c0_43, %c0_44], %86 {strides = array<i32>} : memref<16x128xf32, #tpu.memory_space<vmem>>, vector<16x128xf32>,
    %89 = arith.truncf %86 : vector<16x128xf32> to vector<16x128xbf16>
    %90 = arith.index_cast %c1_i32 : i32 to index
    %c0_45 = arith.constant 0 : index
    %c0_46 = arith.constant 0 : index
    %91 = vector.load %arg6[%90, %c0_45, %c0_46] : memref<8x16x128xbf16, #tpu.memory_space<vmem>>, vector<1x16x128xbf16>
    %92 = vector.shape_cast %91 : vector<1x16x128xbf16> to vector<16x128xbf16>
    %93 = vector.shape_cast %89 : vector<16x128xbf16> to vector<1x16x128xbf16>
    tpu.vector_store %arg6[%90, %c0_45, %c0_46], %93 {strides = array<i32>} : memref<8x16x128xbf16, #tpu.memory_space<vmem>>, vector<1x16x128xbf16>,
    %c2_i32 = arith.constant 2 : i32
    %c0_47 = arith.constant 0 : index
    %c0_48 = arith.constant 0 : index
    %94 = vector.load %arg8[%c0_47, %c0_48] : memref<16x128xf32, #tpu.memory_space<vmem>>, vector<16x128xf32>
    %c0_49 = arith.constant 0 : index
    %c0_50 = arith.constant 0 : index
    %95 = vector.load %arg9[%c0_49, %c0_50] : memref<16x128xf32, #tpu.memory_space<vmem>>, vector<16x128xf32>
    %96 = arith.index_cast %c2_i32 : i32 to index
    %c0_51 = arith.constant 0 : index
    %c0_52 = arith.constant 0 : index
    %97 = vector.load %arg7[%96, %c0_51, %c0_52] : memref<8x16x512xf32, #tpu.memory_space<vmem>>, vector<1x16x512xf32>
    %98 = vector.shape_cast %97 : vector<1x16x512xf32> to vector<16x512xf32>
    %99 = arith.truncf %94 : vector<16x128xf32> to vector<16x128xbf16>
    %c0_53 = arith.constant 0 : index
    %c0_54 = arith.constant 0 : index
    %100 = vector.load %arg4[%c0_53, %c0_54] : memref<128x512xbf16, #tpu.memory_space<vmem>>, vector<128x512xbf16>
    %cst_55 = arith.constant dense<0.000000e+00> : vector<16x512xf32>
    %101 = tpu.matmul %99, %100, %cst_55 {dimension_numbers = #tpu.dot_dimension_numbers<[1], [0], [0], [1], [0, 0, 1, 1], [], []>} : vector<16x128xbf16>, vector<128x512xbf16>, vector<16x512xf32> -> vector<16x512xf32>
    %102 = arith.addf %98, %101 : vector<16x512xf32>
    %103 = vector.extract_strided_slice %102 {offsets = [0, 0], sizes = [16, 128], strides = [1, 1]} : vector<16x512xf32> to vector<16x128xf32>
    %104 = arith.negf %103 : vector<16x128xf32>
    %105 = math.exp %104 : vector<16x128xf32>
    %cst_56 = arith.constant 1.000000e+00 : f32
    %106 = vector.broadcast %cst_56 : f32 to vector<16x128xf32>
    %107 = arith.addf %106, %105 : vector<16x128xf32>
    %108 = arith.divf %106, %107 : vector<16x128xf32>
    %109 = vector.extract_strided_slice %102 {offsets = [0, 128], sizes = [16, 128], strides = [1, 1]} : vector<16x512xf32> to vector<16x128xf32>
    %110 = arith.negf %109 : vector<16x128xf32>
    %111 = math.exp %110 : vector<16x128xf32>
    %cst_57 = arith.constant 1.000000e+00 : f32
    %112 = vector.broadcast %cst_57 : f32 to vector<16x128xf32>
    %113 = arith.addf %112, %111 : vector<16x128xf32>
    %114 = arith.divf %112, %113 : vector<16x128xf32>
    %115 = vector.extract_strided_slice %102 {offsets = [0, 256], sizes = [16, 128], strides = [1, 1]} : vector<16x512xf32> to vector<16x128xf32>
    %116 = math.tanh %115 : vector<16x128xf32>
    %117 = vector.extract_strided_slice %102 {offsets = [0, 384], sizes = [16, 128], strides = [1, 1]} : vector<16x512xf32> to vector<16x128xf32>
    %118 = arith.negf %117 : vector<16x128xf32>
    %119 = math.exp %118 : vector<16x128xf32>
    %cst_58 = arith.constant 1.000000e+00 : f32
    %120 = vector.broadcast %cst_58 : f32 to vector<16x128xf32>
    %121 = arith.addf %120, %119 : vector<16x128xf32>
    %122 = arith.divf %120, %121 : vector<16x128xf32>
    %123 = arith.mulf %114, %95 : vector<16x128xf32>
    %124 = arith.mulf %108, %116 : vector<16x128xf32>
    %125 = arith.addf %123, %124 : vector<16x128xf32>
    %126 = math.tanh %125 : vector<16x128xf32>
    %127 = arith.mulf %122, %126 : vector<16x128xf32>
    %c0_59 = arith.constant 0 : index
    %c0_60 = arith.constant 0 : index
    %128 = vector.load %arg9[%c0_59, %c0_60] : memref<16x128xf32, #tpu.memory_space<vmem>>, vector<16x128xf32>
    tpu.vector_store %arg9[%c0_59, %c0_60], %125 {strides = array<i32>} : memref<16x128xf32, #tpu.memory_space<vmem>>, vector<16x128xf32>,
    %c0_61 = arith.constant 0 : index
    %c0_62 = arith.constant 0 : index
    %129 = vector.load %arg8[%c0_61, %c0_62] : memref<16x128xf32, #tpu.memory_space<vmem>>, vector<16x128xf32>
    tpu.vector_store %arg8[%c0_61, %c0_62], %127 {strides = array<i32>} : memref<16x128xf32, #tpu.memory_space<vmem>>, vector<16x128xf32>,
    %130 = arith.truncf %127 : vector<16x128xf32> to vector<16x128xbf16>
    %131 = arith.index_cast %c2_i32 : i32 to index
    %c0_63 = arith.constant 0 : index
    %c0_64 = arith.constant 0 : index
    %132 = vector.load %arg6[%131, %c0_63, %c0_64] : memref<8x16x128xbf16, #tpu.memory_space<vmem>>, vector<1x16x128xbf16>
    %133 = vector.shape_cast %132 : vector<1x16x128xbf16> to vector<16x128xbf16>
    %134 = vector.shape_cast %130 : vector<16x128xbf16> to vector<1x16x128xbf16>
    tpu.vector_store %arg6[%131, %c0_63, %c0_64], %134 {strides = array<i32>} : memref<8x16x128xbf16, #tpu.memory_space<vmem>>, vector<1x16x128xbf16>,
    %c3_i32 = arith.constant 3 : i32
    %c0_65 = arith.constant 0 : index
    %c0_66 = arith.constant 0 : index
    %135 = vector.load %arg8[%c0_65, %c0_66] : memref<16x128xf32, #tpu.memory_space<vmem>>, vector<16x128xf32>
    %c0_67 = arith.constant 0 : index
    %c0_68 = arith.constant 0 : index
    %136 = vector.load %arg9[%c0_67, %c0_68] : memref<16x128xf32, #tpu.memory_space<vmem>>, vector<16x128xf32>
    %137 = arith.index_cast %c3_i32 : i32 to index
    %c0_69 = arith.constant 0 : index
    %c0_70 = arith.constant 0 : index
    %138 = vector.load %arg7[%137, %c0_69, %c0_70] : memref<8x16x512xf32, #tpu.memory_space<vmem>>, vector<1x16x512xf32>
    %139 = vector.shape_cast %138 : vector<1x16x512xf32> to vector<16x512xf32>
    %140 = arith.truncf %135 : vector<16x128xf32> to vector<16x128xbf16>
    %c0_71 = arith.constant 0 : index
    %c0_72 = arith.constant 0 : index
    %141 = vector.load %arg4[%c0_71, %c0_72] : memref<128x512xbf16, #tpu.memory_space<vmem>>, vector<128x512xbf16>
    %cst_73 = arith.constant dense<0.000000e+00> : vector<16x512xf32>
    %142 = tpu.matmul %140, %141, %cst_73 {dimension_numbers = #tpu.dot_dimension_numbers<[1], [0], [0], [1], [0, 0, 1, 1], [], []>} : vector<16x128xbf16>, vector<128x512xbf16>, vector<16x512xf32> -> vector<16x512xf32>
    %143 = arith.addf %139, %142 : vector<16x512xf32>
    %144 = vector.extract_strided_slice %143 {offsets = [0, 0], sizes = [16, 128], strides = [1, 1]} : vector<16x512xf32> to vector<16x128xf32>
    %145 = arith.negf %144 : vector<16x128xf32>
    %146 = math.exp %145 : vector<16x128xf32>
    %cst_74 = arith.constant 1.000000e+00 : f32
    %147 = vector.broadcast %cst_74 : f32 to vector<16x128xf32>
    %148 = arith.addf %147, %146 : vector<16x128xf32>
    %149 = arith.divf %147, %148 : vector<16x128xf32>
    %150 = vector.extract_strided_slice %143 {offsets = [0, 128], sizes = [16, 128], strides = [1, 1]} : vector<16x512xf32> to vector<16x128xf32>
    %151 = arith.negf %150 : vector<16x128xf32>
    %152 = math.exp %151 : vector<16x128xf32>
    %cst_75 = arith.constant 1.000000e+00 : f32
    %153 = vector.broadcast %cst_75 : f32 to vector<16x128xf32>
    %154 = arith.addf %153, %152 : vector<16x128xf32>
    %155 = arith.divf %153, %154 : vector<16x128xf32>
    %156 = vector.extract_strided_slice %143 {offsets = [0, 256], sizes = [16, 128], strides = [1, 1]} : vector<16x512xf32> to vector<16x128xf32>
    %157 = math.tanh %156 : vector<16x128xf32>
    %158 = vector.extract_strided_slice %143 {offsets = [0, 384], sizes = [16, 128], strides = [1, 1]} : vector<16x512xf32> to vector<16x128xf32>
    %159 = arith.negf %158 : vector<16x128xf32>
    %160 = math.exp %159 : vector<16x128xf32>
    %cst_76 = arith.constant 1.000000e+00 : f32
    %161 = vector.broadcast %cst_76 : f32 to vector<16x128xf32>
    %162 = arith.addf %161, %160 : vector<16x128xf32>
    %163 = arith.divf %161, %162 : vector<16x128xf32>
    %164 = arith.mulf %155, %136 : vector<16x128xf32>
    %165 = arith.mulf %149, %157 : vector<16x128xf32>
    %166 = arith.addf %164, %165 : vector<16x128xf32>
    %167 = math.tanh %166 : vector<16x128xf32>
    %168 = arith.mulf %163, %167 : vector<16x128xf32>
    %c0_77 = arith.constant 0 : index
    %c0_78 = arith.constant 0 : index
    %169 = vector.load %arg9[%c0_77, %c0_78] : memref<16x128xf32, #tpu.memory_space<vmem>>, vector<16x128xf32>
    tpu.vector_store %arg9[%c0_77, %c0_78], %166 {strides = array<i32>} : memref<16x128xf32, #tpu.memory_space<vmem>>, vector<16x128xf32>,
    %c0_79 = arith.constant 0 : index
    %c0_80 = arith.constant 0 : index
    %170 = vector.load %arg8[%c0_79, %c0_80] : memref<16x128xf32, #tpu.memory_space<vmem>>, vector<16x128xf32>
    tpu.vector_store %arg8[%c0_79, %c0_80], %168 {strides = array<i32>} : memref<16x128xf32, #tpu.memory_space<vmem>>, vector<16x128xf32>,
    %171 = arith.truncf %168 : vector<16x128xf32> to vector<16x128xbf16>
    %172 = arith.index_cast %c3_i32 : i32 to index
    %c0_81 = arith.constant 0 : index
    %c0_82 = arith.constant 0 : index
    %173 = vector.load %arg6[%172, %c0_81, %c0_82] : memref<8x16x128xbf16, #tpu.memory_space<vmem>>, vector<1x16x128xbf16>
    %174 = vector.shape_cast %173 : vector<1x16x128xbf16> to vector<16x128xbf16>
    %175 = vector.shape_cast %171 : vector<16x128xbf16> to vector<1x16x128xbf16>
    tpu.vector_store %arg6[%172, %c0_81, %c0_82], %175 {strides = array<i32>} : memref<8x16x128xbf16, #tpu.memory_space<vmem>>, vector<1x16x128xbf16>,
    %c4_i32 = arith.constant 4 : i32
    %c0_83 = arith.constant 0 : index
    %c0_84 = arith.constant 0 : index
    %176 = vector.load %arg8[%c0_83, %c0_84] : memref<16x128xf32, #tpu.memory_space<vmem>>, vector<16x128xf32>
    %c0_85 = arith.constant 0 : index
    %c0_86 = arith.constant 0 : index
    %177 = vector.load %arg9[%c0_85, %c0_86] : memref<16x128xf32, #tpu.memory_space<vmem>>, vector<16x128xf32>
    %178 = arith.index_cast %c4_i32 : i32 to index
    %c0_87 = arith.constant 0 : index
    %c0_88 = arith.constant 0 : index
    %179 = vector.load %arg7[%178, %c0_87, %c0_88] : memref<8x16x512xf32, #tpu.memory_space<vmem>>, vector<1x16x512xf32>
    %180 = vector.shape_cast %179 : vector<1x16x512xf32> to vector<16x512xf32>
    %181 = arith.truncf %176 : vector<16x128xf32> to vector<16x128xbf16>
    %c0_89 = arith.constant 0 : index
    %c0_90 = arith.constant 0 : index
    %182 = vector.load %arg4[%c0_89, %c0_90] : memref<128x512xbf16, #tpu.memory_space<vmem>>, vector<128x512xbf16>
    %cst_91 = arith.constant dense<0.000000e+00> : vector<16x512xf32>
    %183 = tpu.matmul %181, %182, %cst_91 {dimension_numbers = #tpu.dot_dimension_numbers<[1], [0], [0], [1], [0, 0, 1, 1], [], []>} : vector<16x128xbf16>, vector<128x512xbf16>, vector<16x512xf32> -> vector<16x512xf32>
    %184 = arith.addf %180, %183 : vector<16x512xf32>
    %185 = vector.extract_strided_slice %184 {offsets = [0, 0], sizes = [16, 128], strides = [1, 1]} : vector<16x512xf32> to vector<16x128xf32>
    %186 = arith.negf %185 : vector<16x128xf32>
    %187 = math.exp %186 : vector<16x128xf32>
    %cst_92 = arith.constant 1.000000e+00 : f32
    %188 = vector.broadcast %cst_92 : f32 to vector<16x128xf32>
    %189 = arith.addf %188, %187 : vector<16x128xf32>
    %190 = arith.divf %188, %189 : vector<16x128xf32>
    %191 = vector.extract_strided_slice %184 {offsets = [0, 128], sizes = [16, 128], strides = [1, 1]} : vector<16x512xf32> to vector<16x128xf32>
    %192 = arith.negf %191 : vector<16x128xf32>
    %193 = math.exp %192 : vector<16x128xf32>
    %cst_93 = arith.constant 1.000000e+00 : f32
    %194 = vector.broadcast %cst_93 : f32 to vector<16x128xf32>
    %195 = arith.addf %194, %193 : vector<16x128xf32>
    %196 = arith.divf %194, %195 : vector<16x128xf32>
    %197 = vector.extract_strided_slice %184 {offsets = [0, 256], sizes = [16, 128], strides = [1, 1]} : vector<16x512xf32> to vector<16x128xf32>
    %198 = math.tanh %197 : vector<16x128xf32>
    %199 = vector.extract_strided_slice %184 {offsets = [0, 384], sizes = [16, 128], strides = [1, 1]} : vector<16x512xf32> to vector<16x128xf32>
    %200 = arith.negf %199 : vector<16x128xf32>
    %201 = math.exp %200 : vector<16x128xf32>
    %cst_94 = arith.constant 1.000000e+00 : f32
    %202 = vector.broadcast %cst_94 : f32 to vector<16x128xf32>
    %203 = arith.addf %202, %201 : vector<16x128xf32>
    %204 = arith.divf %202, %203 : vector<16x128xf32>
    %205 = arith.mulf %196, %177 : vector<16x128xf32>
    %206 = arith.mulf %190, %198 : vector<16x128xf32>
    %207 = arith.addf %205, %206 : vector<16x128xf32>
    %208 = math.tanh %207 : vector<16x128xf32>
    %209 = arith.mulf %204, %208 : vector<16x128xf32>
    %c0_95 = arith.constant 0 : index
    %c0_96 = arith.constant 0 : index
    %210 = vector.load %arg9[%c0_95, %c0_96] : memref<16x128xf32, #tpu.memory_space<vmem>>, vector<16x128xf32>
    tpu.vector_store %arg9[%c0_95, %c0_96], %207 {strides = array<i32>} : memref<16x128xf32, #tpu.memory_space<vmem>>, vector<16x128xf32>,
    %c0_97 = arith.constant 0 : index
    %c0_98 = arith.constant 0 : index
    %211 = vector.load %arg8[%c0_97, %c0_98] : memref<16x128xf32, #tpu.memory_space<vmem>>, vector<16x128xf32>
    tpu.vector_store %arg8[%c0_97, %c0_98], %209 {strides = array<i32>} : memref<16x128xf32, #tpu.memory_space<vmem>>, vector<16x128xf32>,
    %212 = arith.truncf %209 : vector<16x128xf32> to vector<16x128xbf16>
    %213 = arith.index_cast %c4_i32 : i32 to index
    %c0_99 = arith.constant 0 : index
    %c0_100 = arith.constant 0 : index
    %214 = vector.load %arg6[%213, %c0_99, %c0_100] : memref<8x16x128xbf16, #tpu.memory_space<vmem>>, vector<1x16x128xbf16>
    %215 = vector.shape_cast %214 : vector<1x16x128xbf16> to vector<16x128xbf16>
    %216 = vector.shape_cast %212 : vector<16x128xbf16> to vector<1x16x128xbf16>
    tpu.vector_store %arg6[%213, %c0_99, %c0_100], %216 {strides = array<i32>} : memref<8x16x128xbf16, #tpu.memory_space<vmem>>, vector<1x16x128xbf16>,
    %c5_i32 = arith.constant 5 : i32
    %c0_101 = arith.constant 0 : index
    %c0_102 = arith.constant 0 : index
    %217 = vector.load %arg8[%c0_101, %c0_102] : memref<16x128xf32, #tpu.memory_space<vmem>>, vector<16x128xf32>
    %c0_103 = arith.constant 0 : index
    %c0_104 = arith.constant 0 : index
    %218 = vector.load %arg9[%c0_103, %c0_104] : memref<16x128xf32, #tpu.memory_space<vmem>>, vector<16x128xf32>
    %219 = arith.index_cast %c5_i32 : i32 to index
    %c0_105 = arith.constant 0 : index
    %c0_106 = arith.constant 0 : index
    %220 = vector.load %arg7[%219, %c0_105, %c0_106] : memref<8x16x512xf32, #tpu.memory_space<vmem>>, vector<1x16x512xf32>
    %221 = vector.shape_cast %220 : vector<1x16x512xf32> to vector<16x512xf32>
    %222 = arith.truncf %217 : vector<16x128xf32> to vector<16x128xbf16>
    %c0_107 = arith.constant 0 : index
    %c0_108 = arith.constant 0 : index
    %223 = vector.load %arg4[%c0_107, %c0_108] : memref<128x512xbf16, #tpu.memory_space<vmem>>, vector<128x512xbf16>
    %cst_109 = arith.constant dense<0.000000e+00> : vector<16x512xf32>
    %224 = tpu.matmul %222, %223, %cst_109 {dimension_numbers = #tpu.dot_dimension_numbers<[1], [0], [0], [1], [0, 0, 1, 1], [], []>} : vector<16x128xbf16>, vector<128x512xbf16>, vector<16x512xf32> -> vector<16x512xf32>
    %225 = arith.addf %221, %224 : vector<16x512xf32>
    %226 = vector.extract_strided_slice %225 {offsets = [0, 0], sizes = [16, 128], strides = [1, 1]} : vector<16x512xf32> to vector<16x128xf32>
    %227 = arith.negf %226 : vector<16x128xf32>
    %228 = math.exp %227 : vector<16x128xf32>
    %cst_110 = arith.constant 1.000000e+00 : f32
    %229 = vector.broadcast %cst_110 : f32 to vector<16x128xf32>
    %230 = arith.addf %229, %228 : vector<16x128xf32>
    %231 = arith.divf %229, %230 : vector<16x128xf32>
    %232 = vector.extract_strided_slice %225 {offsets = [0, 128], sizes = [16, 128], strides = [1, 1]} : vector<16x512xf32> to vector<16x128xf32>
    %233 = arith.negf %232 : vector<16x128xf32>
    %234 = math.exp %233 : vector<16x128xf32>
    %cst_111 = arith.constant 1.000000e+00 : f32
    %235 = vector.broadcast %cst_111 : f32 to vector<16x128xf32>
    %236 = arith.addf %235, %234 : vector<16x128xf32>
    %237 = arith.divf %235, %236 : vector<16x128xf32>
    %238 = vector.extract_strided_slice %225 {offsets = [0, 256], sizes = [16, 128], strides = [1, 1]} : vector<16x512xf32> to vector<16x128xf32>
    %239 = math.tanh %238 : vector<16x128xf32>
    %240 = vector.extract_strided_slice %225 {offsets = [0, 384], sizes = [16, 128], strides = [1, 1]} : vector<16x512xf32> to vector<16x128xf32>
    %241 = arith.negf %240 : vector<16x128xf32>
    %242 = math.exp %241 : vector<16x128xf32>
    %cst_112 = arith.constant 1.000000e+00 : f32
    %243 = vector.broadcast %cst_112 : f32 to vector<16x128xf32>
    %244 = arith.addf %243, %242 : vector<16x128xf32>
    %245 = arith.divf %243, %244 : vector<16x128xf32>
    %246 = arith.mulf %237, %218 : vector<16x128xf32>
    %247 = arith.mulf %231, %239 : vector<16x128xf32>
    %248 = arith.addf %246, %247 : vector<16x128xf32>
    %249 = math.tanh %248 : vector<16x128xf32>
    %250 = arith.mulf %245, %249 : vector<16x128xf32>
    %c0_113 = arith.constant 0 : index
    %c0_114 = arith.constant 0 : index
    %251 = vector.load %arg9[%c0_113, %c0_114] : memref<16x128xf32, #tpu.memory_space<vmem>>, vector<16x128xf32>
    tpu.vector_store %arg9[%c0_113, %c0_114], %248 {strides = array<i32>} : memref<16x128xf32, #tpu.memory_space<vmem>>, vector<16x128xf32>,
    %c0_115 = arith.constant 0 : index
    %c0_116 = arith.constant 0 : index
    %252 = vector.load %arg8[%c0_115, %c0_116] : memref<16x128xf32, #tpu.memory_space<vmem>>, vector<16x128xf32>
    tpu.vector_store %arg8[%c0_115, %c0_116], %250 {strides = array<i32>} : memref<16x128xf32, #tpu.memory_space<vmem>>, vector<16x128xf32>,
    %253 = arith.truncf %250 : vector<16x128xf32> to vector<16x128xbf16>
    %254 = arith.index_cast %c5_i32 : i32 to index
    %c0_117 = arith.constant 0 : index
    %c0_118 = arith.constant 0 : index
    %255 = vector.load %arg6[%254, %c0_117, %c0_118] : memref<8x16x128xbf16, #tpu.memory_space<vmem>>, vector<1x16x128xbf16>
    %256 = vector.shape_cast %255 : vector<1x16x128xbf16> to vector<16x128xbf16>
    %257 = vector.shape_cast %253 : vector<16x128xbf16> to vector<1x16x128xbf16>
    tpu.vector_store %arg6[%254, %c0_117, %c0_118], %257 {strides = array<i32>} : memref<8x16x128xbf16, #tpu.memory_space<vmem>>, vector<1x16x128xbf16>,
    %c6_i32 = arith.constant 6 : i32
    %c0_119 = arith.constant 0 : index
    %c0_120 = arith.constant 0 : index
    %258 = vector.load %arg8[%c0_119, %c0_120] : memref<16x128xf32, #tpu.memory_space<vmem>>, vector<16x128xf32>
    %c0_121 = arith.constant 0 : index
    %c0_122 = arith.constant 0 : index
    %259 = vector.load %arg9[%c0_121, %c0_122] : memref<16x128xf32, #tpu.memory_space<vmem>>, vector<16x128xf32>
    %260 = arith.index_cast %c6_i32 : i32 to index
    %c0_123 = arith.constant 0 : index
    %c0_124 = arith.constant 0 : index
    %261 = vector.load %arg7[%260, %c0_123, %c0_124] : memref<8x16x512xf32, #tpu.memory_space<vmem>>, vector<1x16x512xf32>
    %262 = vector.shape_cast %261 : vector<1x16x512xf32> to vector<16x512xf32>
    %263 = arith.truncf %258 : vector<16x128xf32> to vector<16x128xbf16>
    %c0_125 = arith.constant 0 : index
    %c0_126 = arith.constant 0 : index
    %264 = vector.load %arg4[%c0_125, %c0_126] : memref<128x512xbf16, #tpu.memory_space<vmem>>, vector<128x512xbf16>
    %cst_127 = arith.constant dense<0.000000e+00> : vector<16x512xf32>
    %265 = tpu.matmul %263, %264, %cst_127 {dimension_numbers = #tpu.dot_dimension_numbers<[1], [0], [0], [1], [0, 0, 1, 1], [], []>} : vector<16x128xbf16>, vector<128x512xbf16>, vector<16x512xf32> -> vector<16x512xf32>
    %266 = arith.addf %262, %265 : vector<16x512xf32>
    %267 = vector.extract_strided_slice %266 {offsets = [0, 0], sizes = [16, 128], strides = [1, 1]} : vector<16x512xf32> to vector<16x128xf32>
    %268 = arith.negf %267 : vector<16x128xf32>
    %269 = math.exp %268 : vector<16x128xf32>
    %cst_128 = arith.constant 1.000000e+00 : f32
    %270 = vector.broadcast %cst_128 : f32 to vector<16x128xf32>
    %271 = arith.addf %270, %269 : vector<16x128xf32>
    %272 = arith.divf %270, %271 : vector<16x128xf32>
    %273 = vector.extract_strided_slice %266 {offsets = [0, 128], sizes = [16, 128], strides = [1, 1]} : vector<16x512xf32> to vector<16x128xf32>
    %274 = arith.negf %273 : vector<16x128xf32>
    %275 = math.exp %274 : vector<16x128xf32>
    %cst_129 = arith.constant 1.000000e+00 : f32
    %276 = vector.broadcast %cst_129 : f32 to vector<16x128xf32>
    %277 = arith.addf %276, %275 : vector<16x128xf32>
    %278 = arith.divf %276, %277 : vector<16x128xf32>
    %279 = vector.extract_strided_slice %266 {offsets = [0, 256], sizes = [16, 128], strides = [1, 1]} : vector<16x512xf32> to vector<16x128xf32>
    %280 = math.tanh %279 : vector<16x128xf32>
    %281 = vector.extract_strided_slice %266 {offsets = [0, 384], sizes = [16, 128], strides = [1, 1]} : vector<16x512xf32> to vector<16x128xf32>
    %282 = arith.negf %281 : vector<16x128xf32>
    %283 = math.exp %282 : vector<16x128xf32>
    %cst_130 = arith.constant 1.000000e+00 : f32
    %284 = vector.broadcast %cst_130 : f32 to vector<16x128xf32>
    %285 = arith.addf %284, %283 : vector<16x128xf32>
    %286 = arith.divf %284, %285 : vector<16x128xf32>
    %287 = arith.mulf %278, %259 : vector<16x128xf32>
    %288 = arith.mulf %272, %280 : vector<16x128xf32>
    %289 = arith.addf %287, %288 : vector<16x128xf32>
    %290 = math.tanh %289 : vector<16x128xf32>
    %291 = arith.mulf %286, %290 : vector<16x128xf32>
    %c0_131 = arith.constant 0 : index
    %c0_132 = arith.constant 0 : index
    %292 = vector.load %arg9[%c0_131, %c0_132] : memref<16x128xf32, #tpu.memory_space<vmem>>, vector<16x128xf32>
    tpu.vector_store %arg9[%c0_131, %c0_132], %289 {strides = array<i32>} : memref<16x128xf32, #tpu.memory_space<vmem>>, vector<16x128xf32>,
    %c0_133 = arith.constant 0 : index
    %c0_134 = arith.constant 0 : index
    %293 = vector.load %arg8[%c0_133, %c0_134] : memref<16x128xf32, #tpu.memory_space<vmem>>, vector<16x128xf32>
    tpu.vector_store %arg8[%c0_133, %c0_134], %291 {strides = array<i32>} : memref<16x128xf32, #tpu.memory_space<vmem>>, vector<16x128xf32>,
    %294 = arith.truncf %291 : vector<16x128xf32> to vector<16x128xbf16>
    %295 = arith.index_cast %c6_i32 : i32 to index
    %c0_135 = arith.constant 0 : index
    %c0_136 = arith.constant 0 : index
    %296 = vector.load %arg6[%295, %c0_135, %c0_136] : memref<8x16x128xbf16, #tpu.memory_space<vmem>>, vector<1x16x128xbf16>
    %297 = vector.shape_cast %296 : vector<1x16x128xbf16> to vector<16x128xbf16>
    %298 = vector.shape_cast %294 : vector<16x128xbf16> to vector<1x16x128xbf16>
    tpu.vector_store %arg6[%295, %c0_135, %c0_136], %298 {strides = array<i32>} : memref<8x16x128xbf16, #tpu.memory_space<vmem>>, vector<1x16x128xbf16>,
    %c7_i32 = arith.constant 7 : i32
    %c0_137 = arith.constant 0 : index
    %c0_138 = arith.constant 0 : index
    %299 = vector.load %arg8[%c0_137, %c0_138] : memref<16x128xf32, #tpu.memory_space<vmem>>, vector<16x128xf32>
    %c0_139 = arith.constant 0 : index
    %c0_140 = arith.constant 0 : index
    %300 = vector.load %arg9[%c0_139, %c0_140] : memref<16x128xf32, #tpu.memory_space<vmem>>, vector<16x128xf32>
    %301 = arith.index_cast %c7_i32 : i32 to index
    %c0_141 = arith.constant 0 : index
    %c0_142 = arith.constant 0 : index
    %302 = vector.load %arg7[%301, %c0_141, %c0_142] : memref<8x16x512xf32, #tpu.memory_space<vmem>>, vector<1x16x512xf32>
    %303 = vector.shape_cast %302 : vector<1x16x512xf32> to vector<16x512xf32>
    %304 = arith.truncf %299 : vector<16x128xf32> to vector<16x128xbf16>
    %c0_143 = arith.constant 0 : index
    %c0_144 = arith.constant 0 : index
    %305 = vector.load %arg4[%c0_143, %c0_144] : memref<128x512xbf16, #tpu.memory_space<vmem>>, vector<128x512xbf16>
    %cst_145 = arith.constant dense<0.000000e+00> : vector<16x512xf32>
    %306 = tpu.matmul %304, %305, %cst_145 {dimension_numbers = #tpu.dot_dimension_numbers<[1], [0], [0], [1], [0, 0, 1, 1], [], []>} : vector<16x128xbf16>, vector<128x512xbf16>, vector<16x512xf32> -> vector<16x512xf32>
    %307 = arith.addf %303, %306 : vector<16x512xf32>
    %308 = vector.extract_strided_slice %307 {offsets = [0, 0], sizes = [16, 128], strides = [1, 1]} : vector<16x512xf32> to vector<16x128xf32>
    %309 = arith.negf %308 : vector<16x128xf32>
    %310 = math.exp %309 : vector<16x128xf32>
    %cst_146 = arith.constant 1.000000e+00 : f32
    %311 = vector.broadcast %cst_146 : f32 to vector<16x128xf32>
    %312 = arith.addf %311, %310 : vector<16x128xf32>
    %313 = arith.divf %311, %312 : vector<16x128xf32>
    %314 = vector.extract_strided_slice %307 {offsets = [0, 128], sizes = [16, 128], strides = [1, 1]} : vector<16x512xf32> to vector<16x128xf32>
    %315 = arith.negf %314 : vector<16x128xf32>
    %316 = math.exp %315 : vector<16x128xf32>
    %cst_147 = arith.constant 1.000000e+00 : f32
    %317 = vector.broadcast %cst_147 : f32 to vector<16x128xf32>
    %318 = arith.addf %317, %316 : vector<16x128xf32>
    %319 = arith.divf %317, %318 : vector<16x128xf32>
    %320 = vector.extract_strided_slice %307 {offsets = [0, 256], sizes = [16, 128], strides = [1, 1]} : vector<16x512xf32> to vector<16x128xf32>
    %321 = math.tanh %320 : vector<16x128xf32>
    %322 = vector.extract_strided_slice %307 {offsets = [0, 384], sizes = [16, 128], strides = [1, 1]} : vector<16x512xf32> to vector<16x128xf32>
    %323 = arith.negf %322 : vector<16x128xf32>
    %324 = math.exp %323 : vector<16x128xf32>
    %cst_148 = arith.constant 1.000000e+00 : f32
    %325 = vector.broadcast %cst_148 : f32 to vector<16x128xf32>
    %326 = arith.addf %325, %324 : vector<16x128xf32>
    %327 = arith.divf %325, %326 : vector<16x128xf32>
    %328 = arith.mulf %319, %300 : vector<16x128xf32>
    %329 = arith.mulf %313, %321 : vector<16x128xf32>
    %330 = arith.addf %328, %329 : vector<16x128xf32>
    %331 = math.tanh %330 : vector<16x128xf32>
    %332 = arith.mulf %327, %331 : vector<16x128xf32>
    %c0_149 = arith.constant 0 : index
    %c0_150 = arith.constant 0 : index
    %333 = vector.load %arg9[%c0_149, %c0_150] : memref<16x128xf32, #tpu.memory_space<vmem>>, vector<16x128xf32>
    tpu.vector_store %arg9[%c0_149, %c0_150], %330 {strides = array<i32>} : memref<16x128xf32, #tpu.memory_space<vmem>>, vector<16x128xf32>,
    %c0_151 = arith.constant 0 : index
    %c0_152 = arith.constant 0 : index
    %334 = vector.load %arg8[%c0_151, %c0_152] : memref<16x128xf32, #tpu.memory_space<vmem>>, vector<16x128xf32>
    tpu.vector_store %arg8[%c0_151, %c0_152], %332 {strides = array<i32>} : memref<16x128xf32, #tpu.memory_space<vmem>>, vector<16x128xf32>,
    %335 = arith.truncf %332 : vector<16x128xf32> to vector<16x128xbf16>
    %336 = arith.index_cast %c7_i32 : i32 to index
    %c0_153 = arith.constant 0 : index
    %c0_154 = arith.constant 0 : index
    %337 = vector.load %arg6[%336, %c0_153, %c0_154] : memref<8x16x128xbf16, #tpu.memory_space<vmem>>, vector<1x16x128xbf16>
    %338 = vector.shape_cast %337 : vector<1x16x128xbf16> to vector<16x128xbf16>
    %339 = vector.shape_cast %335 : vector<16x128xbf16> to vector<1x16x128xbf16>
    tpu.vector_store %arg6[%336, %c0_153, %c0_154], %339 {strides = array<i32>} : memref<8x16x128xbf16, #tpu.memory_space<vmem>>, vector<1x16x128xbf16>,
    %c8_i32 = arith.constant 8 : i32
    return
  }
  func.func @transform_0(%arg0: i32, %arg1: i32) -> (i32, i32, i32) {
    %c0_i32 = arith.constant 0 : i32
    %c0_i32_0 = arith.constant 0 : i32
    return %arg1, %arg0, %c0_i32 : i32, i32, i32
  }
  func.func @transform_1(%arg0: i32, %arg1: i32) -> (i32, i32) {
    %c0_i32 = arith.constant 0 : i32
    %c0_i32_0 = arith.constant 0 : i32
    %c0_i32_1 = arith.constant 0 : i32
    return %c0_i32, %c0_i32_0 : i32, i32
  }
  func.func @transform_2(%arg0: i32, %arg1: i32) -> (i32, i32) {
    %c0_i32 = arith.constant 0 : i32
    %c0_i32_0 = arith.constant 0 : i32
    %c0_i32_1 = arith.constant 0 : i32
    return %c0_i32, %c0_i32_0 : i32, i32
  }
  func.func @transform_3(%arg0: i32, %arg1: i32) -> (i32, i32) {
    %c0_i32 = arith.constant 0 : i32
    %c0_i32_0 = arith.constant 0 : i32
    %c0_i32_1 = arith.constant 0 : i32
    return %c0_i32, %c0_i32_0 : i32, i32
  }
  func.func @transform_4(%arg0: i32, %arg1: i32) -> (i32, i32, i32) {
    %c0_i32 = arith.constant 0 : i32
    %c0_i32_0 = arith.constant 0 : i32
    return %arg1, %arg0, %c0_i32 : i32, i32, i32
  }
}

</mosaic_0001>

<bundles_post_ra>
// kernel: forward.5
= control target key start
LH: loop header
LB: loop body
LE: loop exit
PB: predicated region body
PF: predicated region fallthrough
CT: control target
= control target key end

     0   :  { %s483_s1 = inlined_call_operand.vmem [shape: bf16[128,128], index: 1, kind: input, shape index: {}]   ;;  %s484_s0 = inlined_call_operand.vmem [shape: bf16[128,128], index: 0, kind: input, shape index: {}]   ;;  %s485_s2 = inlined_call_operand.vmem [shape: f32[1,128], index: 2, kind: input, shape index: {}]   ;;  %s486_s3 = inlined_call_operand.vmem [shape: f32[128,128], index: 3, kind: output, shape index: {}]  }
   0x1   :  { %v348_v0 = vld [vmem:[%s483_s1] sm:$0xff]   ;;  %v349_v1 = vld [vmem:[%s483_s1 + $0x8] sm:$0xff]   ;;  %v350_v2 = vld [vmem:[%s483_s1 + $0x10] sm:$0xff]  }
   0x2   :  { %300 = vmatprep.subr.bf16.mxu0 %v348_v0  ;;  %332 = vmatprep.subr.bf16.mxu1 %v348_v0  ;;  %v351_v3 = vld [vmem:[%s483_s1 + $0x18] sm:$0xff]   ;;  %v356_v4 = vld [vmem:[%s484_s0] sm:$0xff]   ;;  %v353_v7 = vld [vmem:[%s483_s1 + $0x28] sm:$0xff]  }
   0x3   :  { %301 = vmatpush3.bf16.msra.mxu0 %v348_v0  ;;  %340 = vmatpush3.bf16.msra.mxu1 %v348_v0  ;;  %v357_v5 = vld [vmem:[%s484_s0 + $0x20] sm:$0xff]   ;;  %v354_v8 = vld [vmem:[%s483_s1 + $0x30] sm:$0xff]   ;;  %v355_v9 = vld [vmem:[%s483_s1 + $0x38] sm:$0xff]  }
   0x4   :  { %302 = vmatprep.subr.bf16.mxu0 %v349_v1  ;;  %333 = vmatprep.subr.bf16.mxu1 %v349_v1  ;;  %v352_v6 = vld [vmem:[%s483_s1 + $0x20] sm:$0xff]   ;;  %v358_v10 = vld [vmem:[%s484_s0 + $0x8] sm:$0xff]   ;;  %v360_v12 = vld [vmem:[%s484_s0 + $0x10] sm:$0xff]  }
   0x5   :  { %316 = vmatprep.mubr.bf16.mxu0 %v356_v4  ;;  %324 = vmatprep.mubr.bf16.mxu1 %v357_v5  ;;  %v359_v11 = vld [vmem:[%s484_s0 + $0x28] sm:$0xff]   ;;  %v361_v13 = vld [vmem:[%s484_s0 + $0x30] sm:$0xff]   ;;  %v362_v14 = vld [vmem:[%s484_s0 + $0x18] sm:$0xff]  }
   0x6   :  { %v363_v15 = vld [vmem:[%s484_s0 + $0x38] sm:$0xff]   ;;  %v267_v16 = vld [vmem:[%s485_s2] ss:$0 sm:$0xff] }
   0x7   :  { %303 = vmatpush3.bf16.msra.mxu0 %v349_v1  ;;  %341 = vmatpush3.bf16.msra.mxu1 %v349_v1 }
   0x8   :  { %304 = vmatprep.subr.bf16.mxu0 %v350_v2  ;;  %334 = vmatprep.subr.bf16.mxu1 %v350_v2 }
   0xb   :  { %305 = vmatpush3.bf16.msra.mxu0 %v350_v2  ;;  %342 = vmatpush3.bf16.msra.mxu1 %v350_v2 }
   0xc   :  { %306 = vmatprep.subr.bf16.mxu0 %v351_v3  ;;  %335 = vmatprep.subr.bf16.mxu1 %v351_v3 }
   0xf   :  { %307 = vmatpush3.bf16.msra.mxu0 %v351_v3  ;;  %343 = vmatpush3.bf16.msra.mxu1 %v351_v3 }
  0x10   :  { %308 = vmatprep.subr.bf16.mxu0 %v352_v6  ;;  %336 = vmatprep.subr.bf16.mxu1 %v352_v6 }
  0x13   :  { %309 = vmatpush3.bf16.msra.mxu0 %v352_v6  ;;  %344 = vmatpush3.bf16.msra.mxu1 %v352_v6 }
  0x14   :  { %310 = vmatprep.subr.bf16.mxu0 %v353_v7  ;;  %337 = vmatprep.subr.bf16.mxu1 %v353_v7 }
  0x17   :  { %311 = vmatpush3.bf16.msra.mxu0 %v353_v7  ;;  %345 = vmatpush3.bf16.msra.mxu1 %v353_v7 }
  0x18   :  { %312 = vmatprep.subr.bf16.mxu0 %v354_v8  ;;  %338 = vmatprep.subr.bf16.mxu1 %v354_v8 }
  0x1b   :  { %313 = vmatpush3.bf16.msra.mxu0 %v354_v8  ;;  %346 = vmatpush3.bf16.msra.mxu1 %v354_v8 }
  0x1c   :  { %314 = vmatprep.subr.bf16.mxu0 %v355_v9  ;;  %339 = vmatprep.subr.bf16.mxu1 %v355_v9 }
  0x1f   :  { %315 = vmatpush3.bf16.msra.mxu0 %v355_v9  ;;  %347 = vmatpush3.bf16.msra.mxu1 %v355_v9 }
  0x22   :  { %317 = vmatmul.mubr.bf16.vlgmr.msra.gmra.mrb[0].mxu0 %v358_v10  ;;  %325 = vmatmul.mubr.bf16.vlgmr.msra.gmra.mrb[0].mxu1 %v359_v11 }
  0x23   :  { %320 = vmatprep.mubr.bf16.mxu0 %v360_v12  ;;  %328 = vmatprep.mubr.bf16.mxu1 %v361_v13 }
  0x2a   :  { %321 = vmatmul.mubr.bf16.gmra.mrb[4].mxu0 %v362_v14  ;;  %329 = vmatmul.mubr.bf16.gmra.mrb[4].mxu1 %v363_v15 }
  0xf5   :  { %v318_v17 = vpop.f32.mrb[0].mxu0  ;;  %v326_v18 = vpop.f32.mrb[0].mxu1 }
  0xf6   :  { %v193_v19 = vadd.f32 %v318_v17, %v267_v16  ;;  %v225_v20 = vadd.f32 %v326_v18, %v267_v16  ;;  %v184_v21 = vpop.f32.mrb[1].mxu0  ;;  %v216_v22 = vpop.f32.mrb[1].mxu1 }
  0xf7   :  { %v185_v23 = vadd.f32 %v267_v16, %v184_v21  ;;  %v217_v24 = vadd.f32 %v267_v16, %v216_v22  ;;  %v319_v25 = vpop.f32.mrb[2].mxu0  ;;  %v327_v26 = vpop.f32.mrb[2].mxu1 }
  0xf8   :  { %249 = vst [vmem:[%s486_s3 + $0x10] sm:$0xff] %v193_v19  ;;  %257 = vst [vmem:[%s486_s3 + $0x50] sm:$0xff] %v225_v20  ;;  %v196_v27 = vadd.f32 %v319_v25, %v267_v16  ;;  %v228_v28 = vadd.f32 %v327_v26, %v267_v16  ;;  %v187_v29 = vpop.f32.mrb[3].mxu0  ;;  %v219_v30 = vpop.f32.mrb[3].mxu1 }
  0xf9   :  { %247 = vst [vmem:[%s486_s3] sm:$0xff] %v185_v23  ;;  %255 = vst [vmem:[%s486_s3 + $0x40] sm:$0xff] %v217_v24  ;;  %v188_v31 = vadd.f32 %v267_v16, %v187_v29  ;;  %v220_v32 = vadd.f32 %v267_v16, %v219_v30 }
  0xfa   :  { %250 = vst [vmem:[%s486_s3 + $0x18] sm:$0xff] %v196_v27  ;;  %258 = vst [vmem:[%s486_s3 + $0x58] sm:$0xff] %v228_v28 }
  0xfb   :  { %248 = vst [vmem:[%s486_s3 + $0x8] sm:$0xff] %v188_v31  ;;  %256 = vst [vmem:[%s486_s3 + $0x48] sm:$0xff] %v220_v32 }
  0xfd   :  { %v322_v33 = vpop.f32.mrb[4].mxu0  ;;  %v330_v34 = vpop.f32.mrb[4].mxu1 }
  0xfe   :  { %v209_v35 = vadd.f32 %v322_v33, %v267_v16  ;;  %v241_v36 = vadd.f32 %v330_v34, %v267_v16  ;;  %v200_v37 = vpop.f32.mrb[5].mxu0  ;;  %v232_v38 = vpop.f32.mrb[5].mxu1 }
  0xff   :  { %v201_v39 = vadd.f32 %v267_v16, %v200_v37  ;;  %v233_v40 = vadd.f32 %v267_v16, %v232_v38  ;;  %v323_v41 = vpop.f32.mrb[6].mxu0  ;;  %v331_v42 = vpop.f32.mrb[6].mxu1 }
 0x100   :  { %253 = vst [vmem:[%s486_s3 + $0x30] sm:$0xff] %v209_v35  ;;  %261 = vst [vmem:[%s486_s3 + $0x70] sm:$0xff] %v241_v36  ;;  %v212_v43 = vadd.f32 %v323_v41, %v267_v16  ;;  %v244_v44 = vadd.f32 %v331_v42, %v267_v16  ;;  %v203_v45 = vpop.f32.mrb[7].mxu0  ;;  %v235_v46 = vpop.f32.mrb[7].mxu1 }
 0x101   :  { %251 = vst [vmem:[%s486_s3 + $0x20] sm:$0xff] %v201_v39  ;;  %259 = vst [vmem:[%s486_s3 + $0x60] sm:$0xff] %v233_v40  ;;  %v204_v47 = vadd.f32 %v267_v16, %v203_v45  ;;  %v236_v48 = vadd.f32 %v267_v16, %v235_v46 }
 0x102   :  { %254 = vst [vmem:[%s486_s3 + $0x38] sm:$0xff] %v212_v43  ;;  %262 = vst [vmem:[%s486_s3 + $0x78] sm:$0xff] %v244_v44 }
 0x103   :  { %252 = vst [vmem:[%s486_s3 + $0x28] sm:$0xff] %v204_v47  ;;  %260 = vst [vmem:[%s486_s3 + $0x68] sm:$0xff] %v236_v48 }

// kernel: forward.4
= control target key start
LH: loop header
LB: loop body
LE: loop exit
PB: predicated region body
PF: predicated region fallthrough
CT: control target
= control target key end

     0   :  { %v4484_v1 = vmov 0   ;;  %s5406_s1 = inlined_call_operand.vmem [shape: bf16[128,512], index: 1, kind: input, shape index: {}]   ;;  %s5407_s0 = inlined_call_operand.vmem [shape: bf16[8,16,128], index: 0, kind: input, shape index: {}]   ;;  %s5408_s2 = inlined_call_operand.vmem [shape: bf16[128,512], index: 2, kind: input, shape index: {}]   ;;  %s5409_s3 = inlined_call_operand.vmem [shape: f32[1,512], index: 3, kind: input, shape index: {}]   ;;  %s5410_s4 = inlined_call_operand.vmem [shape: bf16[8,16,128], index: 4, kind: output, shape index: {}]  }
   0x1   :  { %v4067_v0 = vld [vmem:[%s5406_s1 + $0x4] ss:$16 sps:$4 sm:$0xff]   ;;  %336 = vmatprep.mubr.bf16.mxu0 %v4484_v1  ;;  %449 = vmatprep.mubr.bf16.mxu1 %v4484_v1  ;;  %v4069_v2 = vld [vmem:[%s5406_s1 + $0xc] ss:$16 sps:$4 sm:$0xff]   ;;  %v4071_v3 = vld [vmem:[%s5406_s1] ss:$16 sps:$4 sm:$0xff]  }
   0x2   :  { %304 = vmatprep.subr.bf16.mxu0 %v4067_v0  ;;  %v4072_v4 = vld [vmem:[%s5406_s1 + $0x8] ss:$16 sps:$4 sm:$0xff]   ;;  %417 = vmatprep.subr.bf16.mxu1 %v4069_v2  ;;  %v4073_v5 = vld [vmem:[%s5406_s1 + $0x24] ss:$16 sps:$4 sm:$0xff]   ;;  %v4075_v6 = vld [vmem:[%s5406_s1 + $0x2c] ss:$16 sps:$4 sm:$0xff]  }
   0x3   :  { %305 = vmatpush1.bf16.msra.mxu0 %v4071_v3  ;;  %418 = vmatpush1.bf16.msra.mxu1 %v4072_v4  ;;  %v4077_v7 = vld [vmem:[%s5406_s1 + $0x20] ss:$16 sps:$4 sm:$0xff]   ;;  %v4078_v8 = vld [vmem:[%s5406_s1 + $0x28] ss:$16 sps:$4 sm:$0xff]   ;;  %v4079_v9 = vld [vmem:[%s5406_s1 + $0x44] ss:$16 sps:$4 sm:$0xff]  }
   0x4   :  { %306 = vmatprep.subr.bf16.mxu0 %v4073_v5  ;;  %419 = vmatprep.subr.bf16.mxu1 %v4075_v6  ;;  %v4081_v10 = vld [vmem:[%s5406_s1 + $0x4c] ss:$16 sps:$4 sm:$0xff]   ;;  %v4083_v11 = vld [vmem:[%s5406_s1 + $0x40] ss:$16 sps:$4 sm:$0xff]   ;;  %v4084_v12 = vld [vmem:[%s5406_s1 + $0x48] ss:$16 sps:$4 sm:$0xff]  }
   0x5   :  { %v4085_v13 = vld [vmem:[%s5406_s1 + $0x64] ss:$16 sps:$4 sm:$0xff]   ;;  %v4087_v14 = vld [vmem:[%s5406_s1 + $0x6c] ss:$16 sps:$4 sm:$0xff]   ;;  %v4089_v15 = vld [vmem:[%s5406_s1 + $0x60] ss:$16 sps:$4 sm:$0xff]  }
   0x6   :  { %v4090_v16 = vld [vmem:[%s5406_s1 + $0x68] ss:$16 sps:$4 sm:$0xff]   ;;  %v4091_v17 = vld [vmem:[%s5406_s1 + $0x84] ss:$16 sps:$4 sm:$0xff]   ;;  %v4093_v18 = vld [vmem:[%s5406_s1 + $0x8c] ss:$16 sps:$4 sm:$0xff]  }
   0x7   :  { %307 = vmatpush1.bf16.msra.mxu0 %v4077_v7  ;;  %420 = vmatpush1.bf16.msra.mxu1 %v4078_v8  ;;  %v4095_v19 = vld [vmem:[%s5406_s1 + $0x80] ss:$16 sps:$4 sm:$0xff]   ;;  %v4096_v20 = vld [vmem:[%s5406_s1 + $0x88] ss:$16 sps:$4 sm:$0xff]   ;;  %v4097_v21 = vld [vmem:[%s5406_s1 + $0xa4] ss:$16 sps:$4 sm:$0xff]  }
   0x8   :  { %308 = vmatprep.subr.bf16.mxu0 %v4079_v9  ;;  %421 = vmatprep.subr.bf16.mxu1 %v4081_v10  ;;  %v4099_v22 = vld [vmem:[%s5406_s1 + $0xac] ss:$16 sps:$4 sm:$0xff]   ;;  %v4101_v23 = vld [vmem:[%s5406_s1 + $0xa0] ss:$16 sps:$4 sm:$0xff]   ;;  %v4102_v24 = vld [vmem:[%s5406_s1 + $0xa8] ss:$16 sps:$4 sm:$0xff]  }
   0x9   :  { %v4103_v25 = vld [vmem:[%s5406_s1 + $0xc4] ss:$16 sps:$4 sm:$0xff]   ;;  %v4105_v26 = vld [vmem:[%s5406_s1 + $0xcc] ss:$16 sps:$4 sm:$0xff]   ;;  %v4107_v27 = vld [vmem:[%s5406_s1 + $0xc0] ss:$16 sps:$4 sm:$0xff]  }
   0xa   :  { %v4108_v28 = vld [vmem:[%s5406_s1 + $0xc8] ss:$16 sps:$4 sm:$0xff]   ;;  %v4109_v29 = vld [vmem:[%s5406_s1 + $0xe4] ss:$16 sps:$4 sm:$0xff]   ;;  %v4111_v30 = vld [vmem:[%s5406_s1 + $0xec] ss:$16 sps:$4 sm:$0xff]  }
   0xb   :  { %309 = vmatpush1.bf16.msra.mxu0 %v4083_v11  ;;  %422 = vmatpush1.bf16.msra.mxu1 %v4084_v12  ;;  %v4113_v31 = vld [vmem:[%s5406_s1 + $0xe0] ss:$16 sps:$4 sm:$0xff]   ;;  %v4114_v32 = vld [vmem:[%s5406_s1 + $0xe8] ss:$16 sps:$4 sm:$0xff]   ;;  %v4612_v33 = vld [vmem:[%s5408_s2 + $0x4] ss:$16 sps:$4 sm:$0xff]   ;;  %v76_v11 = vlaneseq }
   0xc   :  { %310 = vmatprep.subr.bf16.mxu0 %v4085_v13  ;;  %423 = vmatprep.subr.bf16.mxu1 %v4087_v14  ;;  %v4617_v34 = vld [vmem:[%s5408_s2 + $0xc] ss:$16 sps:$4 sm:$0xff]   ;;  %v4115_v35 = vld [vmem:[%s5407_s0] sm:$0xff]   ;;  %v4637_v38 = vld [vmem:[%s5408_s2 + $0x8] ss:$16 sps:$4 sm:$0xff]   ;;  %v4485_v10 = vmov 0.0|0.0  }
   0xd   :  { %v4625_v36 = vld [vmem:[%s5408_s2] ss:$16 sps:$4 sm:$0xff]   ;;  %v4631_v37 = vld [vmem:[%s5408_s2 + $0x24] ss:$16 sps:$4 sm:$0xff]   ;;  %v4642_v39 = vld [vmem:[%s5408_s2 + $0x2c] ss:$16 sps:$4 sm:$0xff]  }
   0xe   :  { %v4649_v40 = vld [vmem:[%s5408_s2 + $0x20] ss:$16 sps:$4 sm:$0xff]   ;;  %v4656_v41 = vld [vmem:[%s5408_s2 + $0x44] ss:$16 sps:$4 sm:$0xff]   ;;  %v4662_v42 = vld [vmem:[%s5408_s2 + $0x28] ss:$16 sps:$4 sm:$0xff]  }
   0xf   :  { %311 = vmatpush1.bf16.msra.mxu0 %v4089_v15  ;;  %424 = vmatpush1.bf16.msra.mxu1 %v4090_v16  ;;  %v4119_v43 = vld [vmem:[%s5407_s0 + $0x8] sm:$0xff]   ;;  %v4672_v44 = vld [vmem:[%s5408_s2 + $0x40] ss:$16 sps:$4 sm:$0xff]   ;;  %v4678_v45 = vld [vmem:[%s5408_s2 + $0x64] ss:$16 sps:$4 sm:$0xff]   ;;  %v77_v12 = vshrl.u32 %v76_v11, 7 }
  0x10   :  { %312 = vmatprep.subr.bf16.mxu0 %v4091_v17  ;;  %425 = vmatprep.subr.bf16.mxu1 %v4093_v18  ;;  %v4683_v46 = vld [vmem:[%s5408_s2 + $0x4c] ss:$16 sps:$4 sm:$0xff]   ;;  %v4689_v47 = vld [vmem:[%s5408_s2 + $0x48] ss:$16 sps:$4 sm:$0xff]   ;;  %v4702_v49 = vld [vmem:[%s5408_s2 + $0x60] ss:$16 sps:$4 sm:$0xff]  }
  0x11   :  { %v4694_v48 = vld [vmem:[%s5408_s2 + $0x6c] ss:$16 sps:$4 sm:$0xff]   ;;  %v4708_v50 = vld [vmem:[%s5408_s2 + $0x84] ss:$16 sps:$4 sm:$0xff]   ;;  %v4715_v51 = vld [vmem:[%s5408_s2 + $0x68] ss:$16 sps:$4 sm:$0xff]  }
  0x12   :  { %v4126_v52 = vld [vmem:[%s5407_s0 + $0x10] sm:$0xff]   ;;  %v4730_v54 = vld [vmem:[%s5408_s2 + $0x8c] ss:$16 sps:$4 sm:$0xff]   ;;  %v4742_v56 = vld [vmem:[%s5408_s2 + $0x88] ss:$16 sps:$4 sm:$0xff]   ;;  %v78_v13 = vsub.s32 0, %v77_v12 }
  0x13   :  { %313 = vmatpush1.bf16.msra.mxu0 %v4095_v19  ;;  %426 = vmatpush1.bf16.msra.mxu1 %v4096_v20  ;;  %v4724_v53 = vld [vmem:[%s5408_s2 + $0x80] ss:$16 sps:$4 sm:$0xff]   ;;  %v4736_v55 = vld [vmem:[%s5408_s2 + $0xa4] ss:$16 sps:$4 sm:$0xff]   ;;  %v4747_v57 = vld [vmem:[%s5408_s2 + $0xac] ss:$16 sps:$4 sm:$0xff]  }
  0x14   :  { %314 = vmatprep.subr.bf16.mxu0 %v4097_v21  ;;  %427 = vmatprep.subr.bf16.mxu1 %v4099_v22  ;;  %v4752_v58 = vld [vmem:[%s5408_s2 + $0xa0] ss:$16 sps:$4 sm:$0xff]   ;;  %v4759_v59 = vld [vmem:[%s5408_s2 + $0xc4] ss:$16 sps:$4 sm:$0xff]   ;;  %v4764_v60 = vld [vmem:[%s5408_s2 + $0xa8] ss:$16 sps:$4 sm:$0xff]  }
  0x15   :  { %v4133_v61 = vld [vmem:[%s5407_s0 + $0x18] sm:$0xff]   ;;  %v4776_v62 = vld [vmem:[%s5408_s2 + $0xc0] ss:$16 sps:$4 sm:$0xff]   ;;  %v4787_v0 = vld [vmem:[%s5408_s2 + $0xe4] ss:$16 sps:$4 sm:$0xff]   ;;  %v82_v15 = vsub.s32 1, %v77_v12 }
  0x16   :  { %v4782_v63 = vld [vmem:[%s5408_s2 + $0xcc] ss:$16 sps:$4 sm:$0xff]   ;;  %v4792_v2 = vld [vmem:[%s5408_s2 + $0xc8] ss:$16 sps:$4 sm:$0xff]   ;;  %v4805_v4 = vld [vmem:[%s5408_s2 + $0xe0] ss:$16 sps:$4 sm:$0xff]  }
  0x17   :  { %315 = vmatpush1.bf16.msra.mxu0 %v4101_v23  ;;  %428 = vmatpush1.bf16.msra.mxu1 %v4102_v24  ;;  %v4798_v3 = vld [vmem:[%s5408_s2 + $0xec] ss:$16 sps:$4 sm:$0xff]   ;;  %v4812_v5 = vld [vmem:[%s5408_s2 + $0xe8] ss:$16 sps:$4 sm:$0xff]   ;;  %v4140_v6 = vld [vmem:[%s5407_s0 + $0x20] sm:$0xff]   ;;  %v90_v20 = vsub.s32 3, %v77_v12 }
  0x18   :  { %316 = vmatprep.subr.bf16.mxu0 %v4103_v25  ;;  %429 = vmatprep.subr.bf16.mxu1 %v4105_v26  ;;  %v4147_v7 = vld [vmem:[%s5407_s0 + $0x28] sm:$0xff]   ;;  %v4154_v8 = vld [vmem:[%s5407_s0 + $0x30] sm:$0xff]   ;;  %v4161_v9 = vld [vmem:[%s5407_s0 + $0x38] sm:$0xff]  }
  0x19   :  { %v74_v14 = vld [vmem:[%s5409_s3] sm:$0xf] }
  0x1a   :  { %v4880_v16 = vrot.slane %v74_v14, %v78_v13  ;;  %v4882_v17 = vrot.slane %v74_v14, %v82_v15 }
  0x1b   :  { %317 = vmatpush1.bf16.msra.mxu0 %v4107_v27  ;;  %430 = vmatpush1.bf16.msra.mxu1 %v4108_v28  ;;  %v86_v28 = vsub.s32 2, %v77_v12 }
  0x1c   :  { %318 = vmatprep.subr.bf16.mxu0 %v4109_v29  ;;  %431 = vmatprep.subr.bf16.mxu1 %v4111_v30 }
  0x1f   :  { %319 = vmatpush1.bf16.msra.mxu0 %v4113_v31  ;;  %432 = vmatpush1.bf16.msra.mxu1 %v4114_v32 }
  0x20   :  { %799 = vmatprep.subr.bf16.mxu0 %v4612_v33  ;;  %842 = vmatprep.subr.bf16.mxu1 %v4617_v34 }
  0x22   :  { %337 = vmatmul.mubr.bf16.vlgmr.msra.gmra.mrb[0].mxu0 %v4115_v35  ;;  %450 = vmatmul.mubr.bf16.vlgmr.msra.gmra.mrb[0].mxu1 %v4115_v35 }
  0x23   :  { %800 = vmatpush1.bf16.msra.mxu0 %v4625_v36  ;;  %346 = vmatprep.mubr.bf16.mxu0 %v4484_v1 }
  0x24   :  { %459 = vmatprep.mubr.bf16.mxu1 %v4484_v1  ;;  %801 = vmatprep.subr.bf16.mxu0 %v4631_v37 }
  0x25   :  { %843 = vmatpush1.bf16.msra.mxu1 %v4637_v38 }
  0x26   :  { %844 = vmatprep.subr.bf16.mxu1 %v4642_v39 }
  0x27   :  { %802 = vmatpush1.bf16.msra.mxu0 %v4649_v40 }
  0x28   :  { %803 = vmatprep.subr.bf16.mxu0 %v4656_v41 }
  0x29   :  { %845 = vmatpush1.bf16.msra.mxu1 %v4662_v42 }
  0x2a   :  { %347 = vmatmul.mubr.bf16.gmra.mrb[4].mxu0 %v4119_v43  ;;  %460 = vmatmul.mubr.bf16.gmra.mrb[4].mxu1 %v4119_v43 }
  0x2b   :  { %356 = vmatprep.mubr.bf16.mxu0 %v4484_v1  ;;  %469 = vmatprep.mubr.bf16.mxu1 %v4484_v1 }
  0x2c   :  { %804 = vmatpush1.bf16.msra.mxu0 %v4672_v44  ;;  %846 = vmatprep.subr.bf16.mxu1 %v4683_v46 }
  0x2d   :  { %805 = vmatprep.subr.bf16.mxu0 %v4678_v45  ;;  %847 = vmatpush1.bf16.msra.mxu1 %v4689_v47 }
  0x2e   :  { %848 = vmatprep.subr.bf16.mxu1 %v4694_v48 }
  0x30   :  { %806 = vmatpush1.bf16.msra.mxu0 %v4702_v49 }
  0x31   :  { %807 = vmatprep.subr.bf16.mxu0 %v4708_v50  ;;  %849 = vmatpush1.bf16.msra.mxu1 %v4715_v51 }
  0x32   :  { %357 = vmatmul.mubr.bf16.gmra.mrb[8].mxu0 %v4126_v52  ;;  %470 = vmatmul.mubr.bf16.gmra.mrb[8].mxu1 %v4126_v52 }
  0x33   :  { %366 = vmatprep.mubr.bf16.mxu0 %v4484_v1  ;;  %479 = vmatprep.mubr.bf16.mxu1 %v4484_v1 }
  0x34   :  { %808 = vmatpush1.bf16.msra.mxu0 %v4724_v53  ;;  %850 = vmatprep.subr.bf16.mxu1 %v4730_v54 }
  0x35   :  { %809 = vmatprep.subr.bf16.mxu0 %v4736_v55  ;;  %851 = vmatpush1.bf16.msra.mxu1 %v4742_v56 }
  0x36   :  { %852 = vmatprep.subr.bf16.mxu1 %v4747_v57 }
  0x38   :  { %810 = vmatpush1.bf16.msra.mxu0 %v4752_v58 }
  0x39   :  { %811 = vmatprep.subr.bf16.mxu0 %v4759_v59  ;;  %853 = vmatpush1.bf16.msra.mxu1 %v4764_v60 }
  0x3a   :  { %367 = vmatmul.mubr.bf16.gmra.mrb[12].mxu0 %v4133_v61  ;;  %480 = vmatmul.mubr.bf16.gmra.mrb[12].mxu1 %v4133_v61  ;;  %v4890_v61 = vrot.slane %v74_v14, %v86_v28 }
  0x3b   :  { %376 = vmatprep.mubr.bf16.mxu0 %v4484_v1  ;;  %489 = vmatprep.mubr.bf16.mxu1 %v4484_v1 }
  0x3c   :  { %812 = vmatpush1.bf16.msra.mxu0 %v4776_v62  ;;  %854 = vmatprep.subr.bf16.mxu1 %v4782_v63 }
  0x3d   :  { %813 = vmatprep.subr.bf16.mxu0 %v4787_v0  ;;  %855 = vmatpush1.bf16.msra.mxu1 %v4792_v2 }
  0x3e   :  { %856 = vmatprep.subr.bf16.mxu1 %v4798_v3 }
  0x40   :  { %814 = vmatpush1.bf16.msra.mxu0 %v4805_v4 }
  0x41   :  { %857 = vmatpush1.bf16.msra.mxu1 %v4812_v5  ;;  %1161 = vmatprep.subr.bf16.mxu0 %v4612_v33 }
  0x42   :  { %377 = vmatmul.mubr.bf16.gmra.mrb[16].mxu0 %v4140_v6  ;;  %490 = vmatmul.mubr.bf16.gmra.mrb[16].mxu1 %v4140_v6 }
  0x43   :  { %386 = vmatprep.mubr.bf16.mxu0 %v4484_v1  ;;  %499 = vmatprep.mubr.bf16.mxu1 %v4484_v1 }
  0x44   :  { %1204 = vmatprep.subr.bf16.mxu1 %v4617_v34 }
  0x4a   :  { %387 = vmatmul.mubr.bf16.gmra.mrb[20].mxu0 %v4147_v7  ;;  %500 = vmatmul.mubr.bf16.gmra.mrb[20].mxu1 %v4147_v7 }
  0x4b   :  { %396 = vmatprep.mubr.bf16.mxu0 %v4484_v1  ;;  %509 = vmatprep.mubr.bf16.mxu1 %v4484_v1 }
  0x52   :  { %397 = vmatmul.mubr.bf16.gmra.mrb[24].mxu0 %v4154_v8  ;;  %510 = vmatmul.mubr.bf16.gmra.mrb[24].mxu1 %v4154_v8 }
  0x53   :  { %406 = vmatprep.mubr.bf16.mxu0 %v4484_v1  ;;  %519 = vmatprep.mubr.bf16.mxu1 %v4484_v1 }
  0x5a   :  { %407 = vmatmul.mubr.bf16.gmra.mrb[28].mxu0 %v4161_v9  ;;  %520 = vmatmul.mubr.bf16.gmra.mrb[28].mxu1 %v4161_v9 }
  0x5b   :  { %831 = vmatprep.mubr.bf16.mxu0 %v4484_v1  ;;  %874 = vmatprep.mubr.bf16.mxu1 %v4484_v1 }
  0x62   :  { %832 = vmatmul.mubr.bf16.vlgmr.msra.gmra.mrb[0].mxu0 %v4485_v10  ;;  %875 = vmatmul.mubr.bf16.vlgmr.msra.gmra.mrb[0].mxu1 %v4485_v10 }
  0x63   :  { %1162 = vmatpush1.bf16.msra.mxu0 %v4625_v36  ;;  %1205 = vmatpush1.bf16.msra.mxu1 %v4637_v38 }
  0x64   :  { %1163 = vmatprep.subr.bf16.mxu0 %v4631_v37  ;;  %1206 = vmatprep.subr.bf16.mxu1 %v4642_v39 }
  0x65   :  { %1193 = vmatprep.mubr.bf16.mxu0 %v4484_v1  ;;  %1236 = vmatprep.mubr.bf16.mxu1 %v4484_v1 }
  0x67   :  { %1164 = vmatpush1.bf16.msra.mxu0 %v4649_v40  ;;  %1207 = vmatpush1.bf16.msra.mxu1 %v4662_v42 }
  0x68   :  { %1165 = vmatprep.subr.bf16.mxu0 %v4656_v41  ;;  %1208 = vmatprep.subr.bf16.mxu1 %v4683_v46 }
  0x6b   :  { %1166 = vmatpush1.bf16.msra.mxu0 %v4672_v44  ;;  %1209 = vmatpush1.bf16.msra.mxu1 %v4689_v47 }
  0x6c   :  { %1167 = vmatprep.subr.bf16.mxu0 %v4678_v45  ;;  %1210 = vmatprep.subr.bf16.mxu1 %v4694_v48 }
  0x6f   :  { %1168 = vmatpush1.bf16.msra.mxu0 %v4702_v49  ;;  %1211 = vmatpush1.bf16.msra.mxu1 %v4715_v51 }
  0x70   :  { %1169 = vmatprep.subr.bf16.mxu0 %v4708_v50  ;;  %1212 = vmatprep.subr.bf16.mxu1 %v4730_v54 }
  0x73   :  { %1170 = vmatpush1.bf16.msra.mxu0 %v4724_v53  ;;  %1213 = vmatpush1.bf16.msra.mxu1 %v4742_v56 }
  0x74   :  { %1171 = vmatprep.subr.bf16.mxu0 %v4736_v55  ;;  %1214 = vmatprep.subr.bf16.mxu1 %v4747_v57 }
  0x77   :  { %1172 = vmatpush1.bf16.msra.mxu0 %v4752_v58  ;;  %1215 = vmatpush1.bf16.msra.mxu1 %v4764_v60 }
  0x78   :  { %1173 = vmatprep.subr.bf16.mxu0 %v4759_v59  ;;  %1216 = vmatprep.subr.bf16.mxu1 %v4782_v63 }
  0x7b   :  { %1174 = vmatpush1.bf16.msra.mxu0 %v4776_v62  ;;  %1217 = vmatpush1.bf16.msra.mxu1 %v4792_v2 }
  0x7c   :  { %1175 = vmatprep.subr.bf16.mxu0 %v4787_v0  ;;  %1218 = vmatprep.subr.bf16.mxu1 %v4798_v3 }
  0x7f   :  { %1176 = vmatpush1.bf16.msra.mxu0 %v4805_v4  ;;  %1219 = vmatpush1.bf16.msra.mxu1 %v4812_v5 }
  0x80   :  { %1524 = vmatprep.subr.bf16.mxu0 %v4612_v33  ;;  %1567 = vmatprep.subr.bf16.mxu1 %v4617_v34  ;;  %v4887_v33 = vrot.slane %v74_v14, %v90_v20 }
 0x135   :  { %v833_v18 = vpop.f32.mrb[0].mxu0  ;;  %v876_v19 = vpop.f32.mrb[0].mxu1 }
 0x136   :  { %v3937_v21 = vadd.f32 %v833_v18, %v4880_v16  ;;  %v835_v22 = vpop.f32.mrb[1].mxu0  ;;  %v878_v23 = vpop.f32.mrb[1].mxu1  ;;  %v3969_v7 = vadd.f32 %v876_v19, %v4890_v61 }
 0x137   :  { %v3938_v24 = vadd.f32 %v835_v22, %v4882_v17  ;;  %v837_v25 = vpop.f32.mrb[2].mxu0  ;;  %v880_v26 = vpop.f32.mrb[2].mxu1  ;;  %v3970_v6 = vadd.f32 %v878_v23, %v4887_v33 }
 0x138   :  { %v3572_v27 = vmul.f32 -1.442695, %v3937_v21  ;;  %v3939_v29 = vadd.f32 %v837_v25, %v4880_v16  ;;  %v839_v30 = vpop.f32.mrb[3].mxu0  ;;  %v882_v31 = vpop.f32.mrb[3].mxu1  ;;  %v3971_v10 = vadd.f32 %v880_v26, %v4890_v61 }
 0x139   :  { %v3574_v32 = vmul.f32 -1.442695, %v3938_v24  ;;  %v3940_v35 = vadd.f32 %v839_v30, %v4882_v17  ;;  %v3576_v8 = vmul.f32 -1.442695, %v3970_v6  ;;  %v3972_v9 = vadd.f32 %v882_v31, %v4887_v33 }
 0x13a   :  { %4228 = vpow2.f32 %v3572_v27  ;;  %v3573_v43 = vmul.f32 -1.442695, %v3939_v29 }
 0x13b   :  { %4230 = vpow2.f32 %v3574_v32  ;;  %v3575_v52 = vmul.f32 -1.442695, %v3940_v35  ;;  %v3577_v15 = vmul.f32 -1.442695, %v3972_v9 }
 0x13c   :  { %4232 = vpow2.f32 %v3573_v43 }
 0x13d   :  { %4234 = vpow2.f32 %v3575_v52 }
 0x13e   :  { %4236 = vtanh.f32 %v3969_v7 }
 0x13f   :  { %4238 = vpow2.f32 %v3576_v8 }
 0x140   :  { %4240 = vtanh.f32 %v3971_v10 }
 0x144   :  { %v4229_v11 = vpop.eup %4228 }
 0x145   :  { %v4231_v12 = vpop.eup %4230  ;;  %v899_v13 = vadd.f32 1.0, %v4229_v11 }
 0x146   :  { %v911_v18 = vadd.f32 1.0, %v4231_v12  ;;  %v4233_v14 = vpop.eup %4232 }
 0x147   :  { %4242 = vrcp.f32 %v899_v13  ;;  %v900_v20 = vadd.f32 1.0, %v4233_v14  ;;  %v4235_v21 = vpop.eup %4234 }
 0x148   :  { %4244 = vrcp.f32 %v911_v18  ;;  %v912_v19 = vadd.f32 1.0, %v4235_v21  ;;  %v4237_v22 = vpop.eup %4236 }
 0x149   :  { %4246 = vpow2.f32 %v3577_v15  ;;  %v4239_v23 = vpop.eup %4238 }
 0x14a   :  { %4248 = vrcp.f32 %v900_v20  ;;  %v4241_v24 = vpop.eup %4240  ;;  %v925_v31 = vadd.f32 1.0, %v4239_v23 }
 0x14b   :  { %4250 = vrcp.f32 %v912_v19 }
 0x14c   :  { %4252 = vrcp.f32 %v925_v31 }
 0x151   :  { %v4243_v25 = vpop.eup %4242 }
 0x152   :  { %v4245_v26 = vpop.eup %4244  ;;  %v933_v27 = vmul.f32 %v4243_v25, %v4237_v22 }
 0x153   :  { %v4247_v28 = vpop.eup %4246  ;;  %v931_v29 = vmul.f32 0.0, %v4245_v26 }
 0x154   :  { %v4249_v30 = vpop.eup %4248  ;;  %v926_v52 = vadd.f32 1.0, %v4247_v28 }
 0x155   :  { %v4896_v32 = vadd.f32 %v933_v27, %v931_v29  ;;  %v934_v35 = vmul.f32 %v4249_v30, %v4241_v24  ;;  %v4251_v43 = vpop.eup %4250 }
 0x156   :  { %v932_v6 = vmul.f32 0.0, %v4251_v43  ;;  %v4253_v8 = vpop.eup %4252 }
 0x157   :  { %4254 = vtanh.f32 %v4896_v32 }
 0x158   :  { %v4899_v7 = vadd.f32 %v934_v35, %v932_v6  ;;  %4256 = vrcp.f32 %v926_v52 }
 0x15a   :  { %4258 = vtanh.f32 %v4899_v7 }
 0x161   :  { %v4255_v9 = vpop.eup %4254 }
 0x162   :  { %v4257_v10 = vpop.eup %4256  ;;  %v939_v12 = vmul.f32 %v4255_v9, %v4253_v8 }
 0x164   :  { %v4259_v11 = vpop.eup %4258 }
 0x165   :  { %v940_v13 = vmul.f32 %v4259_v11, %v4257_v10 }
 0x167   :  { %v3893_v15 = vpack.c.bf16 %v940_v13, %v939_v12 }
 0x169   :  { %3894 = vst [vmem:[%s5410_s4] sm:$0xff] %v3893_v15   ;;  %1194 = vmatmul.mubr.bf16.vlgmr.msra.gmra.mrb[4].mxu0 %v3893_v15  ;;  %1237 = vmatmul.mubr.bf16.vlgmr.msra.gmra.mrb[4].mxu1 %v3893_v15 }
 0x16a   :  { %1525 = vmatpush1.bf16.msra.mxu0 %v4625_v36  ;;  %1568 = vmatpush1.bf16.msra.mxu1 %v4637_v38 }
 0x16b   :  { %1526 = vmatprep.subr.bf16.mxu0 %v4631_v37  ;;  %1569 = vmatprep.subr.bf16.mxu1 %v4642_v39 }
 0x16c   :  { %1556 = vmatprep.mubr.bf16.mxu0 %v4484_v1  ;;  %1599 = vmatprep.mubr.bf16.mxu1 %v4484_v1 }
 0x16e   :  { %1527 = vmatpush1.bf16.msra.mxu0 %v4649_v40  ;;  %1570 = vmatpush1.bf16.msra.mxu1 %v4662_v42 }
 0x16f   :  { %1528 = vmatprep.subr.bf16.mxu0 %v4656_v41  ;;  %1571 = vmatprep.subr.bf16.mxu1 %v4683_v46 }
 0x172   :  { %1529 = vmatpush1.bf16.msra.mxu0 %v4672_v44  ;;  %1572 = vmatpush1.bf16.msra.mxu1 %v4689_v47 }
 0x173   :  { %1530 = vmatprep.subr.bf16.mxu0 %v4678_v45  ;;  %1573 = vmatprep.subr.bf16.mxu1 %v4694_v48 }
 0x176   :  { %1531 = vmatpush1.bf16.msra.mxu0 %v4702_v49  ;;  %1574 = vmatpush1.bf16.msra.mxu1 %v4715_v51 }
 0x177   :  { %1532 = vmatprep.subr.bf16.mxu0 %v4708_v50  ;;  %1575 = vmatprep.subr.bf16.mxu1 %v4730_v54 }
 0x17a   :  { %1533 = vmatpush1.bf16.msra.mxu0 %v4724_v53  ;;  %1576 = vmatpush1.bf16.msra.mxu1 %v4742_v56 }
 0x17b   :  { %1534 = vmatprep.subr.bf16.mxu0 %v4736_v55  ;;  %1577 = vmatprep.subr.bf16.mxu1 %v4747_v57 }
 0x17e   :  { %1535 = vmatpush1.bf16.msra.mxu0 %v4752_v58  ;;  %1578 = vmatpush1.bf16.msra.mxu1 %v4764_v60 }
 0x17f   :  { %1536 = vmatprep.subr.bf16.mxu0 %v4759_v59  ;;  %1579 = vmatprep.subr.bf16.mxu1 %v4782_v63 }
 0x182   :  { %1537 = vmatpush1.bf16.msra.mxu0 %v4776_v62  ;;  %1580 = vmatpush1.bf16.msra.mxu1 %v4792_v2 }
 0x183   :  { %1538 = vmatprep.subr.bf16.mxu0 %v4787_v0  ;;  %1581 = vmatprep.subr.bf16.mxu1 %v4798_v3 }
 0x186   :  { %1539 = vmatpush1.bf16.msra.mxu0 %v4805_v4  ;;  %1582 = vmatpush1.bf16.msra.mxu1 %v4812_v5 }
 0x187   :  { %1930 = vmatprep.subr.bf16.mxu1 %v4617_v34 }
 0x23c   :  { %v1195_v36 = vpop.f32.mrb[4].mxu0  ;;  %v1238_v37 = vpop.f32.mrb[4].mxu1 }
 0x23d   :  { %v3941_v40 = vadd.f32 %v1195_v36, %v4880_v16  ;;  %v1197_v41 = vpop.f32.mrb[5].mxu0  ;;  %v1240_v44 = vpop.f32.mrb[5].mxu1  ;;  %v3973_v28 = vadd.f32 %v1238_v37, %v4890_v61 }
 0x23e   :  { %v3942_v18 = vadd.f32 %v1197_v41, %v4882_v17  ;;  %v1199_v14 = vpop.f32.mrb[6].mxu0  ;;  %v1242_v20 = vpop.f32.mrb[6].mxu1  ;;  %v3974_v27 = vadd.f32 %v1240_v44, %v4887_v33 }
 0x23f   :  { %v3612_v21 = vmul.f32 -1.442695, %v3941_v40  ;;  %v3943_v19 = vadd.f32 %v1199_v14, %v4880_v16  ;;  %v1201_v22 = vpop.f32.mrb[7].mxu0  ;;  %v1244_v23 = vpop.f32.mrb[7].mxu1  ;;  %v3975_v31 = vadd.f32 %v1242_v20, %v4890_v61 }
 0x240   :  { %v3614_v24 = vmul.f32 -1.442695, %v3942_v18  ;;  %v3944_v25 = vadd.f32 %v1201_v22, %v4882_v17  ;;  %v3616_v29 = vmul.f32 -1.442695, %v3974_v27  ;;  %v3976_v30 = vadd.f32 %v1244_v23, %v4887_v33 }
 0x241   :  { %4260 = vpow2.f32 %v3612_v21  ;;  %v3613_v34 = vmul.f32 -1.442695, %v3943_v19 }
 0x242   :  { %4262 = vpow2.f32 %v3614_v24  ;;  %v3615_v26 = vmul.f32 -1.442695, %v3944_v25  ;;  %v3617_v6 = vmul.f32 -1.442695, %v3976_v30 }
 0x243   :  { %4264 = vpow2.f32 %v3613_v34 }
 0x244   :  { %4266 = vpow2.f32 %v3615_v26 }
 0x245   :  { %4268 = vtanh.f32 %v3973_v28 }
 0x246   :  { %4270 = vpow2.f32 %v3616_v29 }
 0x247   :  { %4272 = vtanh.f32 %v3975_v31 }
 0x24b   :  { %v4261_v35 = vpop.eup %4260 }
 0x24c   :  { %v4263_v43 = vpop.eup %4262  ;;  %v1261_v52 = vadd.f32 1.0, %v4261_v35 }
 0x24d   :  { %v1273_v8 = vadd.f32 1.0, %v4263_v43  ;;  %v4265_v9 = vpop.eup %4264 }
 0x24e   :  { %4274 = vrcp.f32 %v1261_v52  ;;  %v1262_v10 = vadd.f32 1.0, %v4265_v9  ;;  %v4267_v11 = vpop.eup %4266 }
 0x24f   :  { %4276 = vrcp.f32 %v1273_v8  ;;  %v1274_v12 = vadd.f32 1.0, %v4267_v11  ;;  %v4269_v13 = vpop.eup %4268 }
 0x250   :  { %4278 = vpow2.f32 %v3617_v6  ;;  %v4271_v15 = vpop.eup %4270 }
 0x251   :  { %4280 = vrcp.f32 %v1262_v10  ;;  %v4273_v36 = vpop.eup %4272  ;;  %v1287_v20 = vadd.f32 1.0, %v4271_v15 }
 0x252   :  { %4282 = vrcp.f32 %v1274_v12 }
 0x253   :  { %4284 = vrcp.f32 %v1287_v20 }
 0x258   :  { %v4275_v37 = vpop.eup %4274 }
 0x259   :  { %v4277_v40 = vpop.eup %4276  ;;  %v1295_v41 = vmul.f32 %v4275_v37, %v4269_v13 }
 0x25a   :  { %v4279_v44 = vpop.eup %4278  ;;  %v1293_v18 = vmul.f32 %v4277_v40, %v4896_v32 }
 0x25b   :  { %v4281_v14 = vpop.eup %4280  ;;  %v1288_v23 = vadd.f32 1.0, %v4279_v44 }
 0x25c   :  { %v4947_v21 = vadd.f32 %v1295_v41, %v1293_v18  ;;  %v1296_v19 = vmul.f32 %v4281_v14, %v4273_v36  ;;  %v4283_v22 = vpop.eup %4282 }
 0x25d   :  { %v1294_v24 = vmul.f32 %v4283_v22, %v4899_v7  ;;  %v4285_v34 = vpop.eup %4284 }
 0x25e   :  { %4286 = vtanh.f32 %v4947_v21 }
 0x25f   :  { %v4951_v25 = vadd.f32 %v1296_v19, %v1294_v24  ;;  %4288 = vrcp.f32 %v1288_v23 }
 0x261   :  { %4290 = vtanh.f32 %v4951_v25 }
 0x268   :  { %v4287_v26 = vpop.eup %4286 }
 0x269   :  { %v4289_v32 = vpop.eup %4288  ;;  %v1301_v28 = vmul.f32 %v4287_v26, %v4285_v34 }
 0x26b   :  { %v4291_v27 = vpop.eup %4290 }
 0x26c   :  { %v1302_v29 = vmul.f32 %v4291_v27, %v4289_v32 }
 0x26e   :  { %v3898_v30 = vpack.c.bf16 %v1302_v29, %v1301_v28 }
 0x270   :  { %3930 = vst [vmem:[%s5410_s4 + $0x8] sm:$0xff] %v3898_v30   ;;  %1557 = vmatmul.mubr.bf16.vlgmr.msra.gmra.mrb[8].mxu0 %v3898_v30  ;;  %1600 = vmatmul.mubr.bf16.vlgmr.msra.gmra.mrb[8].mxu1 %v3898_v30 }
 0x271   :  { %1931 = vmatpush1.bf16.msra.mxu1 %v4637_v38  ;;  %1919 = vmatprep.mubr.bf16.mxu0 %v4484_v1  ;;  %v4977_v38 = vld [vmem:[%s5408_s2 + $0x4] ss:$16 sps:$4 sm:$0xff]  }
 0x272   :  { %1932 = vmatprep.subr.bf16.mxu1 %v4642_v39  ;;  %1962 = vmatprep.mubr.bf16.mxu1 %v4484_v1  ;;  %v4982_v39 = vld [vmem:[%s5408_s2] ss:$16 sps:$4 sm:$0xff]  }
 0x273   :  { %1887 = vmatprep.subr.bf16.mxu0 %v4977_v38 }
 0x274   :  { %1888 = vmatpush1.bf16.msra.mxu0 %v4982_v39 }
 0x275   :  { %1933 = vmatpush1.bf16.msra.mxu1 %v4662_v42  ;;  %v4989_v42 = vld [vmem:[%s5408_s2 + $0x24] ss:$16 sps:$4 sm:$0xff]  }
 0x276   :  { %1934 = vmatprep.subr.bf16.mxu1 %v4683_v46  ;;  %v4994_v46 = vld [vmem:[%s5408_s2 + $0x20] ss:$16 sps:$4 sm:$0xff]   ;;  %1889 = vmatprep.subr.bf16.mxu0 %v4989_v42 }
 0x278   :  { %1890 = vmatpush1.bf16.msra.mxu0 %v4994_v46 }
 0x279   :  { %1935 = vmatpush1.bf16.msra.mxu1 %v4689_v47  ;;  %v5001_v47 = vld [vmem:[%s5408_s2 + $0x44] ss:$16 sps:$4 sm:$0xff]  }
 0x27a   :  { %1936 = vmatprep.subr.bf16.mxu1 %v4694_v48  ;;  %v5006_v48 = vld [vmem:[%s5408_s2 + $0x40] ss:$16 sps:$4 sm:$0xff]   ;;  %1891 = vmatprep.subr.bf16.mxu0 %v5001_v47 }
 0x27c   :  { %1892 = vmatpush1.bf16.msra.mxu0 %v5006_v48 }
 0x27d   :  { %1937 = vmatpush1.bf16.msra.mxu1 %v4715_v51  ;;  %1893 = vmatprep.subr.bf16.mxu0 %v4678_v45 }
 0x27e   :  { %1938 = vmatprep.subr.bf16.mxu1 %v4730_v54 }
 0x280   :  { %1894 = vmatpush1.bf16.msra.mxu0 %v4702_v49 }
 0x281   :  { %1939 = vmatpush1.bf16.msra.mxu1 %v4742_v56  ;;  %1895 = vmatprep.subr.bf16.mxu0 %v4708_v50 }
 0x282   :  { %1940 = vmatprep.subr.bf16.mxu1 %v4747_v57 }
 0x284   :  { %1896 = vmatpush1.bf16.msra.mxu0 %v4724_v53 }
 0x285   :  { %1941 = vmatpush1.bf16.msra.mxu1 %v4764_v60  ;;  %1897 = vmatprep.subr.bf16.mxu0 %v4736_v55 }
 0x286   :  { %1942 = vmatprep.subr.bf16.mxu1 %v4782_v63 }
 0x288   :  { %1898 = vmatpush1.bf16.msra.mxu0 %v4752_v58 }
 0x289   :  { %1943 = vmatpush1.bf16.msra.mxu1 %v4792_v2  ;;  %1899 = vmatprep.subr.bf16.mxu0 %v4759_v59 }
 0x28a   :  { %1944 = vmatprep.subr.bf16.mxu1 %v4798_v3 }
 0x28c   :  { %1900 = vmatpush1.bf16.msra.mxu0 %v4776_v62 }
 0x28d   :  { %1945 = vmatpush1.bf16.msra.mxu1 %v4812_v5  ;;  %1901 = vmatprep.subr.bf16.mxu0 %v4787_v0 }
 0x290   :  { %1902 = vmatpush1.bf16.msra.mxu0 %v4805_v4 }
 0x291   :  { %2250 = vmatprep.subr.bf16.mxu0 %v4977_v38 }
 0x343   :  { %v1558_v45 = vpop.f32.mrb[8].mxu0  ;;  %v1601_v49 = vpop.f32.mrb[8].mxu1 }
 0x344   :  { %v3945_v50 = vadd.f32 %v1558_v45, %v4880_v16  ;;  %v1560_v51 = vpop.f32.mrb[9].mxu0  ;;  %v1603_v53 = vpop.f32.mrb[9].mxu1  ;;  %v3977_v4 = vadd.f32 %v1601_v49, %v4890_v61  ;;  %v5055_v49 = vld [vmem:[%s5408_s2 + $0x8] ss:$16 sps:$4 sm:$0xff]  }
 0x345   :  { %v3946_v54 = vadd.f32 %v1560_v51, %v4882_v17  ;;  %v1562_v55 = vpop.f32.mrb[10].mxu0  ;;  %v1605_v56 = vpop.f32.mrb[10].mxu1  ;;  %v3978_v3 = vadd.f32 %v1603_v53, %v4887_v33  ;;  %v5067_v51 = vld [vmem:[%s5408_s2 + $0x28] ss:$16 sps:$4 sm:$0xff]   ;;  %v5074_v53 = vld [vmem:[%s5408_s2 + $0x4c] ss:$16 sps:$4 sm:$0xff]  }
 0x346   :  { %v3654_v57 = vmul.f32 -1.442695, %v3945_v50  ;;  %v3947_v58 = vadd.f32 %v1562_v55, %v4880_v16  ;;  %v1564_v59 = vpop.f32.mrb[11].mxu0  ;;  %v1607_v60 = vpop.f32.mrb[11].mxu1  ;;  %v3979_v31 = vadd.f32 %v1605_v56, %v4890_v61  ;;  %v5062_v50 = vld [vmem:[%s5408_s2 + $0x2c] ss:$16 sps:$4 sm:$0xff]  }
 0x347   :  { %v3656_v62 = vmul.f32 -1.442695, %v3946_v54  ;;  %v3948_v63 = vadd.f32 %v1564_v59, %v4882_v17  ;;  %v3658_v5 = vmul.f32 -1.442695, %v3978_v3  ;;  %v3980_v7 = vadd.f32 %v1607_v60, %v4887_v33  ;;  %v5079_v54 = vld [vmem:[%s5408_s2 + $0x48] ss:$16 sps:$4 sm:$0xff]  }
 0x348   :  { %4292 = vpow2.f32 %v3654_v57  ;;  %v3655_v0 = vmul.f32 -1.442695, %v3947_v58  ;;  %v5086_v55 = vld [vmem:[%s5408_s2 + $0x64] ss:$16 sps:$4 sm:$0xff]   ;;  %v5091_v56 = vld [vmem:[%s5408_s2 + $0x6c] ss:$16 sps:$4 sm:$0xff]  }
 0x349   :  { %4294 = vpow2.f32 %v3656_v62  ;;  %v3657_v2 = vmul.f32 -1.442695, %v3948_v63  ;;  %v3659_v6 = vmul.f32 -1.442695, %v3980_v7  ;;  %v5096_v57 = vld [vmem:[%s5408_s2 + $0x60] ss:$16 sps:$4 sm:$0xff]  }
 0x34a   :  { %4296 = vpow2.f32 %v3655_v0  ;;  %v5101_v58 = vld [vmem:[%s5408_s2 + $0x68] ss:$16 sps:$4 sm:$0xff]   ;;  %v5110_v59 = vld [vmem:[%s5408_s2 + $0x84] ss:$16 sps:$4 sm:$0xff]   ;;  %v5115_v60 = vld [vmem:[%s5408_s2 + $0x8c] ss:$16 sps:$4 sm:$0xff]  }
 0x34b   :  { %4298 = vpow2.f32 %v3657_v2  ;;  %v5120_v62 = vld [vmem:[%s5408_s2 + $0x80] ss:$16 sps:$4 sm:$0xff]   ;;  %v5125_v63 = vld [vmem:[%s5408_s2 + $0x88] ss:$16 sps:$4 sm:$0xff]   ;;  %v5132_v0 = vld [vmem:[%s5408_s2 + $0xa4] ss:$16 sps:$4 sm:$0xff]  }
 0x34c   :  { %4300 = vtanh.f32 %v3977_v4  ;;  %v5137_v2 = vld [vmem:[%s5408_s2 + $0xac] ss:$16 sps:$4 sm:$0xff]   ;;  %v5144_v3 = vld [vmem:[%s5408_s2 + $0xa0] ss:$16 sps:$4 sm:$0xff]   ;;  %v5149_v4 = vld [vmem:[%s5408_s2 + $0xa8] ss:$16 sps:$4 sm:$0xff]  }
 0x34d   :  { %4302 = vpow2.f32 %v3658_v5  ;;  %v5156_v5 = vld [vmem:[%s5408_s2 + $0xc4] ss:$16 sps:$4 sm:$0xff]   ;;  %v5161_v7 = vld [vmem:[%s5408_s2 + $0xcc] ss:$16 sps:$4 sm:$0xff]  }
 0x34e   :  { %4304 = vtanh.f32 %v3979_v31  ;;  %v5168_v31 = vld [vmem:[%s5408_s2 + $0xc0] ss:$16 sps:$4 sm:$0xff]  }
 0x352   :  { %v4293_v35 = vpop.eup %4292 }
 0x353   :  { %v4295_v43 = vpop.eup %4294  ;;  %v1624_v52 = vadd.f32 1.0, %v4293_v35  ;;  %v5173_v35 = vld [vmem:[%s5408_s2 + $0xc8] ss:$16 sps:$4 sm:$0xff]  }
 0x354   :  { %v1636_v8 = vadd.f32 1.0, %v4295_v43  ;;  %v4297_v9 = vpop.eup %4296  ;;  %v5180_v43 = vld [vmem:[%s5408_s2 + $0xe4] ss:$16 sps:$4 sm:$0xff]  }
 0x355   :  { %4306 = vrcp.f32 %v1624_v52  ;;  %v1625_v10 = vadd.f32 1.0, %v4297_v9  ;;  %v4299_v11 = vpop.eup %4298  ;;  %v5185_v52 = vld [vmem:[%s5408_s2 + $0xec] ss:$16 sps:$4 sm:$0xff]  }
 0x356   :  { %4308 = vrcp.f32 %v1636_v8  ;;  %v1637_v12 = vadd.f32 1.0, %v4299_v11  ;;  %v4301_v13 = vpop.eup %4300  ;;  %v5197_v8 = vld [vmem:[%s5408_s2 + $0xe8] ss:$16 sps:$4 sm:$0xff]  }
 0x357   :  { %4310 = vpow2.f32 %v3659_v6  ;;  %v4303_v15 = vpop.eup %4302  ;;  %v5192_v6 = vld [vmem:[%s5408_s2 + $0xe0] ss:$16 sps:$4 sm:$0xff]  }
 0x358   :  { %4312 = vrcp.f32 %v1625_v10  ;;  %v4305_v36 = vpop.eup %4304  ;;  %v1650_v20 = vadd.f32 1.0, %v4303_v15 }
 0x359   :  { %4314 = vrcp.f32 %v1637_v12 }
 0x35a   :  { %4316 = vrcp.f32 %v1650_v20 }
 0x35f   :  { %v4307_v37 = vpop.eup %4306 }
 0x360   :  { %v4309_v40 = vpop.eup %4308  ;;  %v1658_v41 = vmul.f32 %v4307_v37, %v4301_v13 }
 0x361   :  { %v4311_v44 = vpop.eup %4310  ;;  %v1656_v18 = vmul.f32 %v4309_v40, %v4947_v21 }
 0x362   :  { %v4313_v14 = vpop.eup %4312  ;;  %v1651_v24 = vadd.f32 1.0, %v4311_v44 }
 0x363   :  { %v5030_v19 = vadd.f32 %v1658_v41, %v1656_v18  ;;  %v1659_v22 = vmul.f32 %v4313_v14, %v4305_v36  ;;  %v4315_v23 = vpop.eup %4314 }
 0x364   :  { %v1657_v34 = vmul.f32 %v4315_v23, %v4951_v25  ;;  %v4317_v32 = vpop.eup %4316  ;;  %v5050_v25 = vld [vmem:[%s5408_s2 + $0xc] ss:$16 sps:$4 sm:$0xff]  }
 0x365   :  { %4318 = vtanh.f32 %v5030_v19  ;;  %2293 = vmatprep.subr.bf16.mxu1 %v5050_v25 }
 0x366   :  { %v5034_v26 = vadd.f32 %v1659_v22, %v1657_v34  ;;  %4320 = vrcp.f32 %v1651_v24 }
 0x368   :  { %4322 = vtanh.f32 %v5034_v26 }
 0x36f   :  { %v4319_v27 = vpop.eup %4318 }
 0x370   :  { %v4321_v21 = vpop.eup %4320  ;;  %v1664_v29 = vmul.f32 %v4319_v27, %v4317_v32 }
 0x372   :  { %v4323_v28 = vpop.eup %4322 }
 0x373   :  { %v1665_v30 = vmul.f32 %v4323_v28, %v4321_v21 }
 0x375   :  { %v3903_v45 = vpack.c.bf16 %v1665_v30, %v1664_v29 }
 0x377   :  { %3931 = vst [vmem:[%s5410_s4 + $0x10] sm:$0xff] %v3903_v45   ;;  %1920 = vmatmul.mubr.bf16.vlgmr.msra.gmra.mrb[12].mxu0 %v3903_v45  ;;  %1963 = vmatmul.mubr.bf16.vlgmr.msra.gmra.mrb[12].mxu1 %v3903_v45 }
 0x378   :  { %2251 = vmatpush1.bf16.msra.mxu0 %v4982_v39  ;;  %2282 = vmatprep.mubr.bf16.mxu0 %v4484_v1 }
 0x379   :  { %2252 = vmatprep.subr.bf16.mxu0 %v4989_v42  ;;  %2325 = vmatprep.mubr.bf16.mxu1 %v4484_v1 }
 0x37a   :  { %2294 = vmatpush1.bf16.msra.mxu1 %v5055_v49 }
 0x37b   :  { %2295 = vmatprep.subr.bf16.mxu1 %v5062_v50 }
 0x37c   :  { %2253 = vmatpush1.bf16.msra.mxu0 %v4994_v46 }
 0x37d   :  { %2254 = vmatprep.subr.bf16.mxu0 %v5001_v47 }
 0x37e   :  { %2296 = vmatpush1.bf16.msra.mxu1 %v5067_v51 }
 0x37f   :  { %2297 = vmatprep.subr.bf16.mxu1 %v5074_v53 }
 0x380   :  { %2255 = vmatpush1.bf16.msra.mxu0 %v5006_v48 }
 0x381   :  { %2256 = vmatprep.subr.bf16.mxu0 %v5086_v55 }
 0x382   :  { %2298 = vmatpush1.bf16.msra.mxu1 %v5079_v54 }
 0x383   :  { %2299 = vmatprep.subr.bf16.mxu1 %v5091_v56 }
 0x384   :  { %2257 = vmatpush1.bf16.msra.mxu0 %v5096_v57 }
 0x385   :  { %2258 = vmatprep.subr.bf16.mxu0 %v5110_v59 }
 0x386   :  { %2300 = vmatpush1.bf16.msra.mxu1 %v5101_v58 }
 0x387   :  { %2301 = vmatprep.subr.bf16.mxu1 %v5115_v60 }
 0x388   :  { %2259 = vmatpush1.bf16.msra.mxu0 %v5120_v62 }
 0x389   :  { %2260 = vmatprep.subr.bf16.mxu0 %v5132_v0 }
 0x38a   :  { %2302 = vmatpush1.bf16.msra.mxu1 %v5125_v63 }
 0x38b   :  { %2303 = vmatprep.subr.bf16.mxu1 %v5137_v2 }
 0x38c   :  { %2261 = vmatpush1.bf16.msra.mxu0 %v5144_v3 }
 0x38d   :  { %2262 = vmatprep.subr.bf16.mxu0 %v5156_v5 }
 0x38e   :  { %2304 = vmatpush1.bf16.msra.mxu1 %v5149_v4 }
 0x38f   :  { %2305 = vmatprep.subr.bf16.mxu1 %v5161_v7 }
 0x390   :  { %2263 = vmatpush1.bf16.msra.mxu0 %v5168_v31 }
 0x391   :  { %2264 = vmatprep.subr.bf16.mxu0 %v5180_v43 }
 0x392   :  { %2306 = vmatpush1.bf16.msra.mxu1 %v5173_v35 }
 0x393   :  { %2307 = vmatprep.subr.bf16.mxu1 %v5185_v52 }
 0x394   :  { %2265 = vmatpush1.bf16.msra.mxu0 %v5192_v6 }
 0x395   :  { %2613 = vmatprep.subr.bf16.mxu0 %v4977_v38 }
 0x396   :  { %2308 = vmatpush1.bf16.msra.mxu1 %v5197_v8 }
 0x397   :  { %2656 = vmatprep.subr.bf16.mxu1 %v5050_v25 }
 0x44a   :  { %v1921_v9 = vpop.f32.mrb[12].mxu0  ;;  %v1964_v10 = vpop.f32.mrb[12].mxu1 }
 0x44b   :  { %v3949_v11 = vadd.f32 %v1921_v9, %v4880_v16  ;;  %v1923_v12 = vpop.f32.mrb[13].mxu0  ;;  %v1966_v13 = vpop.f32.mrb[13].mxu1  ;;  %v3981_v34 = vadd.f32 %v1964_v10, %v4890_v61 }
 0x44c   :  { %v3950_v15 = vadd.f32 %v1923_v12, %v4882_v17  ;;  %v1925_v36 = vpop.f32.mrb[14].mxu0  ;;  %v1968_v37 = vpop.f32.mrb[14].mxu1  ;;  %v3982_v24 = vadd.f32 %v1966_v13, %v4887_v33 }
 0x44d   :  { %v3696_v40 = vmul.f32 -1.442695, %v3949_v11  ;;  %v3951_v41 = vadd.f32 %v1925_v36, %v4880_v16  ;;  %v1927_v44 = vpop.f32.mrb[15].mxu0  ;;  %v1970_v18 = vpop.f32.mrb[15].mxu1  ;;  %v3983_v21 = vadd.f32 %v1968_v37, %v4890_v61 }
 0x44e   :  { %v3698_v14 = vmul.f32 -1.442695, %v3950_v15  ;;  %v3952_v20 = vadd.f32 %v1927_v44, %v4882_v17  ;;  %v3700_v32 = vmul.f32 -1.442695, %v3982_v24  ;;  %v3984_v27 = vadd.f32 %v1970_v18, %v4887_v33 }
 0x44f   :  { %4324 = vpow2.f32 %v3696_v40  ;;  %v3697_v22 = vmul.f32 -1.442695, %v3951_v41 }
 0x450   :  { %4326 = vpow2.f32 %v3698_v14  ;;  %v3699_v23 = vmul.f32 -1.442695, %v3952_v20  ;;  %v3701_v45 = vmul.f32 -1.442695, %v3984_v27 }
 0x451   :  { %4328 = vpow2.f32 %v3697_v22 }
 0x452   :  { %4330 = vpow2.f32 %v3699_v23 }
 0x453   :  { %4332 = vtanh.f32 %v3981_v34 }
 0x454   :  { %4334 = vpow2.f32 %v3700_v32 }
 0x455   :  { %4336 = vtanh.f32 %v3983_v21 }
 0x459   :  { %v4325_v28 = vpop.eup %4324 }
 0x45a   :  { %v4327_v29 = vpop.eup %4326  ;;  %v1987_v30 = vadd.f32 1.0, %v4325_v28 }
 0x45b   :  { %v1999_v9 = vadd.f32 1.0, %v4327_v29  ;;  %v4329_v11 = vpop.eup %4328 }
 0x45c   :  { %4338 = vrcp.f32 %v1987_v30  ;;  %v1988_v12 = vadd.f32 1.0, %v4329_v11  ;;  %v4331_v13 = vpop.eup %4330 }
 0x45d   :  { %4340 = vrcp.f32 %v1999_v9  ;;  %v2000_v10 = vadd.f32 1.0, %v4331_v13  ;;  %v4333_v15 = vpop.eup %4332 }
 0x45e   :  { %4342 = vpow2.f32 %v3701_v45  ;;  %v4335_v36 = vpop.eup %4334 }
 0x45f   :  { %4344 = vrcp.f32 %v1988_v12  ;;  %v4337_v37 = vpop.eup %4336  ;;  %v2013_v22 = vadd.f32 1.0, %v4335_v36 }
 0x460   :  { %4346 = vrcp.f32 %v2000_v10 }
 0x461   :  { %4348 = vrcp.f32 %v2013_v22 }
 0x466   :  { %v4339_v40 = vpop.eup %4338 }
 0x467   :  { %v4341_v41 = vpop.eup %4340  ;;  %v2021_v44 = vmul.f32 %v4339_v40, %v4333_v15 }
 0x468   :  { %v4343_v18 = vpop.eup %4342  ;;  %v2019_v14 = vmul.f32 %v4341_v41, %v5030_v19 }
 0x469   :  { %v4345_v20 = vpop.eup %4344  ;;  %v2014_v32 = vadd.f32 1.0, %v4343_v18 }
 0x46a   :  { %v5214_v23 = vadd.f32 %v2021_v44, %v2019_v14  ;;  %v2022_v24 = vmul.f32 %v4345_v20, %v4337_v37  ;;  %v4347_v34 = vpop.eup %4346 }
 0x46b   :  { %v2020_v27 = vmul.f32 %v4347_v34, %v5034_v26  ;;  %v4349_v28 = vpop.eup %4348 }
 0x46c   :  { %4350 = vtanh.f32 %v5214_v23 }
 0x46d   :  { %v5218_v21 = vadd.f32 %v2022_v24, %v2020_v27  ;;  %4352 = vrcp.f32 %v2014_v32 }
 0x46f   :  { %4354 = vtanh.f32 %v5218_v21 }
 0x476   :  { %v4351_v29 = vpop.eup %4350 }
 0x477   :  { %v4353_v19 = vpop.eup %4352  ;;  %v2027_v45 = vmul.f32 %v4351_v29, %v4349_v28 }
 0x479   :  { %v4355_v30 = vpop.eup %4354 }
 0x47a   :  { %v2028_v9 = vmul.f32 %v4355_v30, %v4353_v19 }
 0x47c   :  { %v3908_v11 = vpack.c.bf16 %v2028_v9, %v2027_v45 }
 0x47e   :  { %3932 = vst [vmem:[%s5410_s4 + $0x18] sm:$0xff] %v3908_v11   ;;  %2283 = vmatmul.mubr.bf16.vlgmr.msra.gmra.mrb[16].mxu0 %v3908_v11  ;;  %2326 = vmatmul.mubr.bf16.vlgmr.msra.gmra.mrb[16].mxu1 %v3908_v11 }
 0x47f   :  { %2614 = vmatpush1.bf16.msra.mxu0 %v4982_v39  ;;  %2657 = vmatpush1.bf16.msra.mxu1 %v5055_v49 }
 0x480   :  { %2615 = vmatprep.subr.bf16.mxu0 %v4989_v42  ;;  %2658 = vmatprep.subr.bf16.mxu1 %v5062_v50 }
 0x481   :  { %2645 = vmatprep.mubr.bf16.mxu0 %v4484_v1  ;;  %2688 = vmatprep.mubr.bf16.mxu1 %v4484_v1 }
 0x483   :  { %2616 = vmatpush1.bf16.msra.mxu0 %v4994_v46  ;;  %2659 = vmatpush1.bf16.msra.mxu1 %v5067_v51 }
 0x484   :  { %2617 = vmatprep.subr.bf16.mxu0 %v5001_v47  ;;  %2660 = vmatprep.subr.bf16.mxu1 %v5074_v53 }
 0x487   :  { %2618 = vmatpush1.bf16.msra.mxu0 %v5006_v48  ;;  %2661 = vmatpush1.bf16.msra.mxu1 %v5079_v54 }
 0x488   :  { %2619 = vmatprep.subr.bf16.mxu0 %v5086_v55  ;;  %2662 = vmatprep.subr.bf16.mxu1 %v5091_v56 }
 0x48b   :  { %2620 = vmatpush1.bf16.msra.mxu0 %v5096_v57  ;;  %2663 = vmatpush1.bf16.msra.mxu1 %v5101_v58 }
 0x48c   :  { %2621 = vmatprep.subr.bf16.mxu0 %v5110_v59  ;;  %2664 = vmatprep.subr.bf16.mxu1 %v5115_v60 }
 0x48f   :  { %2622 = vmatpush1.bf16.msra.mxu0 %v5120_v62  ;;  %2665 = vmatpush1.bf16.msra.mxu1 %v5125_v63 }
 0x490   :  { %2623 = vmatprep.subr.bf16.mxu0 %v5132_v0  ;;  %2666 = vmatprep.subr.bf16.mxu1 %v5137_v2 }
 0x493   :  { %2624 = vmatpush1.bf16.msra.mxu0 %v5144_v3  ;;  %2667 = vmatpush1.bf16.msra.mxu1 %v5149_v4 }
 0x494   :  { %2625 = vmatprep.subr.bf16.mxu0 %v5156_v5  ;;  %2668 = vmatprep.subr.bf16.mxu1 %v5161_v7 }
 0x497   :  { %2626 = vmatpush1.bf16.msra.mxu0 %v5168_v31  ;;  %2669 = vmatpush1.bf16.msra.mxu1 %v5173_v35 }
 0x498   :  { %2627 = vmatprep.subr.bf16.mxu0 %v5180_v43  ;;  %2670 = vmatprep.subr.bf16.mxu1 %v5185_v52 }
 0x49b   :  { %2628 = vmatpush1.bf16.msra.mxu0 %v5192_v6  ;;  %2671 = vmatpush1.bf16.msra.mxu1 %v5197_v8 }
 0x49c   :  { %2976 = vmatprep.subr.bf16.mxu0 %v4977_v38  ;;  %3019 = vmatprep.subr.bf16.mxu1 %v5050_v25 }
 0x551   :  { %v2284_v26 = vpop.f32.mrb[16].mxu0  ;;  %v2327_v12 = vpop.f32.mrb[16].mxu1 }
 0x552   :  { %v3953_v13 = vadd.f32 %v2284_v26, %v4880_v16  ;;  %v2286_v10 = vpop.f32.mrb[17].mxu0  ;;  %v2329_v15 = vpop.f32.mrb[17].mxu1  ;;  %v3985_v32 = vadd.f32 %v2327_v12, %v4890_v61 }
 0x553   :  { %v3954_v36 = vadd.f32 %v2286_v10, %v4882_v17  ;;  %v2288_v37 = vpop.f32.mrb[18].mxu0  ;;  %v2331_v40 = vpop.f32.mrb[18].mxu1  ;;  %v3986_v34 = vadd.f32 %v2329_v15, %v4887_v33 }
 0x554   :  { %v3738_v41 = vmul.f32 -1.442695, %v3953_v13  ;;  %v3955_v44 = vadd.f32 %v2288_v37, %v4880_v16  ;;  %v2290_v18 = vpop.f32.mrb[19].mxu0  ;;  %v2333_v14 = vpop.f32.mrb[19].mxu1  ;;  %v3987_v29 = vadd.f32 %v2331_v40, %v4890_v61 }
 0x555   :  { %v3740_v20 = vmul.f32 -1.442695, %v3954_v36  ;;  %v3956_v38 = vadd.f32 %v2290_v18, %v4882_v17  ;;  %v3742_v27 = vmul.f32 -1.442695, %v3986_v34  ;;  %v3988_v28 = vadd.f32 %v2333_v14, %v4887_v33 }
 0x556   :  { %4356 = vpow2.f32 %v3738_v41  ;;  %v3739_v22 = vmul.f32 -1.442695, %v3955_v44 }
 0x557   :  { %4358 = vpow2.f32 %v3740_v20  ;;  %v3741_v24 = vmul.f32 -1.442695, %v3956_v38  ;;  %v3743_v9 = vmul.f32 -1.442695, %v3988_v28 }
 0x558   :  { %4360 = vpow2.f32 %v3739_v22 }
 0x559   :  { %4362 = vpow2.f32 %v3741_v24 }
 0x55a   :  { %4364 = vtanh.f32 %v3985_v32 }
 0x55b   :  { %4366 = vpow2.f32 %v3742_v27 }
 0x55c   :  { %4368 = vtanh.f32 %v3987_v29 }
 0x560   :  { %v4357_v19 = vpop.eup %4356 }
 0x561   :  { %v4359_v30 = vpop.eup %4358  ;;  %v2350_v45 = vadd.f32 1.0, %v4357_v19 }
 0x562   :  { %v2362_v11 = vadd.f32 1.0, %v4359_v30  ;;  %v4361_v26 = vpop.eup %4360 }
 0x563   :  { %4370 = vrcp.f32 %v2350_v45  ;;  %v2351_v13 = vadd.f32 1.0, %v4361_v26  ;;  %v4363_v10 = vpop.eup %4362 }
 0x564   :  { %4372 = vrcp.f32 %v2362_v11  ;;  %v2363_v12 = vadd.f32 1.0, %v4363_v10  ;;  %v4365_v15 = vpop.eup %4364 }
 0x565   :  { %4374 = vpow2.f32 %v3743_v9  ;;  %v4367_v36 = vpop.eup %4366 }
 0x566   :  { %4376 = vrcp.f32 %v2351_v13  ;;  %v4369_v37 = vpop.eup %4368  ;;  %v2376_v38 = vadd.f32 1.0, %v4367_v36 }
 0x567   :  { %4378 = vrcp.f32 %v2363_v12 }
 0x568   :  { %4380 = vrcp.f32 %v2376_v38 }
 0x56d   :  { %v4371_v40 = vpop.eup %4370 }
 0x56e   :  { %v4373_v41 = vpop.eup %4372  ;;  %v2384_v44 = vmul.f32 %v4371_v40, %v4365_v15 }
 0x56f   :  { %v4375_v18 = vpop.eup %4374  ;;  %v2382_v14 = vmul.f32 %v4373_v41, %v5214_v23 }
 0x570   :  { %v4377_v20 = vpop.eup %4376  ;;  %v2377_v32 = vadd.f32 1.0, %v4375_v18 }
 0x571   :  { %v5267_v22 = vadd.f32 %v2384_v44, %v2382_v14  ;;  %v2385_v24 = vmul.f32 %v4377_v20, %v4369_v37  ;;  %v4379_v34 = vpop.eup %4378 }
 0x572   :  { %v2383_v27 = vmul.f32 %v4379_v34, %v5218_v21  ;;  %v4381_v29 = vpop.eup %4380 }
 0x573   :  { %4382 = vtanh.f32 %v5267_v22 }
 0x574   :  { %v5271_v28 = vadd.f32 %v2385_v24, %v2383_v27  ;;  %4384 = vrcp.f32 %v2377_v32 }
 0x576   :  { %4386 = vtanh.f32 %v5271_v28 }
 0x57d   :  { %v4383_v19 = vpop.eup %4382 }
 0x57e   :  { %v4385_v23 = vpop.eup %4384  ;;  %v2390_v45 = vmul.f32 %v4383_v19, %v4381_v29 }
 0x580   :  { %v4387_v30 = vpop.eup %4386 }
 0x581   :  { %v2391_v9 = vmul.f32 %v4387_v30, %v4385_v23 }
 0x583   :  { %v3913_v11 = vpack.c.bf16 %v2391_v9, %v2390_v45 }
 0x585   :  { %3933 = vst [vmem:[%s5410_s4 + $0x20] sm:$0xff] %v3913_v11   ;;  %2646 = vmatmul.mubr.bf16.vlgmr.msra.gmra.mrb[20].mxu0 %v3913_v11  ;;  %2689 = vmatmul.mubr.bf16.vlgmr.msra.gmra.mrb[20].mxu1 %v3913_v11 }
 0x586   :  { %2977 = vmatpush1.bf16.msra.mxu0 %v4982_v39  ;;  %3020 = vmatpush1.bf16.msra.mxu1 %v5055_v49 }
 0x587   :  { %2978 = vmatprep.subr.bf16.mxu0 %v4989_v42  ;;  %3021 = vmatprep.subr.bf16.mxu1 %v5062_v50 }
 0x588   :  { %3008 = vmatprep.mubr.bf16.mxu0 %v4484_v1  ;;  %3051 = vmatprep.mubr.bf16.mxu1 %v4484_v1 }
 0x58a   :  { %2979 = vmatpush1.bf16.msra.mxu0 %v4994_v46  ;;  %3022 = vmatpush1.bf16.msra.mxu1 %v5067_v51 }
 0x58b   :  { %2980 = vmatprep.subr.bf16.mxu0 %v5001_v47  ;;  %3023 = vmatprep.subr.bf16.mxu1 %v5074_v53 }
 0x58e   :  { %2981 = vmatpush1.bf16.msra.mxu0 %v5006_v48  ;;  %3024 = vmatpush1.bf16.msra.mxu1 %v5079_v54 }
 0x58f   :  { %2982 = vmatprep.subr.bf16.mxu0 %v5086_v55  ;;  %3025 = vmatprep.subr.bf16.mxu1 %v5091_v56 }
 0x592   :  { %2983 = vmatpush1.bf16.msra.mxu0 %v5096_v57  ;;  %3026 = vmatpush1.bf16.msra.mxu1 %v5101_v58 }
 0x593   :  { %2984 = vmatprep.subr.bf16.mxu0 %v5110_v59  ;;  %3027 = vmatprep.subr.bf16.mxu1 %v5115_v60 }
 0x596   :  { %2985 = vmatpush1.bf16.msra.mxu0 %v5120_v62  ;;  %3028 = vmatpush1.bf16.msra.mxu1 %v5125_v63 }
 0x597   :  { %2986 = vmatprep.subr.bf16.mxu0 %v5132_v0  ;;  %3029 = vmatprep.subr.bf16.mxu1 %v5137_v2 }
 0x59a   :  { %2987 = vmatpush1.bf16.msra.mxu0 %v5144_v3  ;;  %3030 = vmatpush1.bf16.msra.mxu1 %v5149_v4 }
 0x59b   :  { %2988 = vmatprep.subr.bf16.mxu0 %v5156_v5  ;;  %3031 = vmatprep.subr.bf16.mxu1 %v5161_v7 }
 0x59e   :  { %2989 = vmatpush1.bf16.msra.mxu0 %v5168_v31  ;;  %3032 = vmatpush1.bf16.msra.mxu1 %v5173_v35 }
 0x59f   :  { %2990 = vmatprep.subr.bf16.mxu0 %v5180_v43  ;;  %3033 = vmatprep.subr.bf16.mxu1 %v5185_v52 }
 0x5a2   :  { %2991 = vmatpush1.bf16.msra.mxu0 %v5192_v6  ;;  %3034 = vmatpush1.bf16.msra.mxu1 %v5197_v8 }
 0x5a3   :  { %3382 = vmatprep.subr.bf16.mxu1 %v5050_v25 }
 0x658   :  { %v2647_v39 = vpop.f32.mrb[20].mxu0  ;;  %v2690_v42 = vpop.f32.mrb[20].mxu1 }
 0x659   :  { %v3957_v46 = vadd.f32 %v2647_v39, %v4880_v16  ;;  %v2649_v47 = vpop.f32.mrb[21].mxu0  ;;  %v2692_v48 = vpop.f32.mrb[21].mxu1  ;;  %v3989_v18 = vadd.f32 %v2690_v42, %v4890_v61 }
 0x65a   :  { %v3958_v21 = vadd.f32 %v2649_v47, %v4882_v17  ;;  %v2651_v26 = vpop.f32.mrb[22].mxu0  ;;  %v2694_v13 = vpop.f32.mrb[22].mxu1  ;;  %v3990_v44 = vadd.f32 %v2692_v48, %v4887_v33 }
 0x65b   :  { %v3780_v10 = vmul.f32 -1.442695, %v3957_v46  ;;  %v3959_v12 = vadd.f32 %v2651_v26, %v4880_v16  ;;  %v2653_v15 = vpop.f32.mrb[23].mxu0  ;;  %v2696_v36 = vpop.f32.mrb[23].mxu1  ;;  %v3991_v38 = vadd.f32 %v2694_v13, %v4890_v61 }
 0x65c   :  { %v3782_v37 = vmul.f32 -1.442695, %v3958_v21  ;;  %v3960_v40 = vadd.f32 %v2653_v15, %v4882_v17  ;;  %v3784_v14 = vmul.f32 -1.442695, %v3990_v44  ;;  %v3992_v20 = vadd.f32 %v2696_v36, %v4887_v33 }
 0x65d   :  { %4388 = vpow2.f32 %v3780_v10  ;;  %v3781_v25 = vmul.f32 -1.442695, %v3959_v12 }
 0x65e   :  { %4390 = vpow2.f32 %v3782_v37  ;;  %v3783_v41 = vmul.f32 -1.442695, %v3960_v40  ;;  %v3785_v27 = vmul.f32 -1.442695, %v3992_v20 }
 0x65f   :  { %4392 = vpow2.f32 %v3781_v25 }
 0x660   :  { %4394 = vpow2.f32 %v3783_v41 }
 0x661   :  { %4396 = vtanh.f32 %v3989_v18 }
 0x662   :  { %4398 = vpow2.f32 %v3784_v14 }
 0x663   :  { %4400 = vtanh.f32 %v3991_v38 }
 0x667   :  { %v4389_v24 = vpop.eup %4388 }
 0x668   :  { %v4391_v34 = vpop.eup %4390  ;;  %v2713_v32 = vadd.f32 1.0, %v4389_v24 }
 0x669   :  { %v2725_v29 = vadd.f32 1.0, %v4391_v34  ;;  %v4393_v19 = vpop.eup %4392 }
 0x66a   :  { %4402 = vrcp.f32 %v2713_v32  ;;  %v2714_v23 = vadd.f32 1.0, %v4393_v19  ;;  %v4395_v30 = vpop.eup %4394 }
 0x66b   :  { %4404 = vrcp.f32 %v2725_v29  ;;  %v2726_v45 = vadd.f32 1.0, %v4395_v30  ;;  %v4397_v9 = vpop.eup %4396 }
 0x66c   :  { %4406 = vpow2.f32 %v3785_v27  ;;  %v4399_v11 = vpop.eup %4398 }
 0x66d   :  { %4408 = vrcp.f32 %v2714_v23  ;;  %v4401_v39 = vpop.eup %4400  ;;  %v2739_v13 = vadd.f32 1.0, %v4399_v11 }
 0x66e   :  { %4410 = vrcp.f32 %v2726_v45 }
 0x66f   :  { %4412 = vrcp.f32 %v2739_v13 }
 0x674   :  { %v4403_v42 = vpop.eup %4402 }
 0x675   :  { %v4405_v46 = vpop.eup %4404  ;;  %v2747_v47 = vmul.f32 %v4403_v42, %v4397_v9 }
 0x676   :  { %v4407_v48 = vpop.eup %4406  ;;  %v2745_v21 = vmul.f32 %v4405_v46, %v5267_v22 }
 0x677   :  { %v4409_v26 = vpop.eup %4408  ;;  %v2740_v36 = vadd.f32 1.0, %v4407_v48 }
 0x678   :  { %v5319_v10 = vadd.f32 %v2747_v47, %v2745_v21  ;;  %v2748_v12 = vmul.f32 %v4409_v26, %v4401_v39  ;;  %v4411_v15 = vpop.eup %4410 }
 0x679   :  { %v2746_v37 = vmul.f32 %v4411_v15, %v5271_v28  ;;  %v4413_v25 = vpop.eup %4412 }
 0x67a   :  { %4414 = vtanh.f32 %v5319_v10 }
 0x67b   :  { %v5323_v40 = vadd.f32 %v2748_v12, %v2746_v37  ;;  %4416 = vrcp.f32 %v2740_v36 }
 0x67d   :  { %4418 = vtanh.f32 %v5323_v40 }
 0x684   :  { %v4415_v41 = vpop.eup %4414 }
 0x685   :  { %v4417_v22 = vpop.eup %4416  ;;  %v2753_v18 = vmul.f32 %v4415_v41, %v4413_v25 }
 0x687   :  { %v4419_v44 = vpop.eup %4418 }
 0x688   :  { %v2754_v14 = vmul.f32 %v4419_v44, %v4417_v22 }
 0x68a   :  { %v3918_v20 = vpack.c.bf16 %v2754_v14, %v2753_v18 }
 0x68c   :  { %3934 = vst [vmem:[%s5410_s4 + $0x28] sm:$0xff] %v3918_v20   ;;  %3009 = vmatmul.mubr.bf16.vlgmr.msra.gmra.mrb[24].mxu0 %v3918_v20  ;;  %3052 = vmatmul.mubr.bf16.vlgmr.msra.gmra.mrb[24].mxu1 %v3918_v20 }
 0x68d   :  { %3383 = vmatpush1.bf16.msra.mxu1 %v5055_v49  ;;  %3371 = vmatprep.mubr.bf16.mxu0 %v4484_v1  ;;  %v4219_v49 = vld [vmem:[%s5408_s2] ss:$16 sps:$4 sm:$0xff]  }
 0x68e   :  { %3384 = vmatprep.subr.bf16.mxu1 %v5062_v50  ;;  %3414 = vmatprep.mubr.bf16.mxu1 %v4484_v1  ;;  %v4221_v1 = vld [vmem:[%s5408_s2 + $0x4] ss:$16 sps:$4 sm:$0xff]  }
 0x68f   :  { %3339 = vmatprep.subr.bf16.mxu0 %v4221_v1  ;;  %v4224_v50 = vld [vmem:[%s5408_s2 + $0x24] ss:$16 sps:$4 sm:$0xff]  }
 0x690   :  { %3340 = vmatpush1.bf16.msra.mxu0 %v4219_v49 }
 0x691   :  { %3385 = vmatpush1.bf16.msra.mxu1 %v5067_v51  ;;  %v4222_v51 = vld [vmem:[%s5408_s2 + $0x20] ss:$16 sps:$4 sm:$0xff]   ;;  %3341 = vmatprep.subr.bf16.mxu0 %v4224_v50 }
 0x692   :  { %3386 = vmatprep.subr.bf16.mxu1 %v5074_v53  ;;  %v4227_v53 = vld [vmem:[%s5408_s2 + $0x44] ss:$16 sps:$4 sm:$0xff]  }
 0x694   :  { %3342 = vmatpush1.bf16.msra.mxu0 %v4222_v51 }
 0x695   :  { %3387 = vmatpush1.bf16.msra.mxu1 %v5079_v54  ;;  %v4225_v54 = vld [vmem:[%s5408_s2 + $0x40] ss:$16 sps:$4 sm:$0xff]   ;;  %3343 = vmatprep.subr.bf16.mxu0 %v4227_v53 }
 0x696   :  { %3388 = vmatprep.subr.bf16.mxu1 %v5091_v56 }
 0x698   :  { %3344 = vmatpush1.bf16.msra.mxu0 %v4225_v54 }
 0x699   :  { %3389 = vmatpush1.bf16.msra.mxu1 %v5101_v58  ;;  %3345 = vmatprep.subr.bf16.mxu0 %v5086_v55 }
 0x69a   :  { %3390 = vmatprep.subr.bf16.mxu1 %v5115_v60 }
 0x69c   :  { %3346 = vmatpush1.bf16.msra.mxu0 %v5096_v57 }
 0x69d   :  { %3391 = vmatpush1.bf16.msra.mxu1 %v5125_v63  ;;  %3347 = vmatprep.subr.bf16.mxu0 %v5110_v59 }
 0x69e   :  { %3392 = vmatprep.subr.bf16.mxu1 %v5137_v2 }
 0x6a0   :  { %3348 = vmatpush1.bf16.msra.mxu0 %v5120_v62 }
 0x6a1   :  { %3393 = vmatpush1.bf16.msra.mxu1 %v5149_v4  ;;  %3349 = vmatprep.subr.bf16.mxu0 %v5132_v0 }
 0x6a2   :  { %3394 = vmatprep.subr.bf16.mxu1 %v5161_v7 }
 0x6a4   :  { %3350 = vmatpush1.bf16.msra.mxu0 %v5144_v3 }
 0x6a5   :  { %3395 = vmatpush1.bf16.msra.mxu1 %v5173_v35  ;;  %3351 = vmatprep.subr.bf16.mxu0 %v5156_v5 }
 0x6a6   :  { %3396 = vmatprep.subr.bf16.mxu1 %v5185_v52 }
 0x6a8   :  { %3352 = vmatpush1.bf16.msra.mxu0 %v5168_v31 }
 0x6a9   :  { %3397 = vmatpush1.bf16.msra.mxu1 %v5197_v8  ;;  %3353 = vmatprep.subr.bf16.mxu0 %v5180_v43 }
 0x6ac   :  { %3354 = vmatpush1.bf16.msra.mxu0 %v5192_v6 }
 0x75f   :  { %v3010_v56 = vpop.f32.mrb[24].mxu0  ;;  %v3053_v55 = vpop.f32.mrb[24].mxu1 }
 0x760   :  { %v3961_v57 = vadd.f32 %v3010_v56, %v4880_v16  ;;  %v3012_v58 = vpop.f32.mrb[25].mxu0  ;;  %v3055_v59 = vpop.f32.mrb[25].mxu1  ;;  %v3993_v52 = vadd.f32 %v3053_v55, %v4890_v61 }
 0x761   :  { %v3962_v60 = vadd.f32 %v3012_v58, %v4882_v17  ;;  %v3014_v62 = vpop.f32.mrb[26].mxu0  ;;  %v3057_v63 = vpop.f32.mrb[26].mxu1  ;;  %v3994_v43 = vadd.f32 %v3055_v59, %v4887_v33 }
 0x762   :  { %v3822_v0 = vmul.f32 -1.442695, %v3961_v57  ;;  %v3963_v2 = vadd.f32 %v3014_v62, %v4880_v16  ;;  %v3016_v3 = vpop.f32.mrb[27].mxu0  ;;  %v3059_v4 = vpop.f32.mrb[27].mxu1  ;;  %v3995_v28 = vadd.f32 %v3057_v63, %v4890_v61 }
 0x763   :  { %v3824_v5 = vmul.f32 -1.442695, %v3962_v60  ;;  %v3964_v7 = vadd.f32 %v3016_v3, %v4882_v17  ;;  %v3826_v6 = vmul.f32 -1.442695, %v3994_v43  ;;  %v3996_v8 = vadd.f32 %v3059_v4, %v4887_v33 }
 0x764   :  { %4420 = vpow2.f32 %v3822_v0  ;;  %v3823_v31 = vmul.f32 -1.442695, %v3963_v2 }
 0x765   :  { %4422 = vpow2.f32 %v3824_v5  ;;  %v3825_v35 = vmul.f32 -1.442695, %v3964_v7  ;;  %v3827_v32 = vmul.f32 -1.442695, %v3996_v8 }
 0x766   :  { %4424 = vpow2.f32 %v3823_v31 }
 0x767   :  { %4426 = vpow2.f32 %v3825_v35 }
 0x768   :  { %4428 = vtanh.f32 %v3993_v52 }
 0x769   :  { %4430 = vpow2.f32 %v3826_v6 }
 0x76a   :  { %4432 = vtanh.f32 %v3995_v28 }
 0x76e   :  { %v4421_v38 = vpop.eup %4420 }
 0x76f   :  { %v4423_v24 = vpop.eup %4422  ;;  %v3076_v34 = vadd.f32 1.0, %v4421_v38 }
 0x770   :  { %v3088_v27 = vadd.f32 1.0, %v4423_v24  ;;  %v4425_v29 = vpop.eup %4424 }
 0x771   :  { %4434 = vrcp.f32 %v3076_v34  ;;  %v3077_v19 = vadd.f32 1.0, %v4425_v29  ;;  %v4427_v23 = vpop.eup %4426 }
 0x772   :  { %4436 = vrcp.f32 %v3088_v27  ;;  %v3089_v30 = vadd.f32 1.0, %v4427_v23  ;;  %v4429_v45 = vpop.eup %4428 }
 0x773   :  { %4438 = vpow2.f32 %v3827_v32  ;;  %v4431_v9 = vpop.eup %4430 }
 0x774   :  { %4440 = vrcp.f32 %v3077_v19  ;;  %v4433_v11 = vpop.eup %4432  ;;  %v3102_v26 = vadd.f32 1.0, %v4431_v9 }
 0x775   :  { %4442 = vrcp.f32 %v3089_v30 }
 0x776   :  { %4444 = vrcp.f32 %v3102_v26 }
 0x77b   :  { %v4435_v39 = vpop.eup %4434 }
 0x77c   :  { %v4437_v42 = vpop.eup %4436  ;;  %v3110_v46 = vmul.f32 %v4435_v39, %v4429_v45 }
 0x77d   :  { %v4439_v47 = vpop.eup %4438  ;;  %v3108_v48 = vmul.f32 %v4437_v42, %v5319_v10 }
 0x77e   :  { %v4441_v21 = vpop.eup %4440  ;;  %v3103_v36 = vadd.f32 1.0, %v4439_v47 }
 0x77f   :  { %v5383_v13 = vadd.f32 %v3110_v46, %v3108_v48  ;;  %v3111_v12 = vmul.f32 %v4441_v21, %v4433_v11  ;;  %v4443_v15 = vpop.eup %4442 }
 0x780   :  { %v3109_v37 = vmul.f32 %v4443_v15, %v5323_v40  ;;  %v4445_v41 = vpop.eup %4444 }
 0x781   :  { %4446 = vtanh.f32 %v5383_v13 }
 0x782   :  { %v5387_v25 = vadd.f32 %v3111_v12, %v3109_v37  ;;  %4448 = vrcp.f32 %v3103_v36 }
 0x784   :  { %4450 = vtanh.f32 %v5387_v25 }
 0x78b   :  { %v4447_v22 = vpop.eup %4446 }
 0x78c   :  { %v4449_v10 = vpop.eup %4448  ;;  %v3116_v18 = vmul.f32 %v4447_v22, %v4445_v41 }
 0x78e   :  { %v4451_v44 = vpop.eup %4450 }
 0x78f   :  { %v3117_v14 = vmul.f32 %v4451_v44, %v4449_v10 }
 0x791   :  { %v3923_v20 = vpack.c.bf16 %v3117_v14, %v3116_v18 }
 0x793   :  { %3935 = vst [vmem:[%s5410_s4 + $0x30] sm:$0xff] %v3923_v20   ;;  %3372 = vmatmul.mubr.bf16.vlgmr.msra.gmra.mrb[28].mxu0 %v3923_v20  ;;  %3415 = vmatmul.mubr.bf16.vlgmr.msra.gmra.mrb[28].mxu1 %v3923_v20 }
 0x866   :  { %v3373_v40 = vpop.f32.mrb[28].mxu0  ;;  %v3416_v1 = vpop.f32.mrb[28].mxu1 }
 0x867   :  { %v3965_v49 = vadd.f32 %v3373_v40, %v4880_v16  ;;  %v3375_v50 = vpop.f32.mrb[29].mxu0  ;;  %v3418_v51 = vpop.f32.mrb[29].mxu1  ;;  %v3997_v3 = vadd.f32 %v3416_v1, %v4890_v61 }
 0x868   :  { %v3966_v53 = vadd.f32 %v3375_v50, %v4882_v17  ;;  %v3377_v54 = vpop.f32.mrb[30].mxu0  ;;  %v3420_v56 = vpop.f32.mrb[30].mxu1  ;;  %v3998_v2 = vadd.f32 %v3418_v51, %v4887_v33 }
 0x869   :  { %v3864_v55 = vmul.f32 -1.442695, %v3965_v49  ;;  %v3967_v57 = vadd.f32 %v3377_v54, %v4880_v16  ;;  %v3379_v58 = vpop.f32.mrb[31].mxu0  ;;  %v3422_v59 = vpop.f32.mrb[31].mxu1  ;;  %v3999_v16 = vadd.f32 %v3420_v56, %v4890_v61 }
 0x86a   :  { %v3866_v60 = vmul.f32 -1.442695, %v3966_v53  ;;  %v3968_v62 = vadd.f32 %v3379_v58, %v4882_v17  ;;  %v3868_v4 = vmul.f32 -1.442695, %v3998_v2  ;;  %v4000_v5 = vadd.f32 %v3422_v59, %v4887_v33 }
 0x86b   :  { %4452 = vpow2.f32 %v3864_v55  ;;  %v3865_v63 = vmul.f32 -1.442695, %v3967_v57 }
 0x86c   :  { %4454 = vpow2.f32 %v3866_v60  ;;  %v3867_v0 = vmul.f32 -1.442695, %v3968_v62  ;;  %v3869_v17 = vmul.f32 -1.442695, %v4000_v5 }
 0x86d   :  { %4456 = vpow2.f32 %v3865_v63 }
 0x86e   :  { %4458 = vpow2.f32 %v3867_v0 }
 0x86f   :  { %4460 = vtanh.f32 %v3997_v3 }
 0x870   :  { %4462 = vpow2.f32 %v3868_v4 }
 0x871   :  { %4464 = vtanh.f32 %v3999_v16 }
 0x875   :  { %v4453_v7 = vpop.eup %4452 }
 0x876   :  { %v4455_v31 = vpop.eup %4454  ;;  %v3439_v35 = vadd.f32 1.0, %v4453_v7 }
 0x877   :  { %v3451_v43 = vadd.f32 1.0, %v4455_v31  ;;  %v4457_v52 = vpop.eup %4456 }
 0x878   :  { %4466 = vrcp.f32 %v3439_v35  ;;  %v3440_v6 = vadd.f32 1.0, %v4457_v52  ;;  %v4459_v8 = vpop.eup %4458 }
 0x879   :  { %4468 = vrcp.f32 %v3451_v43  ;;  %v3452_v28 = vadd.f32 1.0, %v4459_v8  ;;  %v4461_v33 = vpop.eup %4460 }
 0x87a   :  { %4470 = vpow2.f32 %v3869_v17  ;;  %v4463_v38 = vpop.eup %4462 }
 0x87b   :  { %4472 = vrcp.f32 %v3440_v6  ;;  %v4465_v61 = vpop.eup %4464  ;;  %v3465_v27 = vadd.f32 1.0, %v4463_v38 }
 0x87c   :  { %4474 = vrcp.f32 %v3452_v28 }
 0x87d   :  { %4476 = vrcp.f32 %v3465_v27 }
 0x882   :  { %v4467_v24 = vpop.eup %4466 }
 0x883   :  { %v4469_v34 = vpop.eup %4468  ;;  %v3473_v32 = vmul.f32 %v4467_v24, %v4461_v33 }
 0x884   :  { %v4471_v29 = vpop.eup %4470  ;;  %v3471_v19 = vmul.f32 %v4469_v34, %v5383_v13 }
 0x885   :  { %v4473_v23 = vpop.eup %4472  ;;  %v3466_v11 = vadd.f32 1.0, %v4471_v29 }
 0x886   :  { %v3475_v30 = vadd.f32 %v3473_v32, %v3471_v19  ;;  %v3474_v45 = vmul.f32 %v4473_v23, %v4465_v61  ;;  %v4475_v9 = vpop.eup %4474 }
 0x887   :  { %v3472_v39 = vmul.f32 %v4475_v9, %v5387_v25  ;;  %v4477_v46 = vpop.eup %4476 }
 0x888   :  { %4478 = vtanh.f32 %v3475_v30 }
 0x889   :  { %v3476_v42 = vadd.f32 %v3474_v45, %v3472_v39  ;;  %4480 = vrcp.f32 %v3466_v11 }
 0x88b   :  { %4482 = vtanh.f32 %v3476_v42 }
 0x892   :  { %v4479_v47 = vpop.eup %4478 }
 0x893   :  { %v3479_v48 = vmul.f32 %v4479_v47, %v4477_v46  ;;  %v4481_v21 = vpop.eup %4480 }
 0x895   :  { %v4483_v26 = vpop.eup %4482 }
 0x896   :  { %v3480_v12 = vmul.f32 %v4483_v26, %v4481_v21 }
 0x898   :  { %v3928_v15 = vpack.c.bf16 %v3480_v12, %v3479_v48 }
 0x89a   :  { %3936 = vst [vmem:[%s5410_s4 + $0x38] sm:$0xff] %v3928_v15  }

// kernel: forward.3
= control target key start
LH: loop header
LB: loop body
LE: loop exit
PB: predicated region body
PF: predicated region fallthrough
CT: control target
= control target key end

     0   :  { %v45_v0 = vlaneseq  ;;  %v4272_v2 = vmov 1983009808   ;;  %v4273_v4 = vmov 0   ;;  %vm148_vm0 = vcmask 1041408   ;;  %s5113_s1 = inlined_call_operand.vmem [shape: bf16[4,512], index: 1, kind: input, shape index: {}]   ;;  %s5114_s0 = inlined_call_operand.vmem [shape: bf16[8,16,4], index: 0, kind: input, shape index: {}]   ;;  %s5115_s2 = inlined_call_operand.vmem [shape: bf16[128,512], index: 2, kind: input, shape index: {}]   ;;  %s5116_s3 = inlined_call_operand.vmem [shape: f32[1,512], index: 3, kind: input, shape index: {}]   ;;  %s5117_s4 = inlined_call_operand.vmem [shape: bf16[8,16,128], index: 4, kind: output, shape index: {}]  }
   0x1   :  { %v42_v1 = vld [vmem:[%s5113_s1] sm:$0xff]  ;;  %v108_v3 = vunpack.c.l.s4 %v4272_v2  ;;  %193 = vmatprep.mubr.bf16.mxu0 %v4273_v4  ;;  %306 = vmatprep.mubr.bf16.mxu1 %v4273_v4  ;;  %v4316_v16 = vld [vmem:[%s5115_s2 + $0xc] ss:$16 sps:$4 sm:$0xff]   ;;  %vm123_vm1 = vcmask 31744   ;;  %v4336_v20 = vld [vmem:[%s5115_s2 + $0x8] ss:$16 sps:$4 sm:$0xff]  }
   0x2   :  { %v4305_v5 = vshrl.u32 %v45_v0, 7  ;;  %v106_v7 = vcombine.high %v42_v1, %v42_v1  ;;  %v4311_v11 = vld [vmem:[%s5115_s2 + $0x4] ss:$16 sps:$4 sm:$0xff]   ;;  %v4324_v18 = vld [vmem:[%s5115_s2] ss:$16 sps:$4 sm:$0xff]   ;;  %v3916_v25 = vld [vmem:[%s5114_s0 + $0x8] sm:$0xff]  }
   0x3   :  { %v109_v6 = vunpack.c.0.s8 %v108_v3  ;;  %v3912_v17 = vld [vmem:[%s5114_s0] sm:$0xff]   ;;  %v4343_v21 = vld [vmem:[%s5115_s2 + $0x2c] ss:$16 sps:$4 sm:$0xff]   ;;  %v4363_v24 = vld [vmem:[%s5115_s2 + $0x28] ss:$16 sps:$4 sm:$0xff]   ;;  %v4274_v55 = vmov 0.0|0.0  }
   0x4   :  { %v4330_v19 = vld [vmem:[%s5115_s2 + $0x24] ss:$16 sps:$4 sm:$0xff]   ;;  %v4350_v22 = vld [vmem:[%s5115_s2 + $0x20] ss:$16 sps:$4 sm:$0xff]   ;;  %v4379_v27 = vld [vmem:[%s5115_s2 + $0x4c] ss:$16 sps:$4 sm:$0xff]  }
   0x5   :  { %v112_v8 = vsub.s32 %v109_v6, %v4305_v5  ;;  %v4357_v23 = vld [vmem:[%s5115_s2 + $0x44] ss:$16 sps:$4 sm:$0xff]   ;;  %v4373_v26 = vld [vmem:[%s5115_s2 + $0x40] ss:$16 sps:$4 sm:$0xff]   ;;  %v4390_v29 = vld [vmem:[%s5115_s2 + $0x48] ss:$16 sps:$4 sm:$0xff]  }
   0x6   :  { %v4384_v28 = vld [vmem:[%s5115_s2 + $0x64] ss:$16 sps:$4 sm:$0xff]   ;;  %v4397_v30 = vld [vmem:[%s5115_s2 + $0x6c] ss:$16 sps:$4 sm:$0xff]   ;;  %v4405_v31 = vld [vmem:[%s5115_s2 + $0x60] ss:$16 sps:$4 sm:$0xff]  }
   0x7   :  { %v113_v9 = vrot.slane %v42_v1, %v112_v8  ;;  %v120_v10 = vrot.slane %v106_v7, %v112_v8  ;;  %v4412_v32 = vld [vmem:[%s5115_s2 + $0x84] ss:$16 sps:$4 sm:$0xff]   ;;  %v4418_v33 = vld [vmem:[%s5115_s2 + $0x68] ss:$16 sps:$4 sm:$0xff]   ;;  %v4427_v35 = vld [vmem:[%s5115_s2 + $0x80] ss:$16 sps:$4 sm:$0xff]  }
   0x8   :  { %v3923_v34 = vld [vmem:[%s5114_s0 + $0x10] sm:$0xff]   ;;  %v4438_v37 = vld [vmem:[%s5115_s2 + $0x8c] ss:$16 sps:$4 sm:$0xff]   ;;  %v4445_v38 = vld [vmem:[%s5115_s2 + $0x88] ss:$16 sps:$4 sm:$0xff]   ;;  %v47_v56 = vsub.s32 0, %v4305_v5 }
   0x9   :  { %v121_v12 = vcombine.high %v113_v9, %v113_v9  ;;  %v122_v13 = vcombine.high %v120_v10, %v120_v10  ;;  %v150_v14 = vsel %vm148_vm0, %v113_v9, 0  ;;  %v156_v15 = vsel %vm148_vm0, %v120_v10, 0  ;;  %v4432_v36 = vld [vmem:[%s5115_s2 + $0xa4] ss:$16 sps:$4 sm:$0xff]   ;;  %v4452_v39 = vld [vmem:[%s5115_s2 + $0xa0] ss:$16 sps:$4 sm:$0xff]  }
   0xa   :  { %v4457_v40 = vld [vmem:[%s5115_s2 + $0xac] ss:$16 sps:$4 sm:$0xff]   ;;  %v4464_v41 = vld [vmem:[%s5115_s2 + $0xc4] ss:$16 sps:$4 sm:$0xff]   ;;  %v4469_v42 = vld [vmem:[%s5115_s2 + $0xa8] ss:$16 sps:$4 sm:$0xff]  }
   0xb   :  { %3365 = vmatprep.subr.msk.bf16.mxu0 %vm148_vm0, %v121_v12  ;;  %3374 = vmatprep.subr.msk.bf16.mxu1 %vm148_vm0, %v122_v13  ;;  %v3930_v43 = vld [vmem:[%s5114_s0 + $0x18] sm:$0xff]   ;;  %v4481_v44 = vld [vmem:[%s5115_s2 + $0xc0] ss:$16 sps:$4 sm:$0xff]   ;;  %v4492_v46 = vld [vmem:[%s5115_s2 + $0xe4] ss:$16 sps:$4 sm:$0xff]   ;;  %v51_v58 = vsub.s32 1, %v4305_v5 }
   0xc   :  { %162 = vmatpush1.bf16.msra.mxu0 %v150_v14  ;;  %275 = vmatpush1.bf16.msra.mxu1 %v156_v15  ;;  %v4487_v45 = vld [vmem:[%s5115_s2 + $0xcc] ss:$16 sps:$4 sm:$0xff]   ;;  %v4497_v47 = vld [vmem:[%s5115_s2 + $0xc8] ss:$16 sps:$4 sm:$0xff]   ;;  %v4512_v49 = vld [vmem:[%s5115_s2 + $0xe0] ss:$16 sps:$4 sm:$0xff]  }
   0xd   :  { %656 = vmatprep.subr.bf16.mxu0 %v4311_v11  ;;  %699 = vmatprep.subr.bf16.mxu1 %v4316_v16  ;;  %v4503_v48 = vld [vmem:[%s5115_s2 + $0xec] ss:$16 sps:$4 sm:$0xff]   ;;  %v4523_v50 = vld [vmem:[%s5115_s2 + $0xe8] ss:$16 sps:$4 sm:$0xff]   ;;  %v3937_v51 = vld [vmem:[%s5114_s0 + $0x20] sm:$0xff]   ;;  %v59_v61 = vsub.s32 3, %v4305_v5 }
   0xe   :  { %v3944_v52 = vld [vmem:[%s5114_s0 + $0x28] sm:$0xff]   ;;  %v3951_v53 = vld [vmem:[%s5114_s0 + $0x30] sm:$0xff]   ;;  %v3958_v54 = vld [vmem:[%s5114_s0 + $0x38] sm:$0xff]   ;;  %v55_v8 = vsub.s32 2, %v4305_v5 }
   0xf   :  { %3366 = vmatmul.mubr.msk.bf16.vlgmr.msra.gmra.mrb[0].mxu0 %vm123_vm1, %v3912_v17  ;;  %3375 = vmatmul.mubr.msk.bf16.vlgmr.msra.gmra.mrb[0].mxu1 %vm123_vm1, %v3912_v17  ;;  %v43_v57 = vld [vmem:[%s5116_s3] sm:$0xf] }
  0x10   :  { %657 = vmatpush1.bf16.msra.mxu0 %v4324_v18  ;;  %203 = vmatprep.mubr.bf16.mxu0 %v4273_v4  ;;  %v4597_v59 = vrot.slane %v43_v57, %v47_v56  ;;  %v4599_v60 = vrot.slane %v43_v57, %v51_v58  ;;  %v4606_v14 = vrot.slane %v43_v57, %v59_v61 }
  0x11   :  { %316 = vmatprep.mubr.bf16.mxu1 %v4273_v4  ;;  %658 = vmatprep.subr.bf16.mxu0 %v4330_v19 }
  0x12   :  { %700 = vmatpush1.bf16.msra.mxu1 %v4336_v20 }
  0x13   :  { %701 = vmatprep.subr.bf16.mxu1 %v4343_v21 }
  0x14   :  { %659 = vmatpush1.bf16.msra.mxu0 %v4350_v22 }
  0x15   :  { %660 = vmatprep.subr.bf16.mxu0 %v4357_v23 }
  0x16   :  { %702 = vmatpush1.bf16.msra.mxu1 %v4363_v24 }
  0x17   :  { %3367 = vmatmul.mubr.msk.bf16.gmra.mrb[4].mxu0 %vm123_vm1, %v3916_v25  ;;  %3376 = vmatmul.mubr.msk.bf16.gmra.mrb[4].mxu1 %vm123_vm1, %v3916_v25 }
  0x18   :  { %213 = vmatprep.mubr.bf16.mxu0 %v4273_v4  ;;  %326 = vmatprep.mubr.bf16.mxu1 %v4273_v4 }
  0x19   :  { %661 = vmatpush1.bf16.msra.mxu0 %v4373_v26  ;;  %703 = vmatprep.subr.bf16.mxu1 %v4379_v27 }
  0x1a   :  { %662 = vmatprep.subr.bf16.mxu0 %v4384_v28  ;;  %704 = vmatpush1.bf16.msra.mxu1 %v4390_v29 }
  0x1b   :  { %705 = vmatprep.subr.bf16.mxu1 %v4397_v30 }
  0x1d   :  { %663 = vmatpush1.bf16.msra.mxu0 %v4405_v31 }
  0x1e   :  { %664 = vmatprep.subr.bf16.mxu0 %v4412_v32  ;;  %706 = vmatpush1.bf16.msra.mxu1 %v4418_v33 }
  0x1f   :  { %3368 = vmatmul.mubr.msk.bf16.gmra.mrb[8].mxu0 %vm123_vm1, %v3923_v34  ;;  %3377 = vmatmul.mubr.msk.bf16.gmra.mrb[8].mxu1 %vm123_vm1, %v3923_v34 }
  0x20   :  { %223 = vmatprep.mubr.bf16.mxu0 %v4273_v4  ;;  %336 = vmatprep.mubr.bf16.mxu1 %v4273_v4 }
  0x21   :  { %665 = vmatpush1.bf16.msra.mxu0 %v4427_v35  ;;  %707 = vmatprep.subr.bf16.mxu1 %v4438_v37 }
  0x22   :  { %666 = vmatprep.subr.bf16.mxu0 %v4432_v36  ;;  %708 = vmatpush1.bf16.msra.mxu1 %v4445_v38 }
  0x23   :  { %709 = vmatprep.subr.bf16.mxu1 %v4457_v40 }
  0x25   :  { %667 = vmatpush1.bf16.msra.mxu0 %v4452_v39 }
  0x26   :  { %668 = vmatprep.subr.bf16.mxu0 %v4464_v41  ;;  %710 = vmatpush1.bf16.msra.mxu1 %v4469_v42 }
  0x27   :  { %3369 = vmatmul.mubr.msk.bf16.gmra.mrb[12].mxu0 %vm123_vm1, %v3930_v43  ;;  %3378 = vmatmul.mubr.msk.bf16.gmra.mrb[12].mxu1 %vm123_vm1, %v3930_v43  ;;  %v4609_v43 = vrot.slane %v43_v57, %v55_v8 }
  0x28   :  { %233 = vmatprep.mubr.bf16.mxu0 %v4273_v4  ;;  %346 = vmatprep.mubr.bf16.mxu1 %v4273_v4 }
  0x29   :  { %669 = vmatpush1.bf16.msra.mxu0 %v4481_v44  ;;  %711 = vmatprep.subr.bf16.mxu1 %v4487_v45 }
  0x2a   :  { %670 = vmatprep.subr.bf16.mxu0 %v4492_v46  ;;  %712 = vmatpush1.bf16.msra.mxu1 %v4497_v47 }
  0x2b   :  { %713 = vmatprep.subr.bf16.mxu1 %v4503_v48 }
  0x2d   :  { %671 = vmatpush1.bf16.msra.mxu0 %v4512_v49 }
  0x2e   :  { %714 = vmatpush1.bf16.msra.mxu1 %v4523_v50  ;;  %1018 = vmatprep.subr.bf16.mxu0 %v4311_v11 }
  0x2f   :  { %3370 = vmatmul.mubr.msk.bf16.gmra.mrb[16].mxu0 %vm123_vm1, %v3937_v51  ;;  %3379 = vmatmul.mubr.msk.bf16.gmra.mrb[16].mxu1 %vm123_vm1, %v3937_v51 }
  0x30   :  { %243 = vmatprep.mubr.bf16.mxu0 %v4273_v4  ;;  %356 = vmatprep.mubr.bf16.mxu1 %v4273_v4 }
  0x31   :  { %1061 = vmatprep.subr.bf16.mxu1 %v4316_v16 }
  0x37   :  { %3371 = vmatmul.mubr.msk.bf16.gmra.mrb[20].mxu0 %vm123_vm1, %v3944_v52  ;;  %3380 = vmatmul.mubr.msk.bf16.gmra.mrb[20].mxu1 %vm123_vm1, %v3944_v52 }
  0x38   :  { %253 = vmatprep.mubr.bf16.mxu0 %v4273_v4  ;;  %366 = vmatprep.mubr.bf16.mxu1 %v4273_v4 }
  0x3f   :  { %3372 = vmatmul.mubr.msk.bf16.gmra.mrb[24].mxu0 %vm123_vm1, %v3951_v53  ;;  %3381 = vmatmul.mubr.msk.bf16.gmra.mrb[24].mxu1 %vm123_vm1, %v3951_v53 }
  0x40   :  { %263 = vmatprep.mubr.bf16.mxu0 %v4273_v4  ;;  %376 = vmatprep.mubr.bf16.mxu1 %v4273_v4 }
  0x47   :  { %3373 = vmatmul.mubr.msk.bf16.gmra.mrb[28].mxu0 %vm123_vm1, %v3958_v54  ;;  %3382 = vmatmul.mubr.msk.bf16.gmra.mrb[28].mxu1 %vm123_vm1, %v3958_v54 }
  0x48   :  { %688 = vmatprep.mubr.bf16.mxu0 %v4273_v4  ;;  %731 = vmatprep.mubr.bf16.mxu1 %v4273_v4 }
  0x4f   :  { %689 = vmatmul.mubr.bf16.vlgmr.msra.gmra.mrb[0].mxu0 %v4274_v55  ;;  %732 = vmatmul.mubr.bf16.vlgmr.msra.gmra.mrb[0].mxu1 %v4274_v55 }
  0x50   :  { %1019 = vmatpush1.bf16.msra.mxu0 %v4324_v18  ;;  %1062 = vmatpush1.bf16.msra.mxu1 %v4336_v20 }
  0x51   :  { %1020 = vmatprep.subr.bf16.mxu0 %v4330_v19  ;;  %1063 = vmatprep.subr.bf16.mxu1 %v4343_v21 }
  0x52   :  { %1050 = vmatprep.mubr.bf16.mxu0 %v4273_v4  ;;  %1093 = vmatprep.mubr.bf16.mxu1 %v4273_v4 }
  0x54   :  { %1021 = vmatpush1.bf16.msra.mxu0 %v4350_v22  ;;  %1064 = vmatpush1.bf16.msra.mxu1 %v4363_v24 }
  0x55   :  { %1022 = vmatprep.subr.bf16.mxu0 %v4357_v23  ;;  %1065 = vmatprep.subr.bf16.mxu1 %v4379_v27 }
  0x58   :  { %1023 = vmatpush1.bf16.msra.mxu0 %v4373_v26  ;;  %1066 = vmatpush1.bf16.msra.mxu1 %v4390_v29 }
  0x59   :  { %1024 = vmatprep.subr.bf16.mxu0 %v4384_v28  ;;  %1067 = vmatprep.subr.bf16.mxu1 %v4397_v30 }
  0x5c   :  { %1025 = vmatpush1.bf16.msra.mxu0 %v4405_v31  ;;  %1068 = vmatpush1.bf16.msra.mxu1 %v4418_v33 }
  0x5d   :  { %1026 = vmatprep.subr.bf16.mxu0 %v4412_v32  ;;  %1069 = vmatprep.subr.bf16.mxu1 %v4438_v37 }
  0x60   :  { %1027 = vmatpush1.bf16.msra.mxu0 %v4427_v35  ;;  %1070 = vmatpush1.bf16.msra.mxu1 %v4445_v38 }
  0x61   :  { %1028 = vmatprep.subr.bf16.mxu0 %v4432_v36  ;;  %1071 = vmatprep.subr.bf16.mxu1 %v4457_v40 }
  0x64   :  { %1029 = vmatpush1.bf16.msra.mxu0 %v4452_v39  ;;  %1072 = vmatpush1.bf16.msra.mxu1 %v4469_v42 }
  0x65   :  { %1030 = vmatprep.subr.bf16.mxu0 %v4464_v41  ;;  %1073 = vmatprep.subr.bf16.mxu1 %v4487_v45 }
  0x68   :  { %1031 = vmatpush1.bf16.msra.mxu0 %v4481_v44  ;;  %1074 = vmatpush1.bf16.msra.mxu1 %v4497_v47 }
  0x69   :  { %1032 = vmatprep.subr.bf16.mxu0 %v4492_v46  ;;  %1075 = vmatprep.subr.bf16.mxu1 %v4503_v48 }
  0x6c   :  { %1033 = vmatpush1.bf16.msra.mxu0 %v4512_v49  ;;  %1076 = vmatpush1.bf16.msra.mxu1 %v4523_v50 }
  0x6d   :  { %1381 = vmatprep.subr.bf16.mxu0 %v4311_v11  ;;  %1424 = vmatprep.subr.bf16.mxu1 %v4316_v16 }
 0x122   :  { %v690_v62 = vpop.f32.mrb[0].mxu0  ;;  %v733_v63 = vpop.f32.mrb[0].mxu1 }
 0x123   :  { %v3780_v0 = vadd.f32 %v690_v62, %v4597_v59  ;;  %v692_v1 = vpop.f32.mrb[1].mxu0  ;;  %v735_v2 = vpop.f32.mrb[1].mxu1  ;;  %v3812_v5 = vadd.f32 %v733_v63, %v4609_v43 }
 0x124   :  { %v3781_v3 = vadd.f32 %v692_v1, %v4599_v60  ;;  %v694_v6 = vpop.f32.mrb[2].mxu0  ;;  %v737_v7 = vpop.f32.mrb[2].mxu1  ;;  %v3813_v51 = vadd.f32 %v735_v2, %v4606_v14 }
 0x125   :  { %v3415_v9 = vmul.f32 -1.442695, %v3780_v0  ;;  %v3782_v10 = vadd.f32 %v694_v6, %v4597_v59  ;;  %v696_v12 = vpop.f32.mrb[3].mxu0  ;;  %v739_v13 = vpop.f32.mrb[3].mxu1  ;;  %v3814_v54 = vadd.f32 %v737_v7, %v4609_v43 }
 0x126   :  { %v3417_v15 = vmul.f32 -1.442695, %v3781_v3  ;;  %v3783_v17 = vadd.f32 %v696_v12, %v4599_v60  ;;  %v3419_v52 = vmul.f32 -1.442695, %v3813_v51  ;;  %v3815_v53 = vadd.f32 %v739_v13, %v4606_v14 }
 0x127   :  { %4016 = vpow2.f32 %v3415_v9  ;;  %v3416_v25 = vmul.f32 -1.442695, %v3782_v10 }
 0x128   :  { %4018 = vpow2.f32 %v3417_v15  ;;  %v3418_v34 = vmul.f32 -1.442695, %v3783_v17  ;;  %v3420_v61 = vmul.f32 -1.442695, %v3815_v53 }
 0x129   :  { %4020 = vpow2.f32 %v3416_v25 }
 0x12a   :  { %4022 = vpow2.f32 %v3418_v34 }
 0x12b   :  { %4024 = vtanh.f32 %v3812_v5 }
 0x12c   :  { %4026 = vpow2.f32 %v3419_v52 }
 0x12d   :  { %4028 = vtanh.f32 %v3814_v54 }
 0x131   :  { %v4017_v55 = vpop.eup %4016 }
 0x132   :  { %v4019_v56 = vpop.eup %4018  ;;  %v756_v58 = vadd.f32 1.0, %v4017_v55 }
 0x133   :  { %v768_v62 = vadd.f32 1.0, %v4019_v56  ;;  %v4021_v57 = vpop.eup %4020 }
 0x134   :  { %4030 = vrcp.f32 %v756_v58  ;;  %v757_v0 = vadd.f32 1.0, %v4021_v57  ;;  %v4023_v1 = vpop.eup %4022 }
 0x135   :  { %4032 = vrcp.f32 %v768_v62  ;;  %v769_v63 = vadd.f32 1.0, %v4023_v1  ;;  %v4025_v2 = vpop.eup %4024 }
 0x136   :  { %4034 = vpow2.f32 %v3420_v61  ;;  %v4027_v3 = vpop.eup %4026 }
 0x137   :  { %4036 = vrcp.f32 %v757_v0  ;;  %v4029_v6 = vpop.eup %4028  ;;  %v782_v15 = vadd.f32 1.0, %v4027_v3 }
 0x138   :  { %4038 = vrcp.f32 %v769_v63 }
 0x139   :  { %4040 = vrcp.f32 %v782_v15 }
 0x13e   :  { %v4031_v7 = vpop.eup %4030 }
 0x13f   :  { %v4033_v8 = vpop.eup %4032  ;;  %v790_v9 = vmul.f32 %v4031_v7, %v4025_v2 }
 0x140   :  { %v4035_v10 = vpop.eup %4034  ;;  %v788_v12 = vmul.f32 0.0, %v4033_v8 }
 0x141   :  { %v4037_v13 = vpop.eup %4036  ;;  %v783_v51 = vadd.f32 1.0, %v4035_v10 }
 0x142   :  { %v4615_v17 = vadd.f32 %v790_v9, %v788_v12  ;;  %v791_v25 = vmul.f32 %v4037_v13, %v4029_v6  ;;  %v4039_v34 = vpop.eup %4038 }
 0x143   :  { %v789_v5 = vmul.f32 0.0, %v4039_v34  ;;  %v4041_v53 = vpop.eup %4040 }
 0x144   :  { %4042 = vtanh.f32 %v4615_v17 }
 0x145   :  { %v4618_v52 = vadd.f32 %v791_v25, %v789_v5  ;;  %4044 = vrcp.f32 %v783_v51 }
 0x147   :  { %4046 = vtanh.f32 %v4618_v52 }
 0x14e   :  { %v4043_v54 = vpop.eup %4042 }
 0x14f   :  { %v4045_v55 = vpop.eup %4044  ;;  %v796_v58 = vmul.f32 %v4043_v54, %v4041_v53 }
 0x151   :  { %v4047_v56 = vpop.eup %4046 }
 0x152   :  { %v797_v61 = vmul.f32 %v4047_v56, %v4045_v55 }
 0x154   :  { %v3736_v62 = vpack.c.bf16 %v797_v61, %v796_v58 }
 0x156   :  { %3737 = vst [vmem:[%s5117_s4] sm:$0xff] %v3736_v62   ;;  %1051 = vmatmul.mubr.bf16.vlgmr.msra.gmra.mrb[4].mxu0 %v3736_v62  ;;  %1094 = vmatmul.mubr.bf16.vlgmr.msra.gmra.mrb[4].mxu1 %v3736_v62 }
 0x157   :  { %1382 = vmatpush1.bf16.msra.mxu0 %v4324_v18  ;;  %1425 = vmatpush1.bf16.msra.mxu1 %v4336_v20 }
 0x158   :  { %1383 = vmatprep.subr.bf16.mxu0 %v4330_v19  ;;  %1426 = vmatprep.subr.bf16.mxu1 %v4343_v21 }
 0x159   :  { %1413 = vmatprep.mubr.bf16.mxu0 %v4273_v4  ;;  %1456 = vmatprep.mubr.bf16.mxu1 %v4273_v4 }
 0x15b   :  { %1384 = vmatpush1.bf16.msra.mxu0 %v4350_v22  ;;  %1427 = vmatpush1.bf16.msra.mxu1 %v4363_v24 }
 0x15c   :  { %1385 = vmatprep.subr.bf16.mxu0 %v4357_v23  ;;  %1428 = vmatprep.subr.bf16.mxu1 %v4379_v27 }
 0x15f   :  { %1386 = vmatpush1.bf16.msra.mxu0 %v4373_v26  ;;  %1429 = vmatpush1.bf16.msra.mxu1 %v4390_v29 }
 0x160   :  { %1387 = vmatprep.subr.bf16.mxu0 %v4384_v28  ;;  %1430 = vmatprep.subr.bf16.mxu1 %v4397_v30 }
 0x163   :  { %1388 = vmatpush1.bf16.msra.mxu0 %v4405_v31  ;;  %1431 = vmatpush1.bf16.msra.mxu1 %v4418_v33 }
 0x164   :  { %1389 = vmatprep.subr.bf16.mxu0 %v4412_v32  ;;  %1432 = vmatprep.subr.bf16.mxu1 %v4438_v37 }
 0x167   :  { %1390 = vmatpush1.bf16.msra.mxu0 %v4427_v35  ;;  %1433 = vmatpush1.bf16.msra.mxu1 %v4445_v38 }
 0x168   :  { %1391 = vmatprep.subr.bf16.mxu0 %v4432_v36  ;;  %1434 = vmatprep.subr.bf16.mxu1 %v4457_v40 }
 0x16b   :  { %1392 = vmatpush1.bf16.msra.mxu0 %v4452_v39  ;;  %1435 = vmatpush1.bf16.msra.mxu1 %v4469_v42 }
 0x16c   :  { %1393 = vmatprep.subr.bf16.mxu0 %v4464_v41  ;;  %1436 = vmatprep.subr.bf16.mxu1 %v4487_v45 }
 0x16f   :  { %1394 = vmatpush1.bf16.msra.mxu0 %v4481_v44  ;;  %1437 = vmatpush1.bf16.msra.mxu1 %v4497_v47 }
 0x170   :  { %1395 = vmatprep.subr.bf16.mxu0 %v4492_v46  ;;  %1438 = vmatprep.subr.bf16.mxu1 %v4503_v48 }
 0x173   :  { %1396 = vmatpush1.bf16.msra.mxu0 %v4512_v49  ;;  %1439 = vmatpush1.bf16.msra.mxu1 %v4523_v50 }
 0x174   :  { %1744 = vmatprep.subr.bf16.mxu0 %v4311_v11  ;;  %1787 = vmatprep.subr.bf16.mxu1 %v4316_v16 }
 0x229   :  { %v1052_v57 = vpop.f32.mrb[4].mxu0  ;;  %v1095_v0 = vpop.f32.mrb[4].mxu1 }
 0x22a   :  { %v3784_v1 = vadd.f32 %v1052_v57, %v4597_v59  ;;  %v1054_v63 = vpop.f32.mrb[5].mxu0  ;;  %v1097_v2 = vpop.f32.mrb[5].mxu1  ;;  %v3816_v34 = vadd.f32 %v1095_v0, %v4609_v43 }
 0x22b   :  { %v3785_v3 = vadd.f32 %v1054_v63, %v4599_v60  ;;  %v1056_v6 = vpop.f32.mrb[6].mxu0  ;;  %v1099_v7 = vpop.f32.mrb[6].mxu1  ;;  %v3817_v25 = vadd.f32 %v1097_v2, %v4606_v14 }
 0x22c   :  { %v3455_v8 = vmul.f32 -1.442695, %v3784_v1  ;;  %v3786_v9 = vadd.f32 %v1056_v6, %v4597_v59  ;;  %v1058_v10 = vpop.f32.mrb[7].mxu0  ;;  %v1101_v12 = vpop.f32.mrb[7].mxu1  ;;  %v3818_v53 = vadd.f32 %v1099_v7, %v4609_v43 }
 0x22d   :  { %v3457_v13 = vmul.f32 -1.442695, %v3785_v3  ;;  %v3787_v11 = vadd.f32 %v1058_v10, %v4599_v60  ;;  %v3459_v51 = vmul.f32 -1.442695, %v3817_v25  ;;  %v3819_v5 = vadd.f32 %v1101_v12, %v4606_v14 }
 0x22e   :  { %4048 = vpow2.f32 %v3455_v8  ;;  %v3456_v16 = vmul.f32 -1.442695, %v3786_v9 }
 0x22f   :  { %4050 = vpow2.f32 %v3457_v13  ;;  %v3458_v15 = vmul.f32 -1.442695, %v3787_v11  ;;  %v3460_v58 = vmul.f32 -1.442695, %v3819_v5 }
 0x230   :  { %4052 = vpow2.f32 %v3456_v16 }
 0x231   :  { %4054 = vpow2.f32 %v3458_v15 }
 0x232   :  { %4056 = vtanh.f32 %v3816_v34 }
 0x233   :  { %4058 = vpow2.f32 %v3459_v51 }
 0x234   :  { %4060 = vtanh.f32 %v3818_v53 }
 0x238   :  { %v4049_v54 = vpop.eup %4048 }
 0x239   :  { %v4051_v55 = vpop.eup %4050  ;;  %v1118_v56 = vadd.f32 1.0, %v4049_v54 }
 0x23a   :  { %v1130_v61 = vadd.f32 1.0, %v4051_v55  ;;  %v4053_v62 = vpop.eup %4052 }
 0x23b   :  { %4062 = vrcp.f32 %v1118_v56  ;;  %v1119_v57 = vadd.f32 1.0, %v4053_v62  ;;  %v4055_v1 = vpop.eup %4054 }
 0x23c   :  { %4064 = vrcp.f32 %v1130_v61  ;;  %v1131_v0 = vadd.f32 1.0, %v4055_v1  ;;  %v4057_v63 = vpop.eup %4056 }
 0x23d   :  { %4066 = vpow2.f32 %v3460_v58  ;;  %v4059_v2 = vpop.eup %4058 }
 0x23e   :  { %4068 = vrcp.f32 %v1119_v57  ;;  %v4061_v3 = vpop.eup %4060  ;;  %v1144_v13 = vadd.f32 1.0, %v4059_v2 }
 0x23f   :  { %4070 = vrcp.f32 %v1131_v0 }
 0x240   :  { %4072 = vrcp.f32 %v1144_v13 }
 0x245   :  { %v4063_v6 = vpop.eup %4062 }
 0x246   :  { %v4065_v7 = vpop.eup %4064  ;;  %v1152_v8 = vmul.f32 %v4063_v6, %v4057_v63 }
 0x247   :  { %v4067_v9 = vpop.eup %4066  ;;  %v1150_v10 = vmul.f32 %v4065_v7, %v4615_v17 }
 0x248   :  { %v4069_v12 = vpop.eup %4068  ;;  %v1145_v25 = vadd.f32 1.0, %v4067_v9 }
 0x249   :  { %v4667_v11 = vadd.f32 %v1152_v8, %v1150_v10  ;;  %v1153_v16 = vmul.f32 %v4069_v12, %v4061_v3  ;;  %v4071_v15 = vpop.eup %4070 }
 0x24a   :  { %v1151_v34 = vmul.f32 %v4071_v15, %v4618_v52  ;;  %v4073_v5 = vpop.eup %4072 }
 0x24b   :  { %4074 = vtanh.f32 %v4667_v11 }
 0x24c   :  { %v4671_v51 = vadd.f32 %v1153_v16, %v1151_v34  ;;  %4076 = vrcp.f32 %v1145_v25 }
 0x24e   :  { %4078 = vtanh.f32 %v4671_v51 }
 0x255   :  { %v4075_v53 = vpop.eup %4074 }
 0x256   :  { %v4077_v17 = vpop.eup %4076  ;;  %v1158_v55 = vmul.f32 %v4075_v53, %v4073_v5 }
 0x258   :  { %v4079_v54 = vpop.eup %4078 }
 0x259   :  { %v1159_v56 = vmul.f32 %v4079_v54, %v4077_v17  ;;  %v4738_v17 = vld [vmem:[%s5115_s2 + $0xc] ss:$16 sps:$4 sm:$0xff]   ;;  %v4743_v54 = vld [vmem:[%s5115_s2] ss:$16 sps:$4 sm:$0xff]  }
 0x25b   :  { %v3741_v58 = vpack.c.bf16 %v1159_v56, %v1158_v55  ;;  %v4748_v55 = vld [vmem:[%s5115_s2 + $0x8] ss:$16 sps:$4 sm:$0xff]   ;;  %v4757_v56 = vld [vmem:[%s5115_s2 + $0x24] ss:$16 sps:$4 sm:$0xff]  }
 0x25d   :  { %3773 = vst [vmem:[%s5117_s4 + $0x8] sm:$0xff] %v3741_v58   ;;  %1414 = vmatmul.mubr.bf16.vlgmr.msra.gmra.mrb[8].mxu0 %v3741_v58  ;;  %1457 = vmatmul.mubr.bf16.vlgmr.msra.gmra.mrb[8].mxu1 %v3741_v58  ;;  %v4762_v58 = vld [vmem:[%s5115_s2 + $0x2c] ss:$16 sps:$4 sm:$0xff]  }
 0x25e   :  { %1745 = vmatpush1.bf16.msra.mxu0 %v4324_v18  ;;  %1788 = vmatpush1.bf16.msra.mxu1 %v4336_v20 }
 0x25f   :  { %1746 = vmatprep.subr.bf16.mxu0 %v4330_v19  ;;  %1789 = vmatprep.subr.bf16.mxu1 %v4343_v21 }
 0x260   :  { %1776 = vmatprep.mubr.bf16.mxu0 %v4273_v4  ;;  %1819 = vmatprep.mubr.bf16.mxu1 %v4273_v4 }
 0x262   :  { %1747 = vmatpush1.bf16.msra.mxu0 %v4350_v22  ;;  %1790 = vmatpush1.bf16.msra.mxu1 %v4363_v24 }
 0x263   :  { %1748 = vmatprep.subr.bf16.mxu0 %v4357_v23  ;;  %1791 = vmatprep.subr.bf16.mxu1 %v4379_v27 }
 0x266   :  { %1749 = vmatpush1.bf16.msra.mxu0 %v4373_v26  ;;  %1792 = vmatpush1.bf16.msra.mxu1 %v4390_v29 }
 0x267   :  { %1750 = vmatprep.subr.bf16.mxu0 %v4384_v28  ;;  %1793 = vmatprep.subr.bf16.mxu1 %v4397_v30 }
 0x26a   :  { %1751 = vmatpush1.bf16.msra.mxu0 %v4405_v31  ;;  %1794 = vmatpush1.bf16.msra.mxu1 %v4418_v33 }
 0x26b   :  { %1752 = vmatprep.subr.bf16.mxu0 %v4412_v32  ;;  %1795 = vmatprep.subr.bf16.mxu1 %v4438_v37 }
 0x26e   :  { %1753 = vmatpush1.bf16.msra.mxu0 %v4427_v35  ;;  %1796 = vmatpush1.bf16.msra.mxu1 %v4445_v38 }
 0x26f   :  { %1754 = vmatprep.subr.bf16.mxu0 %v4432_v36  ;;  %1797 = vmatprep.subr.bf16.mxu1 %v4457_v40 }
 0x272   :  { %1755 = vmatpush1.bf16.msra.mxu0 %v4452_v39  ;;  %1798 = vmatpush1.bf16.msra.mxu1 %v4469_v42 }
 0x273   :  { %1756 = vmatprep.subr.bf16.mxu0 %v4464_v41  ;;  %1799 = vmatprep.subr.bf16.mxu1 %v4487_v45 }
 0x276   :  { %1757 = vmatpush1.bf16.msra.mxu0 %v4481_v44  ;;  %1800 = vmatpush1.bf16.msra.mxu1 %v4497_v47 }
 0x277   :  { %1758 = vmatprep.subr.bf16.mxu0 %v4492_v46  ;;  %1801 = vmatprep.subr.bf16.mxu1 %v4503_v48 }
 0x27a   :  { %1759 = vmatpush1.bf16.msra.mxu0 %v4512_v49  ;;  %1802 = vmatpush1.bf16.msra.mxu1 %v4523_v50 }
 0x27b   :  { %2150 = vmatprep.subr.bf16.mxu1 %v4738_v17 }
 0x330   :  { %v1415_v18 = vpop.f32.mrb[8].mxu0  ;;  %v1458_v19 = vpop.f32.mrb[8].mxu1 }
 0x331   :  { %v3788_v20 = vadd.f32 %v1415_v18, %v4597_v59  ;;  %v1417_v21 = vpop.f32.mrb[9].mxu0  ;;  %v1460_v22 = vpop.f32.mrb[9].mxu1  ;;  %v3820_v37 = vadd.f32 %v1458_v19, %v4609_v43  ;;  %v4767_v18 = vld [vmem:[%s5115_s2 + $0x20] ss:$16 sps:$4 sm:$0xff]   ;;  %v4772_v19 = vld [vmem:[%s5115_s2 + $0x28] ss:$16 sps:$4 sm:$0xff]  }
 0x332   :  { %v3789_v23 = vadd.f32 %v1417_v21, %v4599_v60  ;;  %v1419_v24 = vpop.f32.mrb[10].mxu0  ;;  %v1462_v26 = vpop.f32.mrb[10].mxu1  ;;  %v3821_v36 = vadd.f32 %v1460_v22, %v4606_v14  ;;  %v4786_v21 = vld [vmem:[%s5115_s2 + $0x4c] ss:$16 sps:$4 sm:$0xff]   ;;  %v4791_v22 = vld [vmem:[%s5115_s2 + $0x40] ss:$16 sps:$4 sm:$0xff]  }
 0x333   :  { %v3497_v27 = vmul.f32 -1.442695, %v3788_v20  ;;  %v3790_v28 = vadd.f32 %v1419_v24, %v4597_v59  ;;  %v1421_v29 = vpop.f32.mrb[11].mxu0  ;;  %v1464_v30 = vpop.f32.mrb[11].mxu1  ;;  %v3822_v40 = vadd.f32 %v1462_v26, %v4609_v43  ;;  %v4781_v20 = vld [vmem:[%s5115_s2 + $0x44] ss:$16 sps:$4 sm:$0xff]  }
 0x334   :  { %v3499_v31 = vmul.f32 -1.442695, %v3789_v23  ;;  %v3791_v32 = vadd.f32 %v1421_v29, %v4599_v60  ;;  %v3501_v38 = vmul.f32 -1.442695, %v3821_v36  ;;  %v3823_v39 = vadd.f32 %v1464_v30, %v4606_v14  ;;  %v4796_v23 = vld [vmem:[%s5115_s2 + $0x48] ss:$16 sps:$4 sm:$0xff]  }
 0x335   :  { %4080 = vpow2.f32 %v3497_v27  ;;  %v3498_v33 = vmul.f32 -1.442695, %v3790_v28  ;;  %v4805_v24 = vld [vmem:[%s5115_s2 + $0x64] ss:$16 sps:$4 sm:$0xff]   ;;  %v4810_v26 = vld [vmem:[%s5115_s2 + $0x6c] ss:$16 sps:$4 sm:$0xff]  }
 0x336   :  { %4082 = vpow2.f32 %v3499_v31  ;;  %v3500_v35 = vmul.f32 -1.442695, %v3791_v32  ;;  %v3502_v45 = vmul.f32 -1.442695, %v3823_v39  ;;  %v4815_v27 = vld [vmem:[%s5115_s2 + $0x60] ss:$16 sps:$4 sm:$0xff]  }
 0x337   :  { %4084 = vpow2.f32 %v3498_v33  ;;  %v4820_v28 = vld [vmem:[%s5115_s2 + $0x68] ss:$16 sps:$4 sm:$0xff]   ;;  %v4829_v29 = vld [vmem:[%s5115_s2 + $0x84] ss:$16 sps:$4 sm:$0xff]   ;;  %v4834_v30 = vld [vmem:[%s5115_s2 + $0x8c] ss:$16 sps:$4 sm:$0xff]  }
 0x338   :  { %4086 = vpow2.f32 %v3500_v35  ;;  %v4839_v31 = vld [vmem:[%s5115_s2 + $0x80] ss:$16 sps:$4 sm:$0xff]   ;;  %v4844_v32 = vld [vmem:[%s5115_s2 + $0x88] ss:$16 sps:$4 sm:$0xff]   ;;  %v4851_v33 = vld [vmem:[%s5115_s2 + $0xa4] ss:$16 sps:$4 sm:$0xff]  }
 0x339   :  { %4088 = vtanh.f32 %v3820_v37  ;;  %v4856_v35 = vld [vmem:[%s5115_s2 + $0xac] ss:$16 sps:$4 sm:$0xff]   ;;  %v4863_v36 = vld [vmem:[%s5115_s2 + $0xa0] ss:$16 sps:$4 sm:$0xff]   ;;  %v4868_v37 = vld [vmem:[%s5115_s2 + $0xa8] ss:$16 sps:$4 sm:$0xff]  }
 0x33a   :  { %4090 = vpow2.f32 %v3501_v38  ;;  %v4875_v38 = vld [vmem:[%s5115_s2 + $0xc4] ss:$16 sps:$4 sm:$0xff]   ;;  %v4880_v39 = vld [vmem:[%s5115_s2 + $0xcc] ss:$16 sps:$4 sm:$0xff]  }
 0x33b   :  { %4092 = vtanh.f32 %v3822_v40  ;;  %v4887_v40 = vld [vmem:[%s5115_s2 + $0xc0] ss:$16 sps:$4 sm:$0xff]  }
 0x33f   :  { %v4081_v41 = vpop.eup %4080 }
 0x340   :  { %v4083_v42 = vpop.eup %4082  ;;  %v1481_v44 = vadd.f32 1.0, %v4081_v41  ;;  %v4892_v41 = vld [vmem:[%s5115_s2 + $0xc8] ss:$16 sps:$4 sm:$0xff]  }
 0x341   :  { %v1493_v46 = vadd.f32 1.0, %v4083_v42  ;;  %v4085_v47 = vpop.eup %4084  ;;  %v4899_v42 = vld [vmem:[%s5115_s2 + $0xe4] ss:$16 sps:$4 sm:$0xff]  }
 0x342   :  { %4094 = vrcp.f32 %v1481_v44  ;;  %v1482_v48 = vadd.f32 1.0, %v4085_v47  ;;  %v4087_v49 = vpop.eup %4086  ;;  %v4904_v44 = vld [vmem:[%s5115_s2 + $0xec] ss:$16 sps:$4 sm:$0xff]  }
 0x343   :  { %4096 = vrcp.f32 %v1493_v46  ;;  %v1494_v50 = vadd.f32 1.0, %v4087_v49  ;;  %v4089_v52 = vpop.eup %4088  ;;  %v4916_v46 = vld [vmem:[%s5115_s2 + $0xe8] ss:$16 sps:$4 sm:$0xff]  }
 0x344   :  { %4098 = vpow2.f32 %v3502_v45  ;;  %v4091_v61 = vpop.eup %4090  ;;  %v4911_v45 = vld [vmem:[%s5115_s2 + $0xe0] ss:$16 sps:$4 sm:$0xff]  }
 0x345   :  { %4100 = vrcp.f32 %v1482_v48  ;;  %v4093_v62 = vpop.eup %4092  ;;  %v1507_v6 = vadd.f32 1.0, %v4091_v61 }
 0x346   :  { %4102 = vrcp.f32 %v1494_v50 }
 0x347   :  { %4104 = vrcp.f32 %v1507_v6 }
 0x34c   :  { %v4095_v57 = vpop.eup %4094 }
 0x34d   :  { %v4097_v1 = vpop.eup %4096  ;;  %v1515_v0 = vmul.f32 %v4095_v57, %v4089_v52 }
 0x34e   :  { %v4099_v63 = vpop.eup %4098  ;;  %v1513_v2 = vmul.f32 %v4097_v1, %v4667_v11 }
 0x34f   :  { %v4101_v3 = vpop.eup %4100  ;;  %v1508_v10 = vadd.f32 1.0, %v4099_v63 }
 0x350   :  { %v4718_v7 = vadd.f32 %v1515_v0, %v1513_v2  ;;  %v1516_v8 = vmul.f32 %v4101_v3, %v4093_v62  ;;  %v4103_v9 = vpop.eup %4102 }
 0x351   :  { %v1514_v12 = vmul.f32 %v4103_v9, %v4671_v51  ;;  %v4105_v16 = vpop.eup %4104  ;;  %v4733_v51 = vld [vmem:[%s5115_s2 + $0x4] ss:$16 sps:$4 sm:$0xff]  }
 0x352   :  { %4106 = vtanh.f32 %v4718_v7  ;;  %2107 = vmatprep.subr.bf16.mxu0 %v4733_v51 }
 0x353   :  { %v4722_v13 = vadd.f32 %v1516_v8, %v1514_v12  ;;  %4108 = vrcp.f32 %v1508_v10 }
 0x355   :  { %4110 = vtanh.f32 %v4722_v13 }
 0x35c   :  { %v4107_v15 = vpop.eup %4106 }
 0x35d   :  { %v4109_v11 = vpop.eup %4108  ;;  %v1521_v34 = vmul.f32 %v4107_v15, %v4105_v16 }
 0x35f   :  { %v4111_v25 = vpop.eup %4110 }
 0x360   :  { %v1522_v5 = vmul.f32 %v4111_v25, %v4109_v11 }
 0x362   :  { %v3746_v53 = vpack.c.bf16 %v1522_v5, %v1521_v34 }
 0x364   :  { %3774 = vst [vmem:[%s5117_s4 + $0x10] sm:$0xff] %v3746_v53   ;;  %1777 = vmatmul.mubr.bf16.vlgmr.msra.gmra.mrb[12].mxu0 %v3746_v53  ;;  %1820 = vmatmul.mubr.bf16.vlgmr.msra.gmra.mrb[12].mxu1 %v3746_v53 }
 0x365   :  { %2139 = vmatprep.mubr.bf16.mxu0 %v4273_v4  ;;  %2182 = vmatprep.mubr.bf16.mxu1 %v4273_v4 }
 0x366   :  { %2108 = vmatpush1.bf16.msra.mxu0 %v4743_v54  ;;  %2151 = vmatpush1.bf16.msra.mxu1 %v4748_v55 }
 0x367   :  { %2109 = vmatprep.subr.bf16.mxu0 %v4757_v56  ;;  %2152 = vmatprep.subr.bf16.mxu1 %v4762_v58 }
 0x36a   :  { %2110 = vmatpush1.bf16.msra.mxu0 %v4767_v18  ;;  %2153 = vmatpush1.bf16.msra.mxu1 %v4772_v19 }
 0x36b   :  { %2111 = vmatprep.subr.bf16.mxu0 %v4781_v20  ;;  %2154 = vmatprep.subr.bf16.mxu1 %v4786_v21 }
 0x36e   :  { %2112 = vmatpush1.bf16.msra.mxu0 %v4791_v22  ;;  %2155 = vmatpush1.bf16.msra.mxu1 %v4796_v23 }
 0x36f   :  { %2113 = vmatprep.subr.bf16.mxu0 %v4805_v24  ;;  %2156 = vmatprep.subr.bf16.mxu1 %v4810_v26 }
 0x372   :  { %2114 = vmatpush1.bf16.msra.mxu0 %v4815_v27  ;;  %2157 = vmatpush1.bf16.msra.mxu1 %v4820_v28 }
 0x373   :  { %2115 = vmatprep.subr.bf16.mxu0 %v4829_v29  ;;  %2158 = vmatprep.subr.bf16.mxu1 %v4834_v30 }
 0x376   :  { %2116 = vmatpush1.bf16.msra.mxu0 %v4839_v31  ;;  %2159 = vmatpush1.bf16.msra.mxu1 %v4844_v32 }
 0x377   :  { %2117 = vmatprep.subr.bf16.mxu0 %v4851_v33  ;;  %2160 = vmatprep.subr.bf16.mxu1 %v4856_v35 }
 0x37a   :  { %2118 = vmatpush1.bf16.msra.mxu0 %v4863_v36  ;;  %2161 = vmatpush1.bf16.msra.mxu1 %v4868_v37 }
 0x37b   :  { %2119 = vmatprep.subr.bf16.mxu0 %v4875_v38  ;;  %2162 = vmatprep.subr.bf16.mxu1 %v4880_v39 }
 0x37e   :  { %2120 = vmatpush1.bf16.msra.mxu0 %v4887_v40  ;;  %2163 = vmatpush1.bf16.msra.mxu1 %v4892_v41 }
 0x37f   :  { %2121 = vmatprep.subr.bf16.mxu0 %v4899_v42  ;;  %2164 = vmatprep.subr.bf16.mxu1 %v4904_v44 }
 0x382   :  { %2122 = vmatpush1.bf16.msra.mxu0 %v4911_v45  ;;  %2165 = vmatpush1.bf16.msra.mxu1 %v4916_v46 }
 0x383   :  { %2470 = vmatprep.subr.bf16.mxu0 %v4733_v51  ;;  %2513 = vmatprep.subr.bf16.mxu1 %v4738_v17 }
 0x437   :  { %v1778_v47 = vpop.f32.mrb[12].mxu0  ;;  %v1821_v48 = vpop.f32.mrb[12].mxu1 }
 0x438   :  { %v3792_v49 = vadd.f32 %v1778_v47, %v4597_v59  ;;  %v1780_v50 = vpop.f32.mrb[13].mxu0  ;;  %v1823_v52 = vpop.f32.mrb[13].mxu1  ;;  %v3824_v12 = vadd.f32 %v1821_v48, %v4609_v43 }
 0x439   :  { %v3793_v61 = vadd.f32 %v1780_v50, %v4599_v60  ;;  %v1782_v62 = vpop.f32.mrb[14].mxu0  ;;  %v1825_v57 = vpop.f32.mrb[14].mxu1  ;;  %v3825_v10 = vadd.f32 %v1823_v52, %v4606_v14 }
 0x43a   :  { %v3539_v1 = vmul.f32 -1.442695, %v3792_v49  ;;  %v3794_v0 = vadd.f32 %v1782_v62, %v4597_v59  ;;  %v1784_v63 = vpop.f32.mrb[15].mxu0  ;;  %v1827_v2 = vpop.f32.mrb[15].mxu1  ;;  %v3826_v11 = vadd.f32 %v1825_v57, %v4609_v43 }
 0x43b   :  { %v3541_v3 = vmul.f32 -1.442695, %v3793_v61  ;;  %v3795_v6 = vadd.f32 %v1784_v63, %v4599_v60  ;;  %v3543_v16 = vmul.f32 -1.442695, %v3825_v10  ;;  %v3827_v15 = vadd.f32 %v1827_v2, %v4606_v14 }
 0x43c   :  { %4112 = vpow2.f32 %v3539_v1  ;;  %v3540_v8 = vmul.f32 -1.442695, %v3794_v0 }
 0x43d   :  { %4114 = vpow2.f32 %v3541_v3  ;;  %v3542_v9 = vmul.f32 -1.442695, %v3795_v6  ;;  %v3544_v53 = vmul.f32 -1.442695, %v3827_v15 }
 0x43e   :  { %4116 = vpow2.f32 %v3540_v8 }
 0x43f   :  { %4118 = vpow2.f32 %v3542_v9 }
 0x440   :  { %4120 = vtanh.f32 %v3824_v12 }
 0x441   :  { %4122 = vpow2.f32 %v3543_v16 }
 0x442   :  { %4124 = vtanh.f32 %v3826_v11 }
 0x446   :  { %v4113_v25 = vpop.eup %4112 }
 0x447   :  { %v4115_v34 = vpop.eup %4114  ;;  %v1844_v5 = vadd.f32 1.0, %v4113_v25 }
 0x448   :  { %v1856_v47 = vadd.f32 1.0, %v4115_v34  ;;  %v4117_v49 = vpop.eup %4116 }
 0x449   :  { %4126 = vrcp.f32 %v1844_v5  ;;  %v1845_v50 = vadd.f32 1.0, %v4117_v49  ;;  %v4119_v52 = vpop.eup %4118 }
 0x44a   :  { %4128 = vrcp.f32 %v1856_v47  ;;  %v1857_v48 = vadd.f32 1.0, %v4119_v52  ;;  %v4121_v61 = vpop.eup %4120 }
 0x44b   :  { %4130 = vpow2.f32 %v3544_v53  ;;  %v4123_v62 = vpop.eup %4122 }
 0x44c   :  { %4132 = vrcp.f32 %v1845_v50  ;;  %v4125_v57 = vpop.eup %4124  ;;  %v1870_v8 = vadd.f32 1.0, %v4123_v62 }
 0x44d   :  { %4134 = vrcp.f32 %v1857_v48 }
 0x44e   :  { %4136 = vrcp.f32 %v1870_v8 }
 0x453   :  { %v4127_v1 = vpop.eup %4126 }
 0x454   :  { %v4129_v0 = vpop.eup %4128  ;;  %v1878_v63 = vmul.f32 %v4127_v1, %v4121_v61 }
 0x455   :  { %v4131_v2 = vpop.eup %4130  ;;  %v1876_v3 = vmul.f32 %v4129_v0, %v4718_v7 }
 0x456   :  { %v4133_v6 = vpop.eup %4132  ;;  %v1871_v16 = vadd.f32 1.0, %v4131_v2 }
 0x457   :  { %v4933_v9 = vadd.f32 %v1878_v63, %v1876_v3  ;;  %v1879_v10 = vmul.f32 %v4133_v6, %v4125_v57  ;;  %v4135_v12 = vpop.eup %4134 }
 0x458   :  { %v1877_v15 = vmul.f32 %v4135_v12, %v4722_v13  ;;  %v4137_v25 = vpop.eup %4136 }
 0x459   :  { %4138 = vtanh.f32 %v4933_v9 }
 0x45a   :  { %v4937_v11 = vadd.f32 %v1879_v10, %v1877_v15  ;;  %4140 = vrcp.f32 %v1871_v16 }
 0x45c   :  { %4142 = vtanh.f32 %v4937_v11 }
 0x463   :  { %v4139_v34 = vpop.eup %4138 }
 0x464   :  { %v4141_v7 = vpop.eup %4140  ;;  %v1884_v53 = vmul.f32 %v4139_v34, %v4137_v25 }
 0x466   :  { %v4143_v5 = vpop.eup %4142 }
 0x467   :  { %v1885_v47 = vmul.f32 %v4143_v5, %v4141_v7 }
 0x469   :  { %v3751_v49 = vpack.c.bf16 %v1885_v47, %v1884_v53 }
 0x46b   :  { %3775 = vst [vmem:[%s5117_s4 + $0x18] sm:$0xff] %v3751_v49   ;;  %2140 = vmatmul.mubr.bf16.vlgmr.msra.gmra.mrb[16].mxu0 %v3751_v49  ;;  %2183 = vmatmul.mubr.bf16.vlgmr.msra.gmra.mrb[16].mxu1 %v3751_v49 }
 0x46c   :  { %2471 = vmatpush1.bf16.msra.mxu0 %v4743_v54  ;;  %2514 = vmatpush1.bf16.msra.mxu1 %v4748_v55 }
 0x46d   :  { %2472 = vmatprep.subr.bf16.mxu0 %v4757_v56  ;;  %2515 = vmatprep.subr.bf16.mxu1 %v4762_v58 }
 0x46e   :  { %2502 = vmatprep.mubr.bf16.mxu0 %v4273_v4  ;;  %2545 = vmatprep.mubr.bf16.mxu1 %v4273_v4 }
 0x470   :  { %2473 = vmatpush1.bf16.msra.mxu0 %v4767_v18  ;;  %2516 = vmatpush1.bf16.msra.mxu1 %v4772_v19 }
 0x471   :  { %2474 = vmatprep.subr.bf16.mxu0 %v4781_v20  ;;  %2517 = vmatprep.subr.bf16.mxu1 %v4786_v21 }
 0x474   :  { %2475 = vmatpush1.bf16.msra.mxu0 %v4791_v22  ;;  %2518 = vmatpush1.bf16.msra.mxu1 %v4796_v23 }
 0x475   :  { %2476 = vmatprep.subr.bf16.mxu0 %v4805_v24  ;;  %2519 = vmatprep.subr.bf16.mxu1 %v4810_v26 }
 0x478   :  { %2477 = vmatpush1.bf16.msra.mxu0 %v4815_v27  ;;  %2520 = vmatpush1.bf16.msra.mxu1 %v4820_v28 }
 0x479   :  { %2478 = vmatprep.subr.bf16.mxu0 %v4829_v29  ;;  %2521 = vmatprep.subr.bf16.mxu1 %v4834_v30 }
 0x47c   :  { %2479 = vmatpush1.bf16.msra.mxu0 %v4839_v31  ;;  %2522 = vmatpush1.bf16.msra.mxu1 %v4844_v32 }
 0x47d   :  { %2480 = vmatprep.subr.bf16.mxu0 %v4851_v33  ;;  %2523 = vmatprep.subr.bf16.mxu1 %v4856_v35 }
 0x480   :  { %2481 = vmatpush1.bf16.msra.mxu0 %v4863_v36  ;;  %2524 = vmatpush1.bf16.msra.mxu1 %v4868_v37 }
 0x481   :  { %2482 = vmatprep.subr.bf16.mxu0 %v4875_v38  ;;  %2525 = vmatprep.subr.bf16.mxu1 %v4880_v39 }
 0x484   :  { %2483 = vmatpush1.bf16.msra.mxu0 %v4887_v40  ;;  %2526 = vmatpush1.bf16.msra.mxu1 %v4892_v41 }
 0x485   :  { %2484 = vmatprep.subr.bf16.mxu0 %v4899_v42  ;;  %2527 = vmatprep.subr.bf16.mxu1 %v4904_v44 }
 0x488   :  { %2485 = vmatpush1.bf16.msra.mxu0 %v4911_v45  ;;  %2528 = vmatpush1.bf16.msra.mxu1 %v4916_v46 }
 0x489   :  { %2833 = vmatprep.subr.bf16.mxu0 %v4733_v51  ;;  %2876 = vmatprep.subr.bf16.mxu1 %v4738_v17 }
 0x53e   :  { %v2141_v13 = vpop.f32.mrb[16].mxu0  ;;  %v2184_v50 = vpop.f32.mrb[16].mxu1 }
 0x53f   :  { %v3796_v52 = vadd.f32 %v2141_v13, %v4597_v59  ;;  %v2143_v48 = vpop.f32.mrb[17].mxu0  ;;  %v2186_v61 = vpop.f32.mrb[17].mxu1  ;;  %v3828_v15 = vadd.f32 %v2184_v50, %v4609_v43 }
 0x540   :  { %v3797_v62 = vadd.f32 %v2143_v48, %v4599_v60  ;;  %v2145_v57 = vpop.f32.mrb[18].mxu0  ;;  %v2188_v1 = vpop.f32.mrb[18].mxu1  ;;  %v3829_v16 = vadd.f32 %v2186_v61, %v4606_v14 }
 0x541   :  { %v3581_v0 = vmul.f32 -1.442695, %v3796_v52  ;;  %v3798_v63 = vadd.f32 %v2145_v57, %v4597_v59  ;;  %v2147_v2 = vpop.f32.mrb[19].mxu0  ;;  %v2190_v3 = vpop.f32.mrb[19].mxu1  ;;  %v3830_v7 = vadd.f32 %v2188_v1, %v4609_v43 }
 0x542   :  { %v3583_v6 = vmul.f32 -1.442695, %v3797_v62  ;;  %v3799_v8 = vadd.f32 %v2147_v2, %v4599_v60  ;;  %v3585_v25 = vmul.f32 -1.442695, %v3829_v16  ;;  %v3831_v34 = vadd.f32 %v2190_v3, %v4606_v14 }
 0x543   :  { %4144 = vpow2.f32 %v3581_v0  ;;  %v3582_v10 = vmul.f32 -1.442695, %v3798_v63 }
 0x544   :  { %4146 = vpow2.f32 %v3583_v6  ;;  %v3584_v12 = vmul.f32 -1.442695, %v3799_v8  ;;  %v3586_v49 = vmul.f32 -1.442695, %v3831_v34 }
 0x545   :  { %4148 = vpow2.f32 %v3582_v10 }
 0x546   :  { %4150 = vpow2.f32 %v3584_v12 }
 0x547   :  { %4152 = vtanh.f32 %v3828_v15 }
 0x548   :  { %4154 = vpow2.f32 %v3585_v25 }
 0x549   :  { %4156 = vtanh.f32 %v3830_v7 }
 0x54d   :  { %v4145_v5 = vpop.eup %4144 }
 0x54e   :  { %v4147_v53 = vpop.eup %4146  ;;  %v2207_v47 = vadd.f32 1.0, %v4145_v5 }
 0x54f   :  { %v2219_v13 = vadd.f32 1.0, %v4147_v53  ;;  %v4149_v52 = vpop.eup %4148 }
 0x550   :  { %4158 = vrcp.f32 %v2207_v47  ;;  %v2208_v48 = vadd.f32 1.0, %v4149_v52  ;;  %v4151_v61 = vpop.eup %4150 }
 0x551   :  { %4160 = vrcp.f32 %v2219_v13  ;;  %v2220_v50 = vadd.f32 1.0, %v4151_v61  ;;  %v4153_v62 = vpop.eup %4152 }
 0x552   :  { %4162 = vpow2.f32 %v3586_v49  ;;  %v4155_v57 = vpop.eup %4154 }
 0x553   :  { %4164 = vrcp.f32 %v2208_v48  ;;  %v4157_v1 = vpop.eup %4156  ;;  %v2233_v10 = vadd.f32 1.0, %v4155_v57 }
 0x554   :  { %4166 = vrcp.f32 %v2220_v50 }
 0x555   :  { %4168 = vrcp.f32 %v2233_v10 }
 0x55a   :  { %v4159_v0 = vpop.eup %4158 }
 0x55b   :  { %v4161_v63 = vpop.eup %4160  ;;  %v2241_v2 = vmul.f32 %v4159_v0, %v4153_v62 }
 0x55c   :  { %v4163_v3 = vpop.eup %4162  ;;  %v2239_v6 = vmul.f32 %v4161_v63, %v4933_v9 }
 0x55d   :  { %v4165_v8 = vpop.eup %4164  ;;  %v2234_v25 = vadd.f32 1.0, %v4163_v3 }
 0x55e   :  { %v4986_v12 = vadd.f32 %v2241_v2, %v2239_v6  ;;  %v2242_v16 = vmul.f32 %v4165_v8, %v4157_v1  ;;  %v4167_v15 = vpop.eup %4166 }
 0x55f   :  { %v2240_v34 = vmul.f32 %v4167_v15, %v4937_v11  ;;  %v4169_v5 = vpop.eup %4168 }
 0x560   :  { %4170 = vtanh.f32 %v4986_v12 }
 0x561   :  { %v4990_v7 = vadd.f32 %v2242_v16, %v2240_v34  ;;  %4172 = vrcp.f32 %v2234_v25 }
 0x563   :  { %4174 = vtanh.f32 %v4990_v7 }
 0x56a   :  { %v4171_v53 = vpop.eup %4170 }
 0x56b   :  { %v4173_v9 = vpop.eup %4172  ;;  %v2247_v49 = vmul.f32 %v4171_v53, %v4169_v5 }
 0x56d   :  { %v4175_v47 = vpop.eup %4174 }
 0x56e   :  { %v2248_v13 = vmul.f32 %v4175_v47, %v4173_v9 }
 0x570   :  { %v3756_v52 = vpack.c.bf16 %v2248_v13, %v2247_v49 }
 0x572   :  { %3776 = vst [vmem:[%s5117_s4 + $0x20] sm:$0xff] %v3756_v52   ;;  %2503 = vmatmul.mubr.bf16.vlgmr.msra.gmra.mrb[20].mxu0 %v3756_v52  ;;  %2546 = vmatmul.mubr.bf16.vlgmr.msra.gmra.mrb[20].mxu1 %v3756_v52 }
 0x573   :  { %2834 = vmatpush1.bf16.msra.mxu0 %v4743_v54  ;;  %2877 = vmatpush1.bf16.msra.mxu1 %v4748_v55 }
 0x574   :  { %2835 = vmatprep.subr.bf16.mxu0 %v4757_v56  ;;  %2878 = vmatprep.subr.bf16.mxu1 %v4762_v58 }
 0x575   :  { %2865 = vmatprep.mubr.bf16.mxu0 %v4273_v4  ;;  %2908 = vmatprep.mubr.bf16.mxu1 %v4273_v4 }
 0x577   :  { %2836 = vmatpush1.bf16.msra.mxu0 %v4767_v18  ;;  %2879 = vmatpush1.bf16.msra.mxu1 %v4772_v19 }
 0x578   :  { %2837 = vmatprep.subr.bf16.mxu0 %v4781_v20  ;;  %2880 = vmatprep.subr.bf16.mxu1 %v4786_v21 }
 0x57b   :  { %2838 = vmatpush1.bf16.msra.mxu0 %v4791_v22  ;;  %2881 = vmatpush1.bf16.msra.mxu1 %v4796_v23 }
 0x57c   :  { %2839 = vmatprep.subr.bf16.mxu0 %v4805_v24  ;;  %2882 = vmatprep.subr.bf16.mxu1 %v4810_v26 }
 0x57f   :  { %2840 = vmatpush1.bf16.msra.mxu0 %v4815_v27  ;;  %2883 = vmatpush1.bf16.msra.mxu1 %v4820_v28 }
 0x580   :  { %2841 = vmatprep.subr.bf16.mxu0 %v4829_v29  ;;  %2884 = vmatprep.subr.bf16.mxu1 %v4834_v30 }
 0x583   :  { %2842 = vmatpush1.bf16.msra.mxu0 %v4839_v31  ;;  %2885 = vmatpush1.bf16.msra.mxu1 %v4844_v32 }
 0x584   :  { %2843 = vmatprep.subr.bf16.mxu0 %v4851_v33  ;;  %2886 = vmatprep.subr.bf16.mxu1 %v4856_v35 }
 0x587   :  { %2844 = vmatpush1.bf16.msra.mxu0 %v4863_v36  ;;  %2887 = vmatpush1.bf16.msra.mxu1 %v4868_v37 }
 0x588   :  { %2845 = vmatprep.subr.bf16.mxu0 %v4875_v38  ;;  %2888 = vmatprep.subr.bf16.mxu1 %v4880_v39 }
 0x58b   :  { %2846 = vmatpush1.bf16.msra.mxu0 %v4887_v40  ;;  %2889 = vmatpush1.bf16.msra.mxu1 %v4892_v41 }
 0x58c   :  { %2847 = vmatprep.subr.bf16.mxu0 %v4899_v42  ;;  %2890 = vmatprep.subr.bf16.mxu1 %v4904_v44 }
 0x58f   :  { %2848 = vmatpush1.bf16.msra.mxu0 %v4911_v45  ;;  %2891 = vmatpush1.bf16.msra.mxu1 %v4916_v46 }
 0x590   :  { %3196 = vmatprep.subr.bf16.mxu0 %v4733_v51  ;;  %3239 = vmatprep.subr.bf16.mxu1 %v4738_v17 }
 0x645   :  { %v2504_v11 = vpop.f32.mrb[20].mxu0  ;;  %v2547_v48 = vpop.f32.mrb[20].mxu1 }
 0x646   :  { %v3800_v61 = vadd.f32 %v2504_v11, %v4597_v59  ;;  %v2506_v50 = vpop.f32.mrb[21].mxu0  ;;  %v2549_v62 = vpop.f32.mrb[21].mxu1  ;;  %v3832_v15 = vadd.f32 %v2547_v48, %v4609_v43 }
 0x647   :  { %v3801_v57 = vadd.f32 %v2506_v50, %v4599_v60  ;;  %v2508_v1 = vpop.f32.mrb[22].mxu0  ;;  %v2551_v0 = vpop.f32.mrb[22].mxu1  ;;  %v3833_v16 = vadd.f32 %v2549_v62, %v4606_v14 }
 0x648   :  { %v3623_v63 = vmul.f32 -1.442695, %v3800_v61  ;;  %v3802_v2 = vadd.f32 %v2508_v1, %v4597_v59  ;;  %v2510_v3 = vpop.f32.mrb[23].mxu0  ;;  %v2553_v6 = vpop.f32.mrb[23].mxu1  ;;  %v3834_v5 = vadd.f32 %v2551_v0, %v4609_v43 }
 0x649   :  { %v3625_v8 = vmul.f32 -1.442695, %v3801_v57  ;;  %v3803_v51 = vadd.f32 %v2510_v3, %v4599_v60  ;;  %v3627_v25 = vmul.f32 -1.442695, %v3833_v16  ;;  %v3835_v34 = vadd.f32 %v2553_v6, %v4606_v14 }
 0x64a   :  { %4176 = vpow2.f32 %v3623_v63  ;;  %v3624_v17 = vmul.f32 -1.442695, %v3802_v2 }
 0x64b   :  { %4178 = vpow2.f32 %v3625_v8  ;;  %v3626_v10 = vmul.f32 -1.442695, %v3803_v51  ;;  %v3628_v49 = vmul.f32 -1.442695, %v3835_v34 }
 0x64c   :  { %4180 = vpow2.f32 %v3624_v17 }
 0x64d   :  { %4182 = vpow2.f32 %v3626_v10 }
 0x64e   :  { %4184 = vtanh.f32 %v3832_v15 }
 0x64f   :  { %4186 = vpow2.f32 %v3627_v25 }
 0x650   :  { %4188 = vtanh.f32 %v3834_v5 }
 0x654   :  { %v4177_v53 = vpop.eup %4176 }
 0x655   :  { %v4179_v9 = vpop.eup %4178  ;;  %v2570_v47 = vadd.f32 1.0, %v4177_v53 }
 0x656   :  { %v2582_v13 = vadd.f32 1.0, %v4179_v9  ;;  %v4181_v52 = vpop.eup %4180 }
 0x657   :  { %4190 = vrcp.f32 %v2570_v47  ;;  %v2571_v11 = vadd.f32 1.0, %v4181_v52  ;;  %v4183_v61 = vpop.eup %4182 }
 0x658   :  { %4192 = vrcp.f32 %v2582_v13  ;;  %v2583_v48 = vadd.f32 1.0, %v4183_v61  ;;  %v4185_v50 = vpop.eup %4184 }
 0x659   :  { %4194 = vpow2.f32 %v3628_v49  ;;  %v4187_v62 = vpop.eup %4186 }
 0x65a   :  { %4196 = vrcp.f32 %v2571_v11  ;;  %v4189_v57 = vpop.eup %4188  ;;  %v2596_v8 = vadd.f32 1.0, %v4187_v62 }
 0x65b   :  { %4198 = vrcp.f32 %v2583_v48 }
 0x65c   :  { %4200 = vrcp.f32 %v2596_v8 }
 0x661   :  { %v4191_v1 = vpop.eup %4190 }
 0x662   :  { %v4193_v0 = vpop.eup %4192  ;;  %v2604_v63 = vmul.f32 %v4191_v1, %v4185_v50 }
 0x663   :  { %v4195_v2 = vpop.eup %4194  ;;  %v2602_v3 = vmul.f32 %v4193_v0, %v4986_v12 }
 0x664   :  { %v4197_v6 = vpop.eup %4196  ;;  %v2597_v16 = vadd.f32 1.0, %v4195_v2 }
 0x665   :  { %v5039_v51 = vadd.f32 %v2604_v63, %v2602_v3  ;;  %v2605_v17 = vmul.f32 %v4197_v6, %v4189_v57  ;;  %v4199_v10 = vpop.eup %4198 }
 0x666   :  { %v2603_v15 = vmul.f32 %v4199_v10, %v4990_v7  ;;  %v4201_v34 = vpop.eup %4200 }
 0x667   :  { %4202 = vtanh.f32 %v5039_v51 }
 0x668   :  { %v5043_v25 = vadd.f32 %v2605_v17, %v2603_v15  ;;  %4204 = vrcp.f32 %v2597_v16 }
 0x66a   :  { %4206 = vtanh.f32 %v5043_v25 }
 0x671   :  { %v4203_v5 = vpop.eup %4202 }
 0x672   :  { %v4205_v12 = vpop.eup %4204  ;;  %v2610_v9 = vmul.f32 %v4203_v5, %v4201_v34 }
 0x674   :  { %v4207_v53 = vpop.eup %4206 }
 0x675   :  { %v2611_v47 = vmul.f32 %v4207_v53, %v4205_v12 }
 0x677   :  { %v3761_v49 = vpack.c.bf16 %v2611_v47, %v2610_v9 }
 0x679   :  { %3777 = vst [vmem:[%s5117_s4 + $0x28] sm:$0xff] %v3761_v49   ;;  %2866 = vmatmul.mubr.bf16.vlgmr.msra.gmra.mrb[24].mxu0 %v3761_v49  ;;  %2909 = vmatmul.mubr.bf16.vlgmr.msra.gmra.mrb[24].mxu1 %v3761_v49 }
 0x67a   :  { %3197 = vmatpush1.bf16.msra.mxu0 %v4743_v54  ;;  %3240 = vmatpush1.bf16.msra.mxu1 %v4748_v55 }
 0x67b   :  { %3198 = vmatprep.subr.bf16.mxu0 %v4757_v56  ;;  %3241 = vmatprep.subr.bf16.mxu1 %v4762_v58 }
 0x67c   :  { %3228 = vmatprep.mubr.bf16.mxu0 %v4273_v4  ;;  %3271 = vmatprep.mubr.bf16.mxu1 %v4273_v4 }
 0x67e   :  { %3199 = vmatpush1.bf16.msra.mxu0 %v4767_v18  ;;  %3242 = vmatpush1.bf16.msra.mxu1 %v4772_v19 }
 0x67f   :  { %3200 = vmatprep.subr.bf16.mxu0 %v4781_v20  ;;  %3243 = vmatprep.subr.bf16.mxu1 %v4786_v21 }
 0x682   :  { %3201 = vmatpush1.bf16.msra.mxu0 %v4791_v22  ;;  %3244 = vmatpush1.bf16.msra.mxu1 %v4796_v23 }
 0x683   :  { %3202 = vmatprep.subr.bf16.mxu0 %v4805_v24  ;;  %3245 = vmatprep.subr.bf16.mxu1 %v4810_v26 }
 0x686   :  { %3203 = vmatpush1.bf16.msra.mxu0 %v4815_v27  ;;  %3246 = vmatpush1.bf16.msra.mxu1 %v4820_v28 }
 0x687   :  { %3204 = vmatprep.subr.bf16.mxu0 %v4829_v29  ;;  %3247 = vmatprep.subr.bf16.mxu1 %v4834_v30 }
 0x68a   :  { %3205 = vmatpush1.bf16.msra.mxu0 %v4839_v31  ;;  %3248 = vmatpush1.bf16.msra.mxu1 %v4844_v32 }
 0x68b   :  { %3206 = vmatprep.subr.bf16.mxu0 %v4851_v33  ;;  %3249 = vmatprep.subr.bf16.mxu1 %v4856_v35 }
 0x68e   :  { %3207 = vmatpush1.bf16.msra.mxu0 %v4863_v36  ;;  %3250 = vmatpush1.bf16.msra.mxu1 %v4868_v37 }
 0x68f   :  { %3208 = vmatprep.subr.bf16.mxu0 %v4875_v38  ;;  %3251 = vmatprep.subr.bf16.mxu1 %v4880_v39 }
 0x692   :  { %3209 = vmatpush1.bf16.msra.mxu0 %v4887_v40  ;;  %3252 = vmatpush1.bf16.msra.mxu1 %v4892_v41 }
 0x693   :  { %3210 = vmatprep.subr.bf16.mxu0 %v4899_v42  ;;  %3253 = vmatprep.subr.bf16.mxu1 %v4904_v44 }
 0x696   :  { %3211 = vmatpush1.bf16.msra.mxu0 %v4911_v45  ;;  %3254 = vmatpush1.bf16.msra.mxu1 %v4916_v46 }
 0x74c   :  { %v2867_v4 = vpop.f32.mrb[24].mxu0  ;;  %v2910_v54 = vpop.f32.mrb[24].mxu1 }
 0x74d   :  { %v3804_v55 = vadd.f32 %v2867_v4, %v4597_v59  ;;  %v2869_v56 = vpop.f32.mrb[25].mxu0  ;;  %v2912_v58 = vpop.f32.mrb[25].mxu1  ;;  %v3836_v31 = vadd.f32 %v2910_v54, %v4609_v43 }
 0x74e   :  { %v3805_v18 = vadd.f32 %v2869_v56, %v4599_v60  ;;  %v2871_v19 = vpop.f32.mrb[26].mxu0  ;;  %v2914_v20 = vpop.f32.mrb[26].mxu1  ;;  %v3837_v30 = vadd.f32 %v2912_v58, %v4606_v14 }
 0x74f   :  { %v3665_v21 = vmul.f32 -1.442695, %v3804_v55  ;;  %v3806_v22 = vadd.f32 %v2871_v19, %v4597_v59  ;;  %v2873_v23 = vpop.f32.mrb[27].mxu0  ;;  %v2916_v24 = vpop.f32.mrb[27].mxu1  ;;  %v3838_v35 = vadd.f32 %v2914_v20, %v4609_v43 }
 0x750   :  { %v3667_v26 = vmul.f32 -1.442695, %v3805_v18  ;;  %v3807_v27 = vadd.f32 %v2873_v23, %v4599_v60  ;;  %v3669_v32 = vmul.f32 -1.442695, %v3837_v30  ;;  %v3839_v33 = vadd.f32 %v2916_v24, %v4606_v14 }
 0x751   :  { %4208 = vpow2.f32 %v3665_v21  ;;  %v3666_v28 = vmul.f32 -1.442695, %v3806_v22 }
 0x752   :  { %4210 = vpow2.f32 %v3667_v26  ;;  %v3668_v29 = vmul.f32 -1.442695, %v3807_v27  ;;  %v3670_v39 = vmul.f32 -1.442695, %v3839_v33 }
 0x753   :  { %4212 = vpow2.f32 %v3666_v28 }
 0x754   :  { %4214 = vpow2.f32 %v3668_v29 }
 0x755   :  { %4216 = vtanh.f32 %v3836_v31 }
 0x756   :  { %4218 = vpow2.f32 %v3669_v32 }
 0x757   :  { %4220 = vtanh.f32 %v3838_v35 }
 0x75b   :  { %v4209_v36 = vpop.eup %4208 }
 0x75c   :  { %v4211_v37 = vpop.eup %4210  ;;  %v2933_v38 = vadd.f32 1.0, %v4209_v36 }
 0x75d   :  { %v2945_v40 = vadd.f32 1.0, %v4211_v37  ;;  %v4213_v41 = vpop.eup %4212 }
 0x75e   :  { %4222 = vrcp.f32 %v2933_v38  ;;  %v2934_v42 = vadd.f32 1.0, %v4213_v41  ;;  %v4215_v44 = vpop.eup %4214 }
 0x75f   :  { %4224 = vrcp.f32 %v2945_v40  ;;  %v2946_v45 = vadd.f32 1.0, %v4215_v44  ;;  %v4217_v46 = vpop.eup %4216 }
 0x760   :  { %4226 = vpow2.f32 %v3670_v39  ;;  %v4219_v7 = vpop.eup %4218 }
 0x761   :  { %4228 = vrcp.f32 %v2934_v42  ;;  %v4221_v13 = vpop.eup %4220  ;;  %v2959_v57 = vadd.f32 1.0, %v4219_v7 }
 0x762   :  { %4230 = vrcp.f32 %v2946_v45 }
 0x763   :  { %4232 = vrcp.f32 %v2959_v57 }
 0x768   :  { %v4223_v52 = vpop.eup %4222 }
 0x769   :  { %v4225_v11 = vpop.eup %4224  ;;  %v2967_v61 = vmul.f32 %v4223_v52, %v4217_v46 }
 0x76a   :  { %v4227_v48 = vpop.eup %4226  ;;  %v2965_v50 = vmul.f32 %v4225_v11, %v5039_v51 }
 0x76b   :  { %v4229_v62 = vpop.eup %4228  ;;  %v2960_v2 = vadd.f32 1.0, %v4227_v48 }
 0x76c   :  { %v5090_v1 = vadd.f32 %v2967_v61, %v2965_v50  ;;  %v2968_v0 = vmul.f32 %v4229_v62, %v4221_v13  ;;  %v4231_v63 = vpop.eup %4230 }
 0x76d   :  { %v2966_v3 = vmul.f32 %v4231_v63, %v5043_v25  ;;  %v4233_v8 = vpop.eup %4232 }
 0x76e   :  { %4234 = vtanh.f32 %v5090_v1 }
 0x76f   :  { %v5094_v6 = vadd.f32 %v2968_v0, %v2966_v3  ;;  %4236 = vrcp.f32 %v2960_v2 }
 0x771   :  { %4238 = vtanh.f32 %v5094_v6 }
 0x778   :  { %v4235_v17 = vpop.eup %4234 }
 0x779   :  { %v4237_v51 = vpop.eup %4236  ;;  %v2973_v16 = vmul.f32 %v4235_v17, %v4233_v8 }
 0x77b   :  { %v4239_v10 = vpop.eup %4238 }
 0x77c   :  { %v2974_v15 = vmul.f32 %v4239_v10, %v4237_v51 }
 0x77e   :  { %v3766_v34 = vpack.c.bf16 %v2974_v15, %v2973_v16 }
 0x780   :  { %3778 = vst [vmem:[%s5117_s4 + $0x30] sm:$0xff] %v3766_v34   ;;  %3229 = vmatmul.mubr.bf16.vlgmr.msra.gmra.mrb[28].mxu0 %v3766_v34  ;;  %3272 = vmatmul.mubr.bf16.vlgmr.msra.gmra.mrb[28].mxu1 %v3766_v34 }
 0x853   :  { %v3230_v25 = vpop.f32.mrb[28].mxu0  ;;  %v3273_v5 = vpop.f32.mrb[28].mxu1 }
 0x854   :  { %v3808_v12 = vadd.f32 %v3230_v25, %v4597_v59  ;;  %v3232_v53 = vpop.f32.mrb[29].mxu0  ;;  %v3275_v9 = vpop.f32.mrb[29].mxu1  ;;  %v3840_v23 = vadd.f32 %v3273_v5, %v4609_v43 }
 0x855   :  { %v3809_v47 = vadd.f32 %v3232_v53, %v4599_v60  ;;  %v3234_v49 = vpop.f32.mrb[30].mxu0  ;;  %v3277_v4 = vpop.f32.mrb[30].mxu1  ;;  %v3841_v22 = vadd.f32 %v3275_v9, %v4606_v14 }
 0x856   :  { %v3707_v54 = vmul.f32 -1.442695, %v3808_v12  ;;  %v3810_v55 = vadd.f32 %v3234_v49, %v4597_v59  ;;  %v3236_v56 = vpop.f32.mrb[31].mxu0  ;;  %v3279_v58 = vpop.f32.mrb[31].mxu1  ;;  %v3842_v59 = vadd.f32 %v3277_v4, %v4609_v43 }
 0x857   :  { %v3709_v18 = vmul.f32 -1.442695, %v3809_v47  ;;  %v3811_v19 = vadd.f32 %v3236_v56, %v4599_v60  ;;  %v3711_v24 = vmul.f32 -1.442695, %v3841_v22  ;;  %v3843_v26 = vadd.f32 %v3279_v58, %v4606_v14 }
 0x858   :  { %4240 = vpow2.f32 %v3707_v54  ;;  %v3708_v20 = vmul.f32 -1.442695, %v3810_v55 }
 0x859   :  { %4242 = vpow2.f32 %v3709_v18  ;;  %v3710_v21 = vmul.f32 -1.442695, %v3811_v19  ;;  %v3712_v60 = vmul.f32 -1.442695, %v3843_v26 }
 0x85a   :  { %4244 = vpow2.f32 %v3708_v20 }
 0x85b   :  { %4246 = vpow2.f32 %v3710_v21 }
 0x85c   :  { %4248 = vtanh.f32 %v3840_v23 }
 0x85d   :  { %4250 = vpow2.f32 %v3711_v24 }
 0x85e   :  { %4252 = vtanh.f32 %v3842_v59 }
 0x862   :  { %v4241_v27 = vpop.eup %4240 }
 0x863   :  { %v4243_v28 = vpop.eup %4242  ;;  %v3296_v29 = vadd.f32 1.0, %v4241_v27 }
 0x864   :  { %v3308_v30 = vadd.f32 1.0, %v4243_v28  ;;  %v4245_v31 = vpop.eup %4244 }
 0x865   :  { %4254 = vrcp.f32 %v3296_v29  ;;  %v3297_v32 = vadd.f32 1.0, %v4245_v31  ;;  %v4247_v33 = vpop.eup %4246 }
 0x866   :  { %4256 = vrcp.f32 %v3308_v30  ;;  %v3309_v35 = vadd.f32 1.0, %v4247_v33  ;;  %v4249_v14 = vpop.eup %4248 }
 0x867   :  { %4258 = vpow2.f32 %v3712_v60  ;;  %v4251_v36 = vpop.eup %4250 }
 0x868   :  { %4260 = vrcp.f32 %v3297_v32  ;;  %v4253_v43 = vpop.eup %4252  ;;  %v3322_v40 = vadd.f32 1.0, %v4251_v36 }
 0x869   :  { %4262 = vrcp.f32 %v3309_v35 }
 0x86a   :  { %4264 = vrcp.f32 %v3322_v40 }
 0x86f   :  { %v4255_v37 = vpop.eup %4254 }
 0x870   :  { %v4257_v38 = vpop.eup %4256  ;;  %v3330_v39 = vmul.f32 %v4255_v37, %v4249_v14 }
 0x871   :  { %v4259_v41 = vpop.eup %4258  ;;  %v3328_v42 = vmul.f32 %v4257_v38, %v5090_v1 }
 0x872   :  { %v4261_v44 = vpop.eup %4260  ;;  %v3323_v13 = vadd.f32 1.0, %v4259_v41 }
 0x873   :  { %v3332_v45 = vadd.f32 %v3330_v39, %v3328_v42  ;;  %v3331_v46 = vmul.f32 %v4261_v44, %v4253_v43  ;;  %v4263_v7 = vpop.eup %4262 }
 0x874   :  { %v3329_v52 = vmul.f32 %v4263_v7, %v5094_v6  ;;  %v4265_v61 = vpop.eup %4264 }
 0x875   :  { %4266 = vtanh.f32 %v3332_v45 }
 0x876   :  { %v3333_v11 = vadd.f32 %v3331_v46, %v3329_v52  ;;  %4268 = vrcp.f32 %v3323_v13 }
 0x878   :  { %4270 = vtanh.f32 %v3333_v11 }
 0x87f   :  { %v4267_v48 = vpop.eup %4266 }
 0x880   :  { %v3336_v50 = vmul.f32 %v4267_v48, %v4265_v61  ;;  %v4269_v62 = vpop.eup %4268 }
 0x882   :  { %v4271_v57 = vpop.eup %4270 }
 0x883   :  { %v3337_v0 = vmul.f32 %v4271_v57, %v4269_v62 }
 0x885   :  { %v3771_v63 = vpack.c.bf16 %v3337_v0, %v3336_v50 }
 0x887   :  { %3779 = vst [vmem:[%s5117_s4 + $0x38] sm:$0xff] %v3771_v63  }

</bundles_post_ra>
